<compile_context>
chip_gen: v7x
topology: tpu7x:2x2x1
jax: 0.10.0
libtpu: 0.0.40
codegen_flags: <defaults>
</compile_context>

<pallas_src>
import functools

import numpy as np
import jax
import jax.numpy as jnp
from jax.experimental import pallas as pl
from jax.experimental.pallas import tpu as pltpu

_VMEM = functools.partial(pl.BlockSpec, memory_space=pltpu.MemorySpace.VMEM)


# --------------------------------------------------------------------------
# Fully fused forward kernel.
# --------------------------------------------------------------------------
def _fused_gnn_kernel(*refs, prop_steps, msg_nlin, dec_nlin, Hp):
    it = iter(refs)
    x_ref = next(it)
    gcat_ref = next(it)        # (E, 2N) bf16 one-hot [target | source] gather
    s_ref = next(it)           # (N, E) f32 row-normalized mean-aggregation
    enc_w = next(it)
    enc_b = next(it)
    w0t_all = next(it)         # (P, Hp, MHp)  first msg layer, target half
    w0b_all = next(it)         # (P, Hp, MHp)  first msg layer, source half
    b0_all = next(it)          # (P, 1, MHp)
    msg_rest = [(next(it), next(it)) for _ in range(msg_nlin - 1)]
    wi_all = next(it)          # (P, Hp, 3*Hp)  [r|z|n], 128-aligned gate blocks
    wh_all = next(it)          # (P, Hp, 3*Hp)
    bi_all = next(it)          # (P, 1, 3*Hp)
    bh_all = next(it)          # (P, 1, 3*Hp)
    dec = [(next(it), next(it)) for _ in range(dec_nlin)]
    o_ref = next(it)

    f32 = jnp.float32
    gcat = gcat_ref[...].astype(f32)   # exact bf16 -> f32 upcast of 0/1 entries
    s = s_ref[...]

    # Encoder: Linear + Tanh (padded hidden columns stay exactly zero).
    h = jnp.tanh(jnp.dot(x_ref[...], enc_w[...],
                         preferred_element_type=f32) + enc_b[...])

    for l in range(prop_steps):
        # --- message MLP, first layer with the [x_i || x_j] concat folded ---
        pt = jnp.dot(h, w0t_all[l], preferred_element_type=f32)    # (N, MHp)
        pb = jnp.dot(h, w0b_all[l], preferred_element_type=f32)    # (N, MHp)
        pcat = jnp.concatenate([pt, pb], axis=0)                   # (2N, MHp)
        m = jnp.dot(gcat, pcat, preferred_element_type=f32) + b0_all[l]
        if msg_nlin > 1:
            m = jnp.tanh(m)
        for pos, (w_all, b_all) in enumerate(msg_rest, start=1):
            m = jnp.dot(m, w_all[l], preferred_element_type=f32) + b_all[l]
            if pos < msg_nlin - 1:
                m = jnp.tanh(m)

        # --- mean aggregation over incoming edges ---------------------------
        aggr = jnp.dot(s, m, preferred_element_type=f32)            # (N, Hp)

        # --- GRUCell update: packed, 128-lane-aligned gates [r|z|n] ---------
        gi = jnp.dot(aggr, wi_all[l], preferred_element_type=f32) + bi_all[l]
        gh = jnp.dot(h, wh_all[l], preferred_element_type=f32) + bh_all[l]
        r = jax.nn.sigmoid(gi[:, 0:Hp] + gh[:, 0:Hp])
        z = jax.nn.sigmoid(gi[:, Hp:2 * Hp] + gh[:, Hp:2 * Hp])
        n = jnp.tanh(gi[:, 2 * Hp:3 * Hp] + r * gh[:, 2 * Hp:3 * Hp])
        h = (1.0 - z) * n + z * h      # padded lanes stay exactly zero

    # Decoder (final layer zero-padded to a lane-dense width host-side).
    out = h
    for pos, (w, b) in enumerate(dec):
        out = jnp.dot(out, w[...], preferred_element_type=f32) + b[...]
        if pos < dec_nlin - 1:
            out = jnp.tanh(out)
    o_ref[...] = out.astype(o_ref.dtype)


# --------------------------------------------------------------------------
# Host-side parameter packing (done once): lane-align (zero-pad) every width
# to a multiple of 128, split the first message weight, stack per-prop-step
# weights into leading-dim arrays, pack the GRU gates at 128-aligned offsets.
# --------------------------------------------------------------------------
def _round_up(n, m):
    return ((n + m - 1) // m) * m


def _pad_w(w, rows, cols):
    w = jnp.asarray(w, jnp.float32)
    return jnp.pad(w, ((0, rows - w.shape[0]), (0, cols - w.shape[1])))


def _pad_b(b, cols):
    b = jnp.asarray(b, jnp.float32).reshape(1, -1)
    return jnp.pad(b, ((0, 0), (0, cols - b.shape[1])))


def pack_params(params, lane=128):
    H = params["enc_w"][0].shape[1]
    Hp = _round_up(H, lane)
    layers = params["layers"]
    P = len(layers)
    packed = {"H": H, "Hp": Hp, "P": P}

    packed["enc_w"] = _pad_w(params["enc_w"][0],
                             params["enc_w"][0].shape[0], Hp)
    packed["enc_b"] = _pad_b(params["enc_b"][0], Hp)

    packed["msg_rest"] = []
    if P:
        msg_nlin = len(layers[0]["msg_w"])
        packed["msg_nlin"] = msg_nlin
        w0t, w0b, b0 = [], [], []
        rest = [[] for _ in range(msg_nlin - 1)]
        wi, wh, bi, bh = [], [], [], []
        for layer in layers:
            w0 = layer["msg_w"][0]                        # (2H, hid)
            hidp = _round_up(w0.shape[1], lane)
            w0t.append(_pad_w(w0[:H, :], Hp, hidp))
            w0b.append(_pad_w(w0[H:, :], Hp, hidp))
            b0.append(_pad_b(layer["msg_b"][0], hidp))
            for pos in range(1, msg_nlin):
                w = layer["msg_w"][pos]
                rp = _round_up(w.shape[0], lane)
                cp = _round_up(w.shape[1], lane)
                rest[pos - 1].append((_pad_w(w, rp, cp),
                                      _pad_b(layer["msg_b"][pos], cp)))
            g = layer["gru"]
            wi.append(jnp.concatenate([_pad_w(g["wir"], Hp, Hp),
                                       _pad_w(g["wiz"], Hp, Hp),
                                       _pad_w(g["win"], Hp, Hp)], axis=1))
            wh.append(jnp.concatenate([_pad_w(g["whr"], Hp, Hp),
                                       _pad_w(g["whz"], Hp, Hp),
                                       _pad_w(g["whn"], Hp, Hp)], axis=1))
            bi.append(jnp.concatenate([_pad_b(g["bir"], Hp),
                                       _pad_b(g["biz"], Hp),
                                       _pad_b(g["bin"], Hp)], axis=1))
            bh.append(jnp.concatenate([_pad_b(g["bhr"], Hp),
                                       _pad_b(g["bhz"], Hp),
                                       _pad_b(g["bhn"], Hp)], axis=1))
        packed["w0t_all"] = jnp.stack(w0t)
        packed["w0b_all"] = jnp.stack(w0b)
        packed["b0_all"] = jnp.stack(b0)
        packed["msg_rest"] = [(jnp.stack([w for w, _ in grp]),
                               jnp.stack([b for _, b in grp])) for grp in rest]
        packed["wi_all"] = jnp.stack(wi)
        packed["wh_all"] = jnp.stack(wh)
        packed["bi_all"] = jnp.stack(bi)
        packed["bh_all"] = jnp.stack(bh)
    else:
        packed["msg_nlin"] = 1

    dec_w, dec_b = [], []
    for w, b in zip(params["dec_w"], params["dec_b"]):
        rp = _round_up(w.shape[0], lane)
        cp = _round_up(w.shape[1], lane)
        dec_w.append(_pad_w(w, rp, cp))
        dec_b.append(_pad_b(b, cp))
    packed["dec_w"] = dec_w
    packed["dec_b"] = dec_b
    packed["action_dim"] = params["dec_w"][-1].shape[1]
    packed["out_pad"] = dec_w[-1].shape[1]
    return packed


# --------------------------------------------------------------------------
# Wrapper: builds the flat argument list, VMEM limit, cost estimate, launches
# the single fused pallas_call and applies the mask / reshape epilogue.
# --------------------------------------------------------------------------
def gnn_forward(packed, x, gcat, s_mat, num_nodes, mask_idx, num_graphs):
    Hp = packed["Hp"]
    P = packed["P"]
    assert P >= 1, "propagation_steps must be >= 1"
    msg_nlin = packed["msg_nlin"]
    dec_nlin = len(packed["dec_w"])
    out_pad = packed["out_pad"]
    n_total = x.shape[0]
    E = gcat.shape[0]
    MHp = packed["b0_all"].shape[-1]

    args = [x, gcat, s_mat, packed["enc_w"], packed["enc_b"],
            packed["w0t_all"], packed["w0b_all"], packed["b0_all"]]
    for w_all, b_all in packed["msg_rest"]:
        args += [w_all, b_all]
    args += [packed["wi_all"], packed["wh_all"],
             packed["bi_all"], packed["bh_all"]]
    for w, b in zip(packed["dec_w"], packed["dec_b"]):
        args += [w, b]

    arg_bytes = sum(int(np.prod(a.shape)) * a.dtype.itemsize for a in args)
    out_bytes = n_total * out_pad * 4

    # Advisory cost estimate for the XLA scheduler.
    flops = 2 * n_total * x.shape[1] * Hp
    trans = n_total * Hp
    for _ in range(P):
        flops += 4 * n_total * Hp * MHp            # pt, pb
        flops += 4 * E * n_total * MHp             # merged gather matmul
        for w_all, _ in packed["msg_rest"]:
            flops += 2 * E * w_all.shape[1] * w_all.shape[2]
            trans += E * w_all.shape[2]
        flops += 2 * n_total * E * Hp              # mean aggregation
        flops += 12 * n_total * Hp * Hp            # GRU gi/gh
        trans += 3 * n_total * Hp                  # sigmoid x2 + tanh
    for w in packed["dec_w"]:
        flops += 2 * n_total * w.shape[0] * w.shape[1]
        trans += n_total * w.shape[1]

    kernel = functools.partial(_fused_gnn_kernel, prop_steps=P,
                               msg_nlin=msg_nlin, dec_nlin=dec_nlin, Hp=Hp)
    out_padded = pl.pallas_call(
        kernel,
        out_shape=jax.ShapeDtypeStruct((n_total, out_pad), jnp.float32),
        in_specs=[_VMEM()] * len(args),
        out_specs=_VMEM(),
        compiler_params=pltpu.CompilerParams(
            vmem_limit_bytes=int(min(96 * 2**20,
                                     max(16 * 2**20,
                                         8 * (arg_bytes + out_bytes))))),
        cost_estimate=pl.CostEstimate(flops=int(flops),
                                      transcendentals=int(trans),
                                      bytes_accessed=int(arg_bytes + out_bytes)),
    )(*args)

    out = out_padded[:, :packed["action_dim"]]
    # x.view(-1, num_nodes) ; squeeze(0) ; masked select ; view(num_graphs, -1)
    out = out.reshape(-1, num_nodes).reshape(-1)
    return jnp.take(out, mask_idx).reshape(num_graphs, -1)


# --------------------------------------------------------------------------
# Pure-JAX reference (original unpacked params) for correctness check.
# --------------------------------------------------------------------------
def ref_forward(params, x, gt, gs, s_mat, num_nodes, mask_idx, num_graphs):
    def mlp(h, ws, bs, acts):
        for w, b, a in zip(ws, bs, acts):
            h = h @ w + b
            if a:
                h = jnp.tanh(h)
        return h

    h = mlp(x, params["enc_w"], params["enc_b"], params["enc_act"])
    for layer in params["layers"]:
        xi = gt @ h
        xj = gs @ h
        m = jnp.concatenate([xi, xj], axis=-1)
        L = len(layer["msg_w"])
        for l, (w, b) in enumerate(zip(layer["msg_w"], layer["msg_b"])):
            m = m @ w + b
            if l < L - 1:
                m = jnp.tanh(m)
        aggr = s_mat @ m
        g = layer["gru"]
        r = jax.nn.sigmoid(aggr @ g["wir"] + g["bir"] + h @ g["whr"] + g["bhr"])
        z = jax.nn.sigmoid(aggr @ g["wiz"] + g["biz"] + h @ g["whz"] + g["bhz"])
        n = jnp.tanh(aggr @ g["win"] + g["bin"] + r * (h @ g["whn"] + g["bhn"]))
        h = (1.0 - z) * n + z * h
    out = mlp(h, params["dec_w"], params["dec_b"], params["dec_act"])
    out = out.reshape(-1, num_nodes).reshape(-1)
    return jnp.take(out, mask_idx).reshape(num_graphs, -1)


# --------------------------------------------------------------------------
# Deterministic parameter initialization (PyTorch-like uniform fan-in bounds).
# --------------------------------------------------------------------------
def init_params(key, in_dim, hidden_node_dim, msg_hidden, msg_layers,
                action_dim, prop_steps):
    state = {"k": key}

    def nextkey():
        state["k"], sub = jax.random.split(state["k"])
        return sub

    def linear(fan_in, fan_out):
        bound = 1.0 / np.sqrt(fan_in)
        w = jax.random.uniform(nextkey(), (fan_in, fan_out), jnp.float32,
                               -bound, bound)
        b = jax.random.uniform(nextkey(), (fan_out,), jnp.float32,
                               -bound, bound)
        return w, b

    def mlp_params(in_d, hid, out_d, L):
        ws, bs, acts = [], [], []
        w, b = linear(in_d, hid); ws.append(w); bs.append(b); acts.append(True)
        for _ in range(L - 1):
            w, b = linear(hid, hid); ws.append(w); bs.append(b); acts.append(True)
        w, b = linear(hid, out_d); ws.append(w); bs.append(b); acts.append(False)
        return ws, bs, acts

    params = {}
    enc_w, enc_b = linear(in_dim, hidden_node_dim)
    params["enc_w"], params["enc_b"], params["enc_act"] = [enc_w], [enc_b], [True]

    params["layers"] = []
    bound = 1.0 / np.sqrt(hidden_node_dim)
    for _ in range(prop_steps):
        mw, mb, _ = mlp_params(2 * hidden_node_dim, msg_hidden,
                               hidden_node_dim, msg_layers)
        gru = {}
        for name in ("wir", "whr", "wiz", "whz", "win", "whn"):
            gru[name] = jax.random.uniform(
                nextkey(), (hidden_node_dim, hidden_node_dim), jnp.float32,
                -bound, bound)
        for name in ("bir", "bhr", "biz", "bhz", "bin", "bhn"):
            gru[name] = jax.random.uniform(
                nextkey(), (hidden_node_dim,), jnp.float32, -bound, bound)
        params["layers"].append({"msg_w": mw, "msg_b": mb, "gru": gru})

    dw, db, dact = mlp_params(hidden_node_dim, msg_hidden, action_dim, msg_layers)
    params["dec_w"], params["dec_b"], params["dec_act"] = dw, db, dact
    return params


# --------------------------------------------------------------------------
# Dense graph construction: bidirectional chain per graph + self loops
# (equivalent to PyG add_self_loops + mean aggregation).  Edge dim padded to
# a multiple of 8; padded edge rows are zero and never reach the aggregation.
# --------------------------------------------------------------------------
def build_graph(num_graphs, num_nodes):
    src, dst = [], []
    for g in range(num_graphs):
        off = g * num_nodes
        for i in range(num_nodes - 1):
            src += [off + i, off + i + 1]
            dst += [off + i + 1, off + i]
    for v in range(num_graphs * num_nodes):     # self loops appended last
        src.append(v)
        dst.append(v)
    src = np.asarray(src)
    dst = np.asarray(dst)
    n_total = num_graphs * num_nodes
    E = len(src)
    E_pad = ((E + 7) // 8) * 8
    gt = np.zeros((E_pad, n_total), np.float32)
    gt[np.arange(E), dst] = 1.0
    gs = np.zeros((E_pad, n_total), np.float32)
    gs[np.arange(E), src] = 1.0
    deg = np.zeros(n_total, np.float32)
    np.add.at(deg, dst, 1.0)
    s_mat = np.zeros((n_total, E_pad), np.float32)
    s_mat[:, :E] = (gt[:E] / deg[dst][:, None]).T   # mean-aggregation scatter
    gcat = np.concatenate([gt, gs], axis=1)          # (E_pad, 2N) merged gather
    return (jnp.asarray(gcat, dtype=jnp.bfloat16),   # 0/1 exact in bf16
            jnp.asarray(gt), jnp.asarray(gs), jnp.asarray(s_mat))


if __name__ == "__main__":
    # Small, module-consistent shapes.
    in_dim = 6
    num_nodes = 8            # nodes per graph
    num_graphs = 2
    action_dim = 1
    hidden_node_dim = 32     # kwargs: hidden_node_dim
    msg_hidden = 32          # kwargs: decoder_and_message_hidden_dim
    msg_layers = 2           # kwargs: decoder_and_message_layers
    prop_steps = 2           # kwargs: propagation_steps

    key = jax.random.PRNGKey(0)
    pkey, xkey = jax.random.split(key)
    params = init_params(pkey, in_dim, hidden_node_dim, msg_hidden,
                         msg_layers, action_dim, prop_steps)
    packed = pack_params(params)

    n_total = num_graphs * num_nodes
    x = jax.random.normal(xkey, (n_total, in_dim), jnp.float32)
    gcat, gt, gs, s_mat = build_graph(num_graphs, num_nodes)

    mask_node = np.array([True, False, True, True, False, True, True, False])
    mask_idx = jnp.asarray(
        np.nonzero(np.tile(mask_node, num_graphs))[0].astype(np.int32))

    out = gnn_forward(packed, x, gcat, s_mat, num_nodes, mask_idx, num_graphs)
    out = jax.block_until_ready(out)

    ref = ref_forward(params, x, gt, gs, s_mat, num_nodes, mask_idx, num_graphs)
    np.testing.assert_allclose(np.asarray(out), np.asarray(ref),
                               rtol=1e-4, atol=1e-4)
    print("KERNEL_OK")
</pallas_src>

<mosaic_0001>
module attributes {stable_mosaic.version = 11 : i64} {
  func.func @_fused_gnn_kernel(%arg0: memref<16x6xf32, #tpu.memory_space<vmem>>, %arg1: memref<48x32xbf16, #tpu.memory_space<vmem>>, %arg2: memref<16x48xf32, #tpu.memory_space<vmem>>, %arg3: memref<6x128xf32, #tpu.memory_space<vmem>>, %arg4: memref<1x128xf32, #tpu.memory_space<vmem>>, %arg5: memref<2x128x128xf32, #tpu.memory_space<vmem>>, %arg6: memref<2x128x128xf32, #tpu.memory_space<vmem>>, %arg7: memref<2x1x128xf32, #tpu.memory_space<vmem>>, %arg8: memref<2x128x128xf32, #tpu.memory_space<vmem>>, %arg9: memref<2x1x128xf32, #tpu.memory_space<vmem>>, %arg10: memref<2x128x128xf32, #tpu.memory_space<vmem>>, %arg11: memref<2x1x128xf32, #tpu.memory_space<vmem>>, %arg12: memref<2x128x384xf32, #tpu.memory_space<vmem>>, %arg13: memref<2x128x384xf32, #tpu.memory_space<vmem>>, %arg14: memref<2x1x384xf32, #tpu.memory_space<vmem>>, %arg15: memref<2x1x384xf32, #tpu.memory_space<vmem>>, %arg16: memref<128x128xf32, #tpu.memory_space<vmem>>, %arg17: memref<1x128xf32, #tpu.memory_space<vmem>>, %arg18: memref<128x128xf32, #tpu.memory_space<vmem>>, %arg19: memref<1x128xf32, #tpu.memory_space<vmem>>, %arg20: memref<128x128xf32, #tpu.memory_space<vmem>>, %arg21: memref<1x128xf32, #tpu.memory_space<vmem>>, %arg22: memref<16x128xf32, #tpu.memory_space<vmem>>) attributes {dimension_semantics = [], scalar_prefetch = 0 : i64, scratch_operands = 0 : i64, tpu.core_type = #tpu.core_type<tc>} {
    %c0 = arith.constant 0 : index
    %c0_0 = arith.constant 0 : index
    %0 = vector.load %arg1[%c0, %c0_0] : memref<48x32xbf16, #tpu.memory_space<vmem>>, vector<48x32xbf16>
    %1 = arith.extf %0 : vector<48x32xbf16> to vector<48x32xf32>
    %c0_1 = arith.constant 0 : index
    %c0_2 = arith.constant 0 : index
    %2 = vector.load %arg2[%c0_1, %c0_2] : memref<16x48xf32, #tpu.memory_space<vmem>>, vector<16x48xf32>
    %c0_3 = arith.constant 0 : index
    %c0_4 = arith.constant 0 : index
    %3 = vector.load %arg0[%c0_3, %c0_4] : memref<16x6xf32, #tpu.memory_space<vmem>>, vector<16x6xf32>
    %c0_5 = arith.constant 0 : index
    %c0_6 = arith.constant 0 : index
    %4 = vector.load %arg3[%c0_5, %c0_6] : memref<6x128xf32, #tpu.memory_space<vmem>>, vector<6x128xf32>
    %cst = arith.constant dense<0.000000e+00> : vector<16x128xf32>
    %5 = tpu.matmul %3, %4, %cst {dimension_numbers = #tpu.dot_dimension_numbers<[1], [0], [0], [1], [0, 0, 1, 1], [], []>} : vector<16x6xf32>, vector<6x128xf32>, vector<16x128xf32> -> vector<16x128xf32>
    %c0_7 = arith.constant 0 : index
    %c0_8 = arith.constant 0 : index
    %6 = vector.load %arg4[%c0_7, %c0_8] : memref<1x128xf32, #tpu.memory_space<vmem>>, vector<1x128xf32>
    %7 = vector.broadcast %6 : vector<1x128xf32> to vector<16x128xf32>
    %8 = arith.addf %5, %7 : vector<16x128xf32>
    %9 = math.tanh %8 : vector<16x128xf32>
    %c0_9 = arith.constant 0 : index
    %c0_10 = arith.constant 0 : index
    %c0_11 = arith.constant 0 : index
    %10 = vector.load %arg5[%c0_9, %c0_10, %c0_11] : memref<2x128x128xf32, #tpu.memory_space<vmem>>, vector<1x128x128xf32>
    %11 = vector.shape_cast %10 : vector<1x128x128xf32> to vector<128x128xf32>
    %cst_12 = arith.constant dense<0.000000e+00> : vector<16x128xf32>
    %12 = tpu.matmul %9, %11, %cst_12 {dimension_numbers = #tpu.dot_dimension_numbers<[1], [0], [0], [1], [0, 0, 1, 1], [], []>} : vector<16x128xf32>, vector<128x128xf32>, vector<16x128xf32> -> vector<16x128xf32>
    %c0_13 = arith.constant 0 : index
    %c0_14 = arith.constant 0 : index
    %c0_15 = arith.constant 0 : index
    %13 = vector.load %arg6[%c0_13, %c0_14, %c0_15] : memref<2x128x128xf32, #tpu.memory_space<vmem>>, vector<1x128x128xf32>
    %14 = vector.shape_cast %13 : vector<1x128x128xf32> to vector<128x128xf32>
    %cst_16 = arith.constant dense<0.000000e+00> : vector<16x128xf32>
    %15 = tpu.matmul %9, %14, %cst_16 {dimension_numbers = #tpu.dot_dimension_numbers<[1], [0], [0], [1], [0, 0, 1, 1], [], []>} : vector<16x128xf32>, vector<128x128xf32>, vector<16x128xf32> -> vector<16x128xf32>
    %16 = tpu.concatenate %12, %15 in 0 : vector<16x128xf32>, vector<16x128xf32> -> vector<32x128xf32>
    %cst_17 = arith.constant dense<0.000000e+00> : vector<48x128xf32>
    %17 = tpu.matmul %1, %16, %cst_17 {dimension_numbers = #tpu.dot_dimension_numbers<[1], [0], [0], [1], [0, 0, 1, 1], [], []>} : vector<48x32xf32>, vector<32x128xf32>, vector<48x128xf32> -> vector<48x128xf32>
    %c0_18 = arith.constant 0 : index
    %c0_19 = arith.constant 0 : index
    %c0_20 = arith.constant 0 : index
    %18 = vector.load %arg7[%c0_18, %c0_19, %c0_20] : memref<2x1x128xf32, #tpu.memory_space<vmem>>, vector<1x1x128xf32>
    %19 = vector.shape_cast %18 : vector<1x1x128xf32> to vector<1x128xf32>
    %20 = vector.broadcast %19 : vector<1x128xf32> to vector<48x128xf32>
    %21 = arith.addf %17, %20 : vector<48x128xf32>
    %22 = math.tanh %21 : vector<48x128xf32>
    %c0_21 = arith.constant 0 : index
    %c0_22 = arith.constant 0 : index
    %c0_23 = arith.constant 0 : index
    %23 = vector.load %arg8[%c0_21, %c0_22, %c0_23] : memref<2x128x128xf32, #tpu.memory_space<vmem>>, vector<1x128x128xf32>
    %24 = vector.shape_cast %23 : vector<1x128x128xf32> to vector<128x128xf32>
    %cst_24 = arith.constant dense<0.000000e+00> : vector<48x128xf32>
    %25 = tpu.matmul %22, %24, %cst_24 {dimension_numbers = #tpu.dot_dimension_numbers<[1], [0], [0], [1], [0, 0, 1, 1], [], []>} : vector<48x128xf32>, vector<128x128xf32>, vector<48x128xf32> -> vector<48x128xf32>
    %c0_25 = arith.constant 0 : index
    %c0_26 = arith.constant 0 : index
    %c0_27 = arith.constant 0 : index
    %26 = vector.load %arg9[%c0_25, %c0_26, %c0_27] : memref<2x1x128xf32, #tpu.memory_space<vmem>>, vector<1x1x128xf32>
    %27 = vector.shape_cast %26 : vector<1x1x128xf32> to vector<1x128xf32>
    %28 = vector.broadcast %27 : vector<1x128xf32> to vector<48x128xf32>
    %29 = arith.addf %25, %28 : vector<48x128xf32>
    %30 = math.tanh %29 : vector<48x128xf32>
    %c0_28 = arith.constant 0 : index
    %c0_29 = arith.constant 0 : index
    %c0_30 = arith.constant 0 : index
    %31 = vector.load %arg10[%c0_28, %c0_29, %c0_30] : memref<2x128x128xf32, #tpu.memory_space<vmem>>, vector<1x128x128xf32>
    %32 = vector.shape_cast %31 : vector<1x128x128xf32> to vector<128x128xf32>
    %cst_31 = arith.constant dense<0.000000e+00> : vector<48x128xf32>
    %33 = tpu.matmul %30, %32, %cst_31 {dimension_numbers = #tpu.dot_dimension_numbers<[1], [0], [0], [1], [0, 0, 1, 1], [], []>} : vector<48x128xf32>, vector<128x128xf32>, vector<48x128xf32> -> vector<48x128xf32>
    %c0_32 = arith.constant 0 : index
    %c0_33 = arith.constant 0 : index
    %c0_34 = arith.constant 0 : index
    %34 = vector.load %arg11[%c0_32, %c0_33, %c0_34] : memref<2x1x128xf32, #tpu.memory_space<vmem>>, vector<1x1x128xf32>
    %35 = vector.shape_cast %34 : vector<1x1x128xf32> to vector<1x128xf32>
    %36 = vector.broadcast %35 : vector<1x128xf32> to vector<48x128xf32>
    %37 = arith.addf %33, %36 : vector<48x128xf32>
    %cst_35 = arith.constant dense<0.000000e+00> : vector<16x128xf32>
    %38 = tpu.matmul %2, %37, %cst_35 {dimension_numbers = #tpu.dot_dimension_numbers<[1], [0], [0], [1], [0, 0, 1, 1], [], []>} : vector<16x48xf32>, vector<48x128xf32>, vector<16x128xf32> -> vector<16x128xf32>
    %c0_36 = arith.constant 0 : index
    %c0_37 = arith.constant 0 : index
    %c0_38 = arith.constant 0 : index
    %39 = vector.load %arg12[%c0_36, %c0_37, %c0_38] : memref<2x128x384xf32, #tpu.memory_space<vmem>>, vector<1x128x384xf32>
    %40 = vector.shape_cast %39 : vector<1x128x384xf32> to vector<128x384xf32>
    %cst_39 = arith.constant dense<0.000000e+00> : vector<16x384xf32>
    %41 = tpu.matmul %38, %40, %cst_39 {dimension_numbers = #tpu.dot_dimension_numbers<[1], [0], [0], [1], [0, 0, 1, 1], [], []>} : vector<16x128xf32>, vector<128x384xf32>, vector<16x384xf32> -> vector<16x384xf32>
    %c0_40 = arith.constant 0 : index
    %c0_41 = arith.constant 0 : index
    %c0_42 = arith.constant 0 : index
    %42 = vector.load %arg14[%c0_40, %c0_41, %c0_42] : memref<2x1x384xf32, #tpu.memory_space<vmem>>, vector<1x1x384xf32>
    %43 = vector.shape_cast %42 : vector<1x1x384xf32> to vector<1x384xf32>
    %44 = vector.broadcast %43 : vector<1x384xf32> to vector<16x384xf32>
    %45 = arith.addf %41, %44 : vector<16x384xf32>
    %c0_43 = arith.constant 0 : index
    %c0_44 = arith.constant 0 : index
    %c0_45 = arith.constant 0 : index
    %46 = vector.load %arg13[%c0_43, %c0_44, %c0_45] : memref<2x128x384xf32, #tpu.memory_space<vmem>>, vector<1x128x384xf32>
    %47 = vector.shape_cast %46 : vector<1x128x384xf32> to vector<128x384xf32>
    %cst_46 = arith.constant dense<0.000000e+00> : vector<16x384xf32>
    %48 = tpu.matmul %9, %47, %cst_46 {dimension_numbers = #tpu.dot_dimension_numbers<[1], [0], [0], [1], [0, 0, 1, 1], [], []>} : vector<16x128xf32>, vector<128x384xf32>, vector<16x384xf32> -> vector<16x384xf32>
    %c0_47 = arith.constant 0 : index
    %c0_48 = arith.constant 0 : index
    %c0_49 = arith.constant 0 : index
    %49 = vector.load %arg15[%c0_47, %c0_48, %c0_49] : memref<2x1x384xf32, #tpu.memory_space<vmem>>, vector<1x1x384xf32>
    %50 = vector.shape_cast %49 : vector<1x1x384xf32> to vector<1x384xf32>
    %51 = vector.broadcast %50 : vector<1x384xf32> to vector<16x384xf32>
    %52 = arith.addf %48, %51 : vector<16x384xf32>
    %53 = vector.extract_strided_slice %45 {offsets = [0, 0], sizes = [16, 128], strides = [1, 1]} : vector<16x384xf32> to vector<16x128xf32>
    %54 = vector.extract_strided_slice %52 {offsets = [0, 0], sizes = [16, 128], strides = [1, 1]} : vector<16x384xf32> to vector<16x128xf32>
    %55 = arith.addf %53, %54 : vector<16x128xf32>
    %56 = arith.negf %55 : vector<16x128xf32>
    %57 = math.exp %56 : vector<16x128xf32>
    %cst_50 = arith.constant 1.000000e+00 : f32
    %58 = vector.broadcast %cst_50 : f32 to vector<16x128xf32>
    %59 = arith.addf %58, %57 : vector<16x128xf32>
    %60 = arith.divf %58, %59 : vector<16x128xf32>
    %61 = vector.extract_strided_slice %45 {offsets = [0, 128], sizes = [16, 128], strides = [1, 1]} : vector<16x384xf32> to vector<16x128xf32>
    %62 = vector.extract_strided_slice %52 {offsets = [0, 128], sizes = [16, 128], strides = [1, 1]} : vector<16x384xf32> to vector<16x128xf32>
    %63 = arith.addf %61, %62 : vector<16x128xf32>
    %64 = arith.negf %63 : vector<16x128xf32>
    %65 = math.exp %64 : vector<16x128xf32>
    %cst_51 = arith.constant 1.000000e+00 : f32
    %66 = vector.broadcast %cst_51 : f32 to vector<16x128xf32>
    %67 = arith.addf %66, %65 : vector<16x128xf32>
    %68 = arith.divf %66, %67 : vector<16x128xf32>
    %69 = vector.extract_strided_slice %45 {offsets = [0, 256], sizes = [16, 128], strides = [1, 1]} : vector<16x384xf32> to vector<16x128xf32>
    %70 = vector.extract_strided_slice %52 {offsets = [0, 256], sizes = [16, 128], strides = [1, 1]} : vector<16x384xf32> to vector<16x128xf32>
    %71 = arith.mulf %60, %70 : vector<16x128xf32>
    %72 = arith.addf %69, %71 : vector<16x128xf32>
    %73 = math.tanh %72 : vector<16x128xf32>
    %cst_52 = arith.constant 1.000000e+00 : f32
    %74 = vector.broadcast %cst_52 : f32 to vector<16x128xf32>
    %75 = arith.subf %74, %68 : vector<16x128xf32>
    %76 = arith.mulf %75, %73 : vector<16x128xf32>
    %77 = arith.mulf %68, %9 : vector<16x128xf32>
    %78 = arith.addf %76, %77 : vector<16x128xf32>
    %c1 = arith.constant 1 : index
    %c0_53 = arith.constant 0 : index
    %c0_54 = arith.constant 0 : index
    %79 = vector.load %arg5[%c1, %c0_53, %c0_54] : memref<2x128x128xf32, #tpu.memory_space<vmem>>, vector<1x128x128xf32>
    %80 = vector.shape_cast %79 : vector<1x128x128xf32> to vector<128x128xf32>
    %cst_55 = arith.constant dense<0.000000e+00> : vector<16x128xf32>
    %81 = tpu.matmul %78, %80, %cst_55 {dimension_numbers = #tpu.dot_dimension_numbers<[1], [0], [0], [1], [0, 0, 1, 1], [], []>} : vector<16x128xf32>, vector<128x128xf32>, vector<16x128xf32> -> vector<16x128xf32>
    %c1_56 = arith.constant 1 : index
    %c0_57 = arith.constant 0 : index
    %c0_58 = arith.constant 0 : index
    %82 = vector.load %arg6[%c1_56, %c0_57, %c0_58] : memref<2x128x128xf32, #tpu.memory_space<vmem>>, vector<1x128x128xf32>
    %83 = vector.shape_cast %82 : vector<1x128x128xf32> to vector<128x128xf32>
    %cst_59 = arith.constant dense<0.000000e+00> : vector<16x128xf32>
    %84 = tpu.matmul %78, %83, %cst_59 {dimension_numbers = #tpu.dot_dimension_numbers<[1], [0], [0], [1], [0, 0, 1, 1], [], []>} : vector<16x128xf32>, vector<128x128xf32>, vector<16x128xf32> -> vector<16x128xf32>
    %85 = tpu.concatenate %81, %84 in 0 : vector<16x128xf32>, vector<16x128xf32> -> vector<32x128xf32>
    %cst_60 = arith.constant dense<0.000000e+00> : vector<48x128xf32>
    %86 = tpu.matmul %1, %85, %cst_60 {dimension_numbers = #tpu.dot_dimension_numbers<[1], [0], [0], [1], [0, 0, 1, 1], [], []>} : vector<48x32xf32>, vector<32x128xf32>, vector<48x128xf32> -> vector<48x128xf32>
    %c1_61 = arith.constant 1 : index
    %c0_62 = arith.constant 0 : index
    %c0_63 = arith.constant 0 : index
    %87 = vector.load %arg7[%c1_61, %c0_62, %c0_63] : memref<2x1x128xf32, #tpu.memory_space<vmem>>, vector<1x1x128xf32>
    %88 = vector.shape_cast %87 : vector<1x1x128xf32> to vector<1x128xf32>
    %89 = vector.broadcast %88 : vector<1x128xf32> to vector<48x128xf32>
    %90 = arith.addf %86, %89 : vector<48x128xf32>
    %91 = math.tanh %90 : vector<48x128xf32>
    %c1_64 = arith.constant 1 : index
    %c0_65 = arith.constant 0 : index
    %c0_66 = arith.constant 0 : index
    %92 = vector.load %arg8[%c1_64, %c0_65, %c0_66] : memref<2x128x128xf32, #tpu.memory_space<vmem>>, vector<1x128x128xf32>
    %93 = vector.shape_cast %92 : vector<1x128x128xf32> to vector<128x128xf32>
    %cst_67 = arith.constant dense<0.000000e+00> : vector<48x128xf32>
    %94 = tpu.matmul %91, %93, %cst_67 {dimension_numbers = #tpu.dot_dimension_numbers<[1], [0], [0], [1], [0, 0, 1, 1], [], []>} : vector<48x128xf32>, vector<128x128xf32>, vector<48x128xf32> -> vector<48x128xf32>
    %c1_68 = arith.constant 1 : index
    %c0_69 = arith.constant 0 : index
    %c0_70 = arith.constant 0 : index
    %95 = vector.load %arg9[%c1_68, %c0_69, %c0_70] : memref<2x1x128xf32, #tpu.memory_space<vmem>>, vector<1x1x128xf32>
    %96 = vector.shape_cast %95 : vector<1x1x128xf32> to vector<1x128xf32>
    %97 = vector.broadcast %96 : vector<1x128xf32> to vector<48x128xf32>
    %98 = arith.addf %94, %97 : vector<48x128xf32>
    %99 = math.tanh %98 : vector<48x128xf32>
    %c1_71 = arith.constant 1 : index
    %c0_72 = arith.constant 0 : index
    %c0_73 = arith.constant 0 : index
    %100 = vector.load %arg10[%c1_71, %c0_72, %c0_73] : memref<2x128x128xf32, #tpu.memory_space<vmem>>, vector<1x128x128xf32>
    %101 = vector.shape_cast %100 : vector<1x128x128xf32> to vector<128x128xf32>
    %cst_74 = arith.constant dense<0.000000e+00> : vector<48x128xf32>
    %102 = tpu.matmul %99, %101, %cst_74 {dimension_numbers = #tpu.dot_dimension_numbers<[1], [0], [0], [1], [0, 0, 1, 1], [], []>} : vector<48x128xf32>, vector<128x128xf32>, vector<48x128xf32> -> vector<48x128xf32>
    %c1_75 = arith.constant 1 : index
    %c0_76 = arith.constant 0 : index
    %c0_77 = arith.constant 0 : index
    %103 = vector.load %arg11[%c1_75, %c0_76, %c0_77] : memref<2x1x128xf32, #tpu.memory_space<vmem>>, vector<1x1x128xf32>
    %104 = vector.shape_cast %103 : vector<1x1x128xf32> to vector<1x128xf32>
    %105 = vector.broadcast %104 : vector<1x128xf32> to vector<48x128xf32>
    %106 = arith.addf %102, %105 : vector<48x128xf32>
    %cst_78 = arith.constant dense<0.000000e+00> : vector<16x128xf32>
    %107 = tpu.matmul %2, %106, %cst_78 {dimension_numbers = #tpu.dot_dimension_numbers<[1], [0], [0], [1], [0, 0, 1, 1], [], []>} : vector<16x48xf32>, vector<48x128xf32>, vector<16x128xf32> -> vector<16x128xf32>
    %c1_79 = arith.constant 1 : index
    %c0_80 = arith.constant 0 : index
    %c0_81 = arith.constant 0 : index
    %108 = vector.load %arg12[%c1_79, %c0_80, %c0_81] : memref<2x128x384xf32, #tpu.memory_space<vmem>>, vector<1x128x384xf32>
    %109 = vector.shape_cast %108 : vector<1x128x384xf32> to vector<128x384xf32>
    %cst_82 = arith.constant dense<0.000000e+00> : vector<16x384xf32>
    %110 = tpu.matmul %107, %109, %cst_82 {dimension_numbers = #tpu.dot_dimension_numbers<[1], [0], [0], [1], [0, 0, 1, 1], [], []>} : vector<16x128xf32>, vector<128x384xf32>, vector<16x384xf32> -> vector<16x384xf32>
    %c1_83 = arith.constant 1 : index
    %c0_84 = arith.constant 0 : index
    %c0_85 = arith.constant 0 : index
    %111 = vector.load %arg14[%c1_83, %c0_84, %c0_85] : memref<2x1x384xf32, #tpu.memory_space<vmem>>, vector<1x1x384xf32>
    %112 = vector.shape_cast %111 : vector<1x1x384xf32> to vector<1x384xf32>
    %113 = vector.broadcast %112 : vector<1x384xf32> to vector<16x384xf32>
    %114 = arith.addf %110, %113 : vector<16x384xf32>
    %c1_86 = arith.constant 1 : index
    %c0_87 = arith.constant 0 : index
    %c0_88 = arith.constant 0 : index
    %115 = vector.load %arg13[%c1_86, %c0_87, %c0_88] : memref<2x128x384xf32, #tpu.memory_space<vmem>>, vector<1x128x384xf32>
    %116 = vector.shape_cast %115 : vector<1x128x384xf32> to vector<128x384xf32>
    %cst_89 = arith.constant dense<0.000000e+00> : vector<16x384xf32>
    %117 = tpu.matmul %78, %116, %cst_89 {dimension_numbers = #tpu.dot_dimension_numbers<[1], [0], [0], [1], [0, 0, 1, 1], [], []>} : vector<16x128xf32>, vector<128x384xf32>, vector<16x384xf32> -> vector<16x384xf32>
    %c1_90 = arith.constant 1 : index
    %c0_91 = arith.constant 0 : index
    %c0_92 = arith.constant 0 : index
    %118 = vector.load %arg15[%c1_90, %c0_91, %c0_92] : memref<2x1x384xf32, #tpu.memory_space<vmem>>, vector<1x1x384xf32>
    %119 = vector.shape_cast %118 : vector<1x1x384xf32> to vector<1x384xf32>
    %120 = vector.broadcast %119 : vector<1x384xf32> to vector<16x384xf32>
    %121 = arith.addf %117, %120 : vector<16x384xf32>
    %122 = vector.extract_strided_slice %114 {offsets = [0, 0], sizes = [16, 128], strides = [1, 1]} : vector<16x384xf32> to vector<16x128xf32>
    %123 = vector.extract_strided_slice %121 {offsets = [0, 0], sizes = [16, 128], strides = [1, 1]} : vector<16x384xf32> to vector<16x128xf32>
    %124 = arith.addf %122, %123 : vector<16x128xf32>
    %125 = arith.negf %124 : vector<16x128xf32>
    %126 = math.exp %125 : vector<16x128xf32>
    %cst_93 = arith.constant 1.000000e+00 : f32
    %127 = vector.broadcast %cst_93 : f32 to vector<16x128xf32>
    %128 = arith.addf %127, %126 : vector<16x128xf32>
    %129 = arith.divf %127, %128 : vector<16x128xf32>
    %130 = vector.extract_strided_slice %114 {offsets = [0, 128], sizes = [16, 128], strides = [1, 1]} : vector<16x384xf32> to vector<16x128xf32>
    %131 = vector.extract_strided_slice %121 {offsets = [0, 128], sizes = [16, 128], strides = [1, 1]} : vector<16x384xf32> to vector<16x128xf32>
    %132 = arith.addf %130, %131 : vector<16x128xf32>
    %133 = arith.negf %132 : vector<16x128xf32>
    %134 = math.exp %133 : vector<16x128xf32>
    %cst_94 = arith.constant 1.000000e+00 : f32
    %135 = vector.broadcast %cst_94 : f32 to vector<16x128xf32>
    %136 = arith.addf %135, %134 : vector<16x128xf32>
    %137 = arith.divf %135, %136 : vector<16x128xf32>
    %138 = vector.extract_strided_slice %114 {offsets = [0, 256], sizes = [16, 128], strides = [1, 1]} : vector<16x384xf32> to vector<16x128xf32>
    %139 = vector.extract_strided_slice %121 {offsets = [0, 256], sizes = [16, 128], strides = [1, 1]} : vector<16x384xf32> to vector<16x128xf32>
    %140 = arith.mulf %129, %139 : vector<16x128xf32>
    %141 = arith.addf %138, %140 : vector<16x128xf32>
    %142 = math.tanh %141 : vector<16x128xf32>
    %cst_95 = arith.constant 1.000000e+00 : f32
    %143 = vector.broadcast %cst_95 : f32 to vector<16x128xf32>
    %144 = arith.subf %143, %137 : vector<16x128xf32>
    %145 = arith.mulf %144, %142 : vector<16x128xf32>
    %146 = arith.mulf %137, %78 : vector<16x128xf32>
    %147 = arith.addf %145, %146 : vector<16x128xf32>
    %c0_96 = arith.constant 0 : index
    %c0_97 = arith.constant 0 : index
    %148 = vector.load %arg16[%c0_96, %c0_97] : memref<128x128xf32, #tpu.memory_space<vmem>>, vector<128x128xf32>
    %cst_98 = arith.constant dense<0.000000e+00> : vector<16x128xf32>
    %149 = tpu.matmul %147, %148, %cst_98 {dimension_numbers = #tpu.dot_dimension_numbers<[1], [0], [0], [1], [0, 0, 1, 1], [], []>} : vector<16x128xf32>, vector<128x128xf32>, vector<16x128xf32> -> vector<16x128xf32>
    %c0_99 = arith.constant 0 : index
    %c0_100 = arith.constant 0 : index
    %150 = vector.load %arg17[%c0_99, %c0_100] : memref<1x128xf32, #tpu.memory_space<vmem>>, vector<1x128xf32>
    %151 = vector.broadcast %150 : vector<1x128xf32> to vector<16x128xf32>
    %152 = arith.addf %149, %151 : vector<16x128xf32>
    %153 = math.tanh %152 : vector<16x128xf32>
    %c0_101 = arith.constant 0 : index
    %c0_102 = arith.constant 0 : index
    %154 = vector.load %arg18[%c0_101, %c0_102] : memref<128x128xf32, #tpu.memory_space<vmem>>, vector<128x128xf32>
    %cst_103 = arith.constant dense<0.000000e+00> : vector<16x128xf32>
    %155 = tpu.matmul %153, %154, %cst_103 {dimension_numbers = #tpu.dot_dimension_numbers<[1], [0], [0], [1], [0, 0, 1, 1], [], []>} : vector<16x128xf32>, vector<128x128xf32>, vector<16x128xf32> -> vector<16x128xf32>
    %c0_104 = arith.constant 0 : index
    %c0_105 = arith.constant 0 : index
    %156 = vector.load %arg19[%c0_104, %c0_105] : memref<1x128xf32, #tpu.memory_space<vmem>>, vector<1x128xf32>
    %157 = vector.broadcast %156 : vector<1x128xf32> to vector<16x128xf32>
    %158 = arith.addf %155, %157 : vector<16x128xf32>
    %159 = math.tanh %158 : vector<16x128xf32>
    %c0_106 = arith.constant 0 : index
    %c0_107 = arith.constant 0 : index
    %160 = vector.load %arg20[%c0_106, %c0_107] : memref<128x128xf32, #tpu.memory_space<vmem>>, vector<128x128xf32>
    %cst_108 = arith.constant dense<0.000000e+00> : vector<16x128xf32>
    %161 = tpu.matmul %159, %160, %cst_108 {dimension_numbers = #tpu.dot_dimension_numbers<[1], [0], [0], [1], [0, 0, 1, 1], [], []>} : vector<16x128xf32>, vector<128x128xf32>, vector<16x128xf32> -> vector<16x128xf32>
    %c0_109 = arith.constant 0 : index
    %c0_110 = arith.constant 0 : index
    %162 = vector.load %arg21[%c0_109, %c0_110] : memref<1x128xf32, #tpu.memory_space<vmem>>, vector<1x128xf32>
    %163 = vector.broadcast %162 : vector<1x128xf32> to vector<16x128xf32>
    %164 = arith.addf %161, %163 : vector<16x128xf32>
    %c0_111 = arith.constant 0 : index
    %c0_112 = arith.constant 0 : index
    %165 = vector.load %arg22[%c0_111, %c0_112] : memref<16x128xf32, #tpu.memory_space<vmem>>, vector<16x128xf32>
    tpu.vector_store %arg22[%c0_111, %c0_112], %164 {strides = array<i32>} : memref<16x128xf32, #tpu.memory_space<vmem>>, vector<16x128xf32>,
    return
  }
}

</mosaic_0001>

<bundles_post_ra>
// kernel: tpu_custom_call.1
= control target key start
LH: loop header
LB: loop body
LE: loop exit
PB: predicated region body
PF: predicated region fallthrough
CT: control target
= control target key end

     0   :  { %s5628_s0 = inlined_call_operand.vmem [shape: f32[16,6], index: 0, kind: input, shape index: {}]   ;;  %s5629_s1 = inlined_call_operand.vmem [shape: bf16[48,32], index: 1, kind: input, shape index: {}]   ;;  %s5630_s2 = inlined_call_operand.hbm [shape: f32[16,48], index: 2, kind: input, shape index: {}]   ;;  %s5631_s3 = inlined_call_operand.hbm [shape: f32[6,128], index: 3, kind: input, shape index: {}]   ;;  %s5632_s4 = inlined_call_operand.hbm [shape: f32[1,128], index: 4, kind: input, shape index: {}]   ;;  %s5633_s5 = inlined_call_operand.hbm [shape: f32[2,128,128], index: 5, kind: input, shape index: {}]   ;;  %s5634_s6 = inlined_call_operand.hbm [shape: f32[2,128,128], index: 6, kind: input, shape index: {}]   ;;  %s5635_s7 = inlined_call_operand.vmem [shape: f32[2,1,128], index: 7, kind: input, shape index: {}]   ;;  %s5636_s8 = inlined_call_operand.hbm [shape: f32[2,128,128], index: 8, kind: input, shape index: {}]   ;;  %s5637_s9 = inlined_call_operand.vmem [shape: f32[2,1,128], index: 9, kind: input, shape index: {}]   ;;  %s5638_s10 = inlined_call_operand.hbm [shape: f32[2,128,128], index: 10, kind: input, shape index: {}]   ;;  %s5639_s11 = inlined_call_operand.hbm [shape: f32[2,1,128], index: 11, kind: input, shape index: {}]   ;;  %s5640_s12 = inlined_call_operand.hbm [shape: f32[2,128,384], index: 12, kind: input, shape index: {}]   ;;  %s5641_s13 = inlined_call_operand.hbm [shape: f32[2,128,384], index: 13, kind: input, shape index: {}]   ;;  %s5642_s14 = inlined_call_operand.hbm [shape: f32[2,1,384], index: 14, kind: input, shape index: {}]   ;;  %s5643_s15 = inlined_call_operand.hbm [shape: f32[2,1,384], index: 15, kind: input, shape index: {}]   ;;  %s5644_s16 = inlined_call_operand.hbm [shape: f32[128,128], index: 16, kind: input, shape index: {}]   ;;  %s5645_s17 = inlined_call_operand.hbm [shape: f32[1,128], index: 17, kind: input, shape index: {}]   ;;  %s5646_s18 = inlined_call_operand.vmem [shape: f32[128,128], index: 18, kind: input, shape index: {}]   ;;  %s5647_s19 = inlined_call_operand.vmem [shape: f32[1,128], index: 19, kind: input, shape index: {}]   ;;  %s5648_s20 = inlined_call_operand.hbm [shape: f32[128,128], index: 20, kind: input, shape index: {}]   ;;  %s5649_s21 = inlined_call_operand.vmem [shape: f32[1,128], index: 21, kind: input, shape index: {}]   ;;  %s5650_s22 = inlined_call_operand.hbm [shape: f32[16,128], index: 22, kind: output, shape index: {}]  }
   0x1   :  { %5660 = sst [smem:[#allocation36_spill]] %s5628_s0 }
   0x2   :  { %5661 = sst [smem:[#allocation37_spill]] %s5629_s1 }
   0x3   :  { %5662 = sst [smem:[#allocation38_spill]] %s5630_s2 }
   0x4   :  { %5663 = sst [smem:[#allocation39_spill]] %s5631_s3 }
   0x5   :  { %5664 = sst [smem:[#allocation40_spill]] %s5632_s4 }
   0x6   :  { %5665 = sst [smem:[#allocation41_spill]] %s5633_s5 }
   0x7   :  { %5666 = sst [smem:[#allocation42_spill]] %s5634_s6 }
   0x8   :  { %5667 = sst [smem:[#allocation43_spill]] %s5650_s22 }
   0x9   :  { %27 = vsyncpa [#allocation3], 0 }
   0xa   :  { %28 = vsyncpa [#allocation6], 0 }
   0xb   :  { %29 = vsyncpa [#allocation9], 0 }
   0xc   :  { %30 = vsyncpa [#allocation12], 0 }
   0xd   :  { %31 = vsyncpa [#allocation15], 0 }
   0xe   :  { %32 = vsyncpa [#allocation18], 0 }
   0xf   :  { %33 = vsyncpa [#allocation21], 0 }
  0x10   :  { %34 = vsyncpa [#allocation24], 0 }
  0x11   :  { %35 = vsyncpa [#allocation4], 0  ;;  %s5073_s3 = smov [#allocation5]   ;;  %s5668_s4 = sld [smem:[#allocation39_spill]] }
  0x12   :  { %s58_s28 = sshll.u32 %s5073_s3, 4  ;;  %s59_s28 = int_to_ptr.vmem [resolvable:$true] %s58_s28 }
  0x17   :  { %s4703_s0 = scalar_lea.hbm %s5668_s4, 128 }
  0x18   :  { %p4704_p0 = scmp.ne.s32.totalorder %s5668_s4, %s4703_s0  ;;  %p4707_p1 = scmp.lt.u32.totalorder %s4703_s0, %s5668_s4 }
  0x1a   :  { %p4709_p2 = pnand %p4707_p1, %p4704_p0 }
  0x1c   :  { %4712 = shalt.err (!%p4709_p2)
}
  0x1d   :  { %s4713_s6 = scalar_lea.vmem %s59_s28, 128  ;;  %p4718_p4 = scmp.lt.s32.totalorder %s59_s28, %s59_s28 }
  0x1e   :  { %p4714_p3 = scmp.ne.s32.totalorder %s59_s28, %s4713_s6  ;;  %p4719_p5 = scmp.lt.s32.totalorder %s4713_s6, %s4713_s6 }
  0x20   :  { %p4720_p6 = por %p4719_p5, %p4718_p4 }
  0x22   :  { %p4721_p7 = pnand %p4720_p6, %p4714_p3 }
  0x24   :  { %4724 = shalt.err (!%p4721_p7)
}
  0x25   :  { %61 = dma.hbm_to_vmem [thread:$0]  %s5668_s4, 128, %s59_s28, [#allocation6]  }
  0x26   :  { %s5074_s2 = smov [#allocation8]   ;;  %s5075_s3 = smov [#allocation11]  }
  0x27   :  { %s77_s27 = sshll.u32 %s5074_s2, 4  ;;  %s103_s29 = sshll.u32 %s5075_s3, 4  ;;  %s78_s27 = int_to_ptr.vmem [resolvable:$true] %s77_s27  ;;  %s104_s29 = int_to_ptr.vmem [resolvable:$true] %s103_s29 }
  0x28   :  { %s5669_s23 = sld [smem:[#allocation41_spill]] }
  0x2e   :  { %s4725_s1 = scalar_lea.hbm %s5669_s23, 4096 }
  0x2f   :  { %p4726_p8 = scmp.ne.s32.totalorder %s5669_s23, %s4725_s1  ;;  %p4729_p9 = scmp.lt.u32.totalorder %s4725_s1, %s5669_s23 }
  0x31   :  { %p4731_p10 = pnand %p4729_p9, %p4726_p8 }
  0x33   :  { %4734 = shalt.err (!%p4731_p10)
}
  0x34   :  { %s4735_s28 = scalar_lea.vmem %s78_s27, 4096  ;;  %p4740_p12 = scmp.lt.s32.totalorder %s78_s27, %s78_s27 }
  0x35   :  { %p4736_p11 = scmp.ne.s32.totalorder %s78_s27, %s4735_s28  ;;  %p4741_p13 = scmp.lt.s32.totalorder %s4735_s28, %s4735_s28 }
  0x37   :  { %p4742_p0 = por %p4741_p13, %p4740_p12 }
  0x39   :  { %p4743_p1 = pnand %p4742_p0, %p4736_p11 }
  0x3b   :  { %4746 = shalt.err (!%p4743_p1)
}
  0x3c   :  { %s5076_s4 = smov 128   ;;  %s5077_s25 = smov 8  }
  0x3d   :  { %83 = dma.hbm_to_vmem [thread:$0]  %s5669_s23, 4096, %s78_s27, [#allocation9], %s5076_s4, %s5076_s4, %s5077_s25  }
  0x3e   :  { %s4747_s30 = scalar_lea.hbm %s5636_s8, 4096 }
  0x3f   :  { %p4748_p2 = scmp.ne.s32.totalorder %s5636_s8, %s4747_s30  ;;  %p4751_p3 = scmp.lt.u32.totalorder %s4747_s30, %s5636_s8 }
  0x41   :  { %p4753_p4 = pnand %p4751_p3, %p4748_p2 }
  0x43   :  { %4756 = shalt.err (!%p4753_p4)
}
  0x44   :  { %s4757_s6 = scalar_lea.vmem %s104_s29, 4096  ;;  %p4762_p6 = scmp.lt.s32.totalorder %s104_s29, %s104_s29 }
  0x45   :  { %p4758_p5 = scmp.ne.s32.totalorder %s104_s29, %s4757_s6  ;;  %p4763_p7 = scmp.lt.s32.totalorder %s4757_s6, %s4757_s6 }
  0x47   :  { %p4764_p8 = por %p4763_p7, %p4762_p6 }
  0x49   :  { %p4765_p9 = pnand %p4764_p8, %p4758_p5 }
  0x4b   :  { %4768 = shalt.err (!%p4765_p9)
}
  0x4c   :  { %109 = dma.hbm_to_vmem [thread:$0]  %s5636_s8, 4096, %s104_s29, [#allocation12], %s5076_s4, %s5076_s4, %s5077_s25  }
  0x4d   :  { %s5078_s28 = smov [#allocation14]   ;;  %s4769_s3 = scalar_lea.hbm %s5639_s11, 32 }
  0x4e   :  { %s129_s26 = sshll.u32 %s5078_s28, 4  ;;  %p4770_p10 = scmp.ne.s32.totalorder %s5639_s11, %s4769_s3  ;;  %s130_s26 = int_to_ptr.vmem [resolvable:$true] %s129_s26 }
  0x4f   :  { %p4773_p11 = scmp.lt.u32.totalorder %s4769_s3, %s5639_s11 }
  0x51   :  { %p4775_p12 = pnand %p4773_p11, %p4770_p10 }
  0x53   :  { %4778 = shalt.err (!%p4775_p12)
}
  0x54   :  { %s4779_s24 = scalar_lea.vmem %s130_s26, 32  ;;  %p4784_p0 = scmp.lt.s32.totalorder %s130_s26, %s130_s26 }
  0x55   :  { %p4780_p13 = scmp.ne.s32.totalorder %s130_s26, %s4779_s24  ;;  %p4785_p1 = scmp.lt.s32.totalorder %s4779_s24, %s4779_s24 }
  0x57   :  { %p4786_p2 = por %p4785_p1, %p4784_p0 }
  0x59   :  { %p4787_p3 = pnand %p4786_p2, %p4780_p13 }
  0x5b   :  { %4790 = shalt.err (!%p4787_p3)
}
  0x5c   :  { %s5079_s8 = smov 16   ;;  %s5080_s29 = smov 1  }
  0x5d   :  { %135 = dma.hbm_to_vmem [thread:$0]  %s5639_s11, 32, %s130_s26, [#allocation15], %s5079_s8, %s5079_s8, %s5080_s29  }
  0x5e   :  { %s5081_s23 = smov [#allocation17]   ;;  %s4791_s3 = scalar_lea.hbm %s5641_s13, 12288 }
  0x5f   :  { %s153_s28 = sshll.u32 %s5081_s23, 4  ;;  %p4792_p4 = scmp.ne.s32.totalorder %s5641_s13, %s4791_s3  ;;  %s154_s28 = int_to_ptr.vmem [resolvable:$true] %s153_s28 }
  0x60   :  { %p4795_p5 = scmp.lt.u32.totalorder %s4791_s3, %s5641_s13 }
  0x62   :  { %p4797_p6 = pnand %p4795_p5, %p4792_p4 }
  0x64   :  { %4800 = shalt.err (!%p4797_p6)
}
  0x65   :  { %s4801_s24 = scalar_lea.vmem %s154_s28, 12288  ;;  %p4806_p8 = scmp.lt.s32.totalorder %s154_s28, %s154_s28 }
  0x66   :  { %p4802_p7 = scmp.ne.s32.totalorder %s154_s28, %s4801_s24  ;;  %p4807_p9 = scmp.lt.s32.totalorder %s4801_s24, %s4801_s24 }
  0x68   :  { %p4808_p10 = por %p4807_p9, %p4806_p8 }
  0x6a   :  { %p4809_p11 = pnand %p4808_p10, %p4802_p7 }
  0x6c   :  { %4812 = shalt.err (!%p4809_p11)
}
  0x6d   :  { %s5082_s11 = smov 384   ;;  %s5083_s26 = smov 24  }
  0x6e   :  { %159 = dma.hbm_to_vmem [thread:$0]  %s5641_s13, 12288, %s154_s28, [#allocation18], %s5082_s11, %s5082_s11, %s5083_s26  }
  0x6f   :  { %s5084_s6 = smov [#allocation20]   ;;  %s5085_s23 = smov [#allocation23]  }
  0x70   :  { %s177_s27 = sshll.u32 %s5084_s6, 4  ;;  %s202_s2 = sshll.u32 %s5085_s23, 4  ;;  %s178_s27 = int_to_ptr.vmem [resolvable:$true] %s177_s27  ;;  %s203_s2 = int_to_ptr.vmem [resolvable:$true] %s202_s2 }
  0x71   :  { %s4813_s30 = scalar_lea.hbm %s5643_s15, 96 }
  0x72   :  { %p4814_p12 = scmp.ne.s32.totalorder %s5643_s15, %s4813_s30  ;;  %p4817_p13 = scmp.lt.u32.totalorder %s4813_s30, %s5643_s15 }
  0x74   :  { %p4819_p0 = pnand %p4817_p13, %p4814_p12 }
  0x76   :  { %4822 = shalt.err (!%p4819_p0)
}
  0x77   :  { %s4823_s13 = scalar_lea.vmem %s178_s27, 96  ;;  %p4828_p2 = scmp.lt.s32.totalorder %s178_s27, %s178_s27 }
  0x78   :  { %p4824_p1 = scmp.ne.s32.totalorder %s178_s27, %s4823_s13  ;;  %p4829_p3 = scmp.lt.s32.totalorder %s4823_s13, %s4823_s13 }
  0x7a   :  { %p4830_p4 = por %p4829_p3, %p4828_p2 }
  0x7c   :  { %p4831_p5 = pnand %p4830_p4, %p4824_p1 }
  0x7e   :  { %4834 = shalt.err (!%p4831_p5)
}
  0x7f   :  { %s5659_s28 = smov 48   ;;  %s5087_s8 = smov 3  }
  0x80   :  { %183 = dma.hbm_to_vmem [thread:$0]  %s5643_s15, 96, %s178_s27, [#allocation21], %s5659_s28, %s5659_s28, %s5087_s8  }
  0x81   :  { %s4835_s3 = scalar_lea.hbm %s5645_s17, 16 }
  0x82   :  { %p4836_p6 = scmp.ne.s32.totalorder %s5645_s17, %s4835_s3  ;;  %p4839_p7 = scmp.lt.u32.totalorder %s4835_s3, %s5645_s17 }
  0x84   :  { %p4841_p8 = pnand %p4839_p7, %p4836_p6 }
  0x86   :  { %4844 = shalt.err (!%p4841_p8)
}
  0x87   :  { %s4845_s24 = scalar_lea.vmem %s203_s2, 16  ;;  %s4849_s13 = scalar_lea.vmem %s203_s2, 32 }
  0x88   :  { %p4846_p9 = scmp.ne.s32.totalorder %s203_s2, %s4845_s24  ;;  %p4850_p10 = scmp.lt.s32.totalorder %s203_s2, %s203_s2 }
  0x89   :  { %p4851_p11 = scmp.lt.s32.totalorder %s4849_s13, %s4845_s24 }
  0x8b   :  { %p4852_p12 = por %p4851_p11, %p4850_p10 }
  0x8d   :  { %p4853_p13 = pnand %p4852_p12, %p4846_p9 }
  0x8f   :  { %4856 = shalt.err (!%p4853_p13)
}
  0x90   :  { %205 = dma.hbm_to_vmem [thread:$0]  %s5645_s17, 16, %s203_s2, [#allocation24]  }
  0x91   :  { %s5088_s29 = smov [#allocation2]   ;;  %s5089_s23 = smov [#allocation7]  }
  0x92   :  { %s45_s6 = sshll.u32 %s5088_s29, 4  ;;  %s68_s22 = sshll.u32 %s5089_s23, 4  ;;  %s46_s6 = int_to_ptr.vmem [resolvable:$true] %s45_s6  ;;  %s69_s22 = int_to_ptr.vmem [resolvable:$true] %s68_s22 }
  0x93   :  { %s5670_s0 = sld [smem:[#allocation38_spill]] }
  0x99   :  { %s4857_s1 = scalar_lea.hbm %s5670_s0, 256 }
  0x9a   :  { %p4858_p0 = scmp.ne.s32.totalorder %s5670_s0, %s4857_s1  ;;  %p4861_p1 = scmp.lt.u32.totalorder %s4857_s1, %s5670_s0 }
  0x9c   :  { %p4863_p2 = pnand %p4861_p1, %p4858_p0 }
  0x9e   :  { %4866 = shalt.err (!%p4863_p2)
}
  0x9f   :  { %s4867_s17 = scalar_lea.vmem %s46_s6, 256  ;;  %p4872_p4 = scmp.lt.s32.totalorder %s46_s6, %s46_s6 }
  0xa0   :  { %p4868_p3 = scmp.ne.s32.totalorder %s46_s6, %s4867_s17  ;;  %p4873_p5 = scmp.lt.s32.totalorder %s4867_s17, %s4867_s17 }
  0xa2   :  { %p4874_p6 = por %p4873_p5, %p4872_p4 }
  0xa4   :  { %p4875_p7 = pnand %p4874_p6, %p4868_p3 }
  0xa6   :  { %4878 = shalt.err (!%p4875_p7)
}
  0xa7   :  { %51 = dma.hbm_to_vmem [thread:$0]  %s5670_s0, 256, %s46_s6, [#allocation3], %s5076_s4, %s5076_s4, %s5077_s25  }
  0xa8   :  { %s5671_s29 = sld [smem:[#allocation40_spill]] }
  0xae   :  { %s4879_s23 = scalar_lea.hbm %s5671_s29, 16 }
  0xaf   :  { %p4880_p8 = scmp.ne.s32.totalorder %s5671_s29, %s4879_s23  ;;  %p4883_p9 = scmp.lt.u32.totalorder %s4879_s23, %s5671_s29 }
  0xb1   :  { %p4885_p10 = pnand %p4883_p9, %p4880_p8 }
  0xb3   :  { %4888 = shalt.err (!%p4885_p10)
}
  0xb4   :  { %s4889_s24 = scalar_lea.vmem %s69_s22, 16  ;;  %s4893_s13 = scalar_lea.vmem %s69_s22, 32 }
  0xb5   :  { %p4890_p11 = scmp.ne.s32.totalorder %s69_s22, %s4889_s24  ;;  %p4894_p12 = scmp.lt.s32.totalorder %s69_s22, %s69_s22 }
  0xb6   :  { %p4895_p13 = scmp.lt.s32.totalorder %s4893_s13, %s4889_s24 }
  0xb8   :  { %p4896_p0 = por %p4895_p13, %p4894_p12 }
  0xba   :  { %p4897_p1 = pnand %p4896_p0, %p4890_p11 }
  0xbc   :  { %4900 = shalt.err (!%p4897_p1)
}
  0xbd   :  { %71 = dma.hbm_to_vmem [thread:$0]  %s5671_s29, 16, %s69_s22, [#allocation6]  }
  0xbe   :  { %s5090_s17 = smov [#allocation10]   ;;  %s5091_s15 = smov [#allocation13]  }
  0xbf   :  { %s89_s2 = sshll.u32 %s5090_s17, 4  ;;  %s117_s28 = sshll.u32 %s5091_s15, 4  ;;  %s90_s2 = int_to_ptr.vmem [resolvable:$true] %s89_s2  ;;  %s118_s28 = int_to_ptr.vmem [resolvable:$true] %s117_s28 }
  0xc0   :  { %s5672_s3 = sld [smem:[#allocation42_spill]] }
  0xc6   :  { %s4901_s30 = scalar_lea.hbm %s5672_s3, 4096 }
  0xc7   :  { %p4902_p2 = scmp.ne.s32.totalorder %s5672_s3, %s4901_s30  ;;  %p4905_p3 = scmp.lt.u32.totalorder %s4901_s30, %s5672_s3 }
  0xc9   :  { %p4907_p4 = pnand %p4905_p3, %p4902_p2 }
  0xcb   :  { %4910 = shalt.err (!%p4907_p4)
}
  0xcc   :  { %s4911_s22 = scalar_lea.vmem %s90_s2, 4096  ;;  %p4916_p6 = scmp.lt.s32.totalorder %s90_s2, %s90_s2 }
  0xcd   :  { %p4912_p5 = scmp.ne.s32.totalorder %s90_s2, %s4911_s22  ;;  %p4917_p7 = scmp.lt.s32.totalorder %s4911_s22, %s4911_s22 }
  0xcf   :  { %p4918_p8 = por %p4917_p7, %p4916_p6 }
  0xd1   :  { %p4919_p9 = pnand %p4918_p8, %p4912_p5 }
  0xd3   :  { %4922 = shalt.err (!%p4919_p9)
}
  0xd4   :  { %95 = dma.hbm_to_vmem [thread:$0]  %s5672_s3, 4096, %s90_s2, [#allocation9], %s5076_s4, %s5076_s4, %s5077_s25  }
  0xd5   :  { %s4923_s15 = scalar_lea.hbm %s5638_s10, 4096 }
  0xd6   :  { %p4924_p10 = scmp.ne.s32.totalorder %s5638_s10, %s4923_s15  ;;  %p4927_p11 = scmp.lt.u32.totalorder %s4923_s15, %s5638_s10 }
  0xd8   :  { %p4929_p12 = pnand %p4927_p11, %p4924_p10 }
  0xda   :  { %4932 = shalt.err (!%p4929_p12)
}
  0xdb   :  { %s4933_s5 = scalar_lea.vmem %s118_s28, 4096  ;;  %p4938_p0 = scmp.lt.s32.totalorder %s118_s28, %s118_s28 }
  0xdc   :  { %p4934_p13 = scmp.ne.s32.totalorder %s118_s28, %s4933_s5  ;;  %p4939_p1 = scmp.lt.s32.totalorder %s4933_s5, %s4933_s5 }
  0xde   :  { %p4940_p2 = por %p4939_p1, %p4938_p0 }
  0xe0   :  { %p4941_p3 = pnand %p4940_p2, %p4934_p13 }
  0xe2   :  { %4944 = shalt.err (!%p4941_p3)
}
  0xe3   :  { %123 = dma.hbm_to_vmem [thread:$0]  %s5638_s10, 4096, %s118_s28, [#allocation12], %s5076_s4, %s5076_s4, %s5077_s25  }
  0xe4   :  { %s5092_s24 = smov [#allocation16]   ;;  %s5093_s22 = smov [#allocation19]  }
  0xe5   :  { %s141_s13 = sshll.u32 %s5092_s24, 4  ;;  %s165_s29 = sshll.u32 %s5093_s22, 4  ;;  %s142_s13 = int_to_ptr.vmem [resolvable:$true] %s141_s13  ;;  %s166_s29 = int_to_ptr.vmem [resolvable:$true] %s165_s29 }
  0xe6   :  { %s4945_s17 = scalar_lea.hbm %s5640_s12, 12288 }
  0xe7   :  { %p4946_p4 = scmp.ne.s32.totalorder %s5640_s12, %s4945_s17  ;;  %p4949_p5 = scmp.lt.u32.totalorder %s4945_s17, %s5640_s12 }
  0xe9   :  { %p4951_p6 = pnand %p4949_p5, %p4946_p4 }
  0xeb   :  { %4954 = shalt.err (!%p4951_p6)
}
  0xec   :  { %s4955_s10 = scalar_lea.vmem %s142_s13, 12288  ;;  %p4960_p8 = scmp.lt.s32.totalorder %s142_s13, %s142_s13 }
  0xed   :  { %p4956_p7 = scmp.ne.s32.totalorder %s142_s13, %s4955_s10  ;;  %p4961_p9 = scmp.lt.s32.totalorder %s4955_s10, %s4955_s10 }
  0xef   :  { %p4962_p10 = por %p4961_p9, %p4960_p8 }
  0xf1   :  { %p4963_p11 = pnand %p4962_p10, %p4956_p7 }
  0xf3   :  { %4966 = shalt.err (!%p4963_p11)
}
  0xf4   :  { %147 = dma.hbm_to_vmem [thread:$0]  %s5640_s12, 12288, %s142_s13, [#allocation15], %s5082_s11, %s5082_s11, %s5083_s26  }
  0xf5   :  { %s4967_s3 = scalar_lea.hbm %s5642_s14, 96 }
  0xf6   :  { %p4968_p12 = scmp.ne.s32.totalorder %s5642_s14, %s4967_s3  ;;  %p4971_p13 = scmp.lt.u32.totalorder %s4967_s3, %s5642_s14 }
  0xf8   :  { %p4973_p0 = pnand %p4971_p13, %p4968_p12 }
  0xfa   :  { %4976 = shalt.err (!%p4973_p0)
}
  0xfb   :  { %s4977_s17 = scalar_lea.vmem %s166_s29, 96  ;;  %p4982_p2 = scmp.lt.s32.totalorder %s166_s29, %s166_s29 }
  0xfc   :  { %p4978_p1 = scmp.ne.s32.totalorder %s166_s29, %s4977_s17  ;;  %p4983_p3 = scmp.lt.s32.totalorder %s4977_s17, %s4977_s17 }
  0xfe   :  { %p4984_p4 = por %p4983_p3, %p4982_p2 }
 0x100   :  { %p4985_p5 = pnand %p4984_p4, %p4978_p1 }
 0x102   :  { %4988 = shalt.err (!%p4985_p5)
}
 0x103   :  { %s5673_s12 = smov 48   ;;  %s5094_s13 = smov [#allocation22]  }
 0x104   :  { %171 = dma.hbm_to_vmem [thread:$0]  %s5642_s14, 96, %s166_s29, [#allocation18], %s5673_s12, %s5673_s12, %s5087_s8  }
 0x105   :  { %s189_s15 = sshll.u32 %s5094_s13, 4  ;;  %s5095_s27 = smov [#allocation25]   ;;  %s190_s15 = int_to_ptr.vmem [resolvable:$true] %s189_s15 }
 0x106   :  { %s215_s23 = sshll.u32 %s5095_s27, 4  ;;  %s4989_s28 = scalar_lea.hbm %s5644_s16, 2048  ;;  %s216_s23 = int_to_ptr.vmem [resolvable:$true] %s215_s23 }
 0x107   :  { %p4990_p6 = scmp.ne.s32.totalorder %s5644_s16, %s4989_s28  ;;  %p4993_p7 = scmp.lt.u32.totalorder %s4989_s28, %s5644_s16 }
 0x109   :  { %p4995_p8 = pnand %p4993_p7, %p4990_p6 }
 0x10b   :  { %4998 = shalt.err (!%p4995_p8)
}
 0x10c   :  { %s4999_s14 = scalar_lea.vmem %s190_s15, 2048  ;;  %p5004_p10 = scmp.lt.s32.totalorder %s190_s15, %s190_s15 }
 0x10d   :  { %p5000_p9 = scmp.ne.s32.totalorder %s190_s15, %s4999_s14  ;;  %p5005_p11 = scmp.lt.s32.totalorder %s4999_s14, %s4999_s14 }
 0x10f   :  { %p5006_p12 = por %p5005_p11, %p5004_p10 }
 0x111   :  { %p5007_p13 = pnand %p5006_p12, %p5000_p9 }
 0x113   :  { %5010 = shalt.err (!%p5007_p13)
}
 0x114   :  { %195 = dma.hbm_to_vmem [thread:$0]  %s5644_s16, 2048, %s190_s15, [#allocation21], %s5076_s4, %s5076_s4, %s5077_s25  }
 0x115   :  { %s5011_s6 = scalar_lea.hbm %s5648_s20, 2048 }
 0x116   :  { %p5012_p0 = scmp.ne.s32.totalorder %s5648_s20, %s5011_s6  ;;  %p5015_p1 = scmp.lt.u32.totalorder %s5011_s6, %s5648_s20 }
 0x118   :  { %p5017_p2 = pnand %p5015_p1, %p5012_p0 }
 0x11a   :  { %5020 = shalt.err (!%p5017_p2)
}
 0x11b   :  { %s5021_s26 = scalar_lea.vmem %s216_s23, 2048  ;;  %p5026_p4 = scmp.lt.s32.totalorder %s216_s23, %s216_s23 }
 0x11c   :  { %p5022_p3 = scmp.ne.s32.totalorder %s216_s23, %s5021_s26  ;;  %p5027_p5 = scmp.lt.s32.totalorder %s5021_s26, %s5021_s26 }
 0x11e   :  { %p5028_p6 = por %p5027_p5, %p5026_p4 }
 0x120   :  { %p5029_p7 = pnand %p5028_p6, %p5022_p3 }
 0x122   :  { %5032 = shalt.err (!%p5029_p7)
}
 0x123   :  { %221 = dma.hbm_to_vmem [thread:$0]  %s5648_s20, 2048, %s216_s23, [#allocation24], %s5076_s4, %s5076_s4, %s5077_s25  }
 0x124   :  { %5055 = dma.done.wait [#allocation3], 256  }
 0x125   :  { %5056 = vsyncadd [#allocation3], 4294967040 }
 0x126   :  { %5057 = dma.done.wait [#allocation6], 144  }
 0x127   :  { %5058 = vsyncadd [#allocation6], 4294967152 }
 0x128   :  { %5059 = dma.done.wait [#allocation9], 8192  }
 0x129   :  { %5060 = vsyncadd [#allocation9], 4294959104 }
 0x12a   :  { %5061 = dma.done.wait [#allocation12], 8192  }
 0x12b   :  { %5062 = vsyncadd [#allocation12], 4294959104 }
 0x12c   :  { %5063 = dma.done.wait [#allocation15], 12320  }
 0x12d   :  { %5064 = vsyncadd [#allocation15], 4294954976 }
 0x12e   :  { %5065 = dma.done.wait [#allocation18], 12384  }
 0x12f   :  { %5066 = vsyncadd [#allocation18], 4294954912 }
 0x130   :  { %5067 = dma.done.wait [#allocation21], 2144  }
 0x131   :  { %5068 = vsyncadd [#allocation21], 4294965152 }
 0x132   :  { %5069 = dma.done.wait [#allocation24], 2064  }
 0x133   :  { %5070 = vsyncadd [#allocation24], 4294965232  ;;  %vm300_vm0 = vcmask 1045504   ;;  %vm293_vm1 = vcmask 48128   ;;  %v285_v0 = vld [vmem:[#allocation5] sm:$0x3f] }
 0x134   :  { %s5674_s27 = sld [smem:[#allocation36_spill]]  ;;  %3286 = vmatprep.subr.msk.mxu0 %vm300_vm0, %v285_v0  ;;  %v381_v3 = vld [vmem:[#allocation8] sm:$0xff]  ;;  %v382_v4 = vld [vmem:[#allocation8 + $0x8] sm:$0xff]  ;;  %v383_v8 = vld [vmem:[#allocation8 + $0x10] sm:$0xff]  ;;  %s5675_s1 = sld [smem:[#allocation37_spill]]  ;;  %vm570_vm2 = vcmask 261120  }
 0x135   :  { %v472_v5 = vld [vmem:[#allocation10] sm:$0xff]  ;;  %3287 = vmatpush3.msk.msra.mxu0 %vm300_vm0, %v285_v0  ;;  %v3904_v6 = vpack.c.bf16 %v382_v4, %v381_v3  ;;  %v473_v7 = vld [vmem:[#allocation10 + $0x8] sm:$0xff]  ;;  %v384_v9 = vld [vmem:[#allocation8 + $0x18] sm:$0xff]  ;;  %vm932_vm3 = vcmask 392192   ;;  %s5097_s23 = smov [#allocation26]  }
 0x136   :  { %v3936_v10 = vpack.c.bf16 %v473_v7, %v472_v5  ;;  %v3908_v11 = vpack.c.bf16 %v384_v9, %v383_v8  ;;  %v474_v12 = vld [vmem:[#allocation10 + $0x10] sm:$0xff]  ;;  %v475_v13 = vld [vmem:[#allocation10 + $0x18] sm:$0xff]  ;;  %v385_v14 = vld [vmem:[#allocation8 + $0x20] sm:$0xff]  ;;  %s2889_s30 = sshll.u32 %s5097_s23, 4  ;;  %s2890_s30 = int_to_ptr.vmem [resolvable:$true] %s2889_s30 }
 0x137   :  { %3905 = vmatprep.subr.bf16.mxu1 %v3904_v6  ;;  %v3940_v15 = vpack.c.bf16 %v475_v13, %v474_v12  ;;  %v386_v16 = vld [vmem:[#allocation8 + $0x28] sm:$0xff]  ;;  %v476_v17 = vld [vmem:[#allocation10 + $0x20] sm:$0xff]  ;;  %v387_v21 = vld [vmem:[#allocation8 + $0x30] sm:$0xff]  ;;  %p5038_p9 = scmp.lt.s32.totalorder %s2890_s30, %s2890_s30 }
 0x138   :  { %v477_v18 = vld [vmem:[#allocation10 + $0x28] sm:$0xff]  ;;  %3937 = vmatprep.subr.bf16.mxu0 %v3936_v10  ;;  %3907 = vmatpush3.bf16.msra.mxu1 %v3904_v6  ;;  %v3912_v19 = vpack.c.bf16 %v386_v16, %v385_v14  ;;  %v388_v22 = vld [vmem:[#allocation8 + $0x38] sm:$0xff]  ;;  %v478_v23 = vld [vmem:[#allocation10 + $0x30] sm:$0xff] }
 0x139   :  { %3909 = vmatprep.subr.bf16.mxu1 %v3908_v11  ;;  %v3944_v20 = vpack.c.bf16 %v477_v18, %v476_v17  ;;  %v479_v24 = vld [vmem:[#allocation10 + $0x38] sm:$0xff]  ;;  %v3916_v25 = vpack.c.bf16 %v388_v22, %v387_v21  ;;  %v389_v27 = vld [vmem:[#allocation8 + $0x40] sm:$0xff]  ;;  %v390_v28 = vld [vmem:[#allocation8 + $0x48] sm:$0xff] }
 0x13a   :  { %v283_v1 = vld [vmem:[%s5674_s27] sm:$0xff]  ;;  %v284_v2 = vld [vmem:[%s5674_s27 + $0x8] sm:$0xff]  ;;  %v3948_v26 = vpack.c.bf16 %v479_v24, %v478_v23  ;;  %v3920_v30 = vpack.c.bf16 %v390_v28, %v389_v27  ;;  %v392_v34 = vld [vmem:[#allocation8 + $0x58] sm:$0xff] }
 0x13b   :  { %3288 = vmatprep.mubr.msk.f32.mxu0 %vm293_vm1, %v283_v1  ;;  %v480_v29 = vld [vmem:[#allocation10 + $0x40] sm:$0xff]  ;;  %v481_v31 = vld [vmem:[#allocation10 + $0x48] sm:$0xff]  ;;  %v391_v33 = vld [vmem:[#allocation8 + $0x50] sm:$0xff] }
 0x13c   :  { %3289 = vmatmul.mubr.msk.f32.vlgmr.msra.gmra.mrb[0].mxu0 %vm293_vm1, %v284_v2  ;;  %3911 = vmatpush3.bf16.msra.mxu1 %v3908_v11  ;;  %v3952_v32 = vpack.c.bf16 %v481_v31, %v480_v29  ;;  %v482_v35 = vld [vmem:[#allocation10 + $0x50] sm:$0xff]  ;;  %v3924_v36 = vpack.c.bf16 %v392_v34, %v391_v33  ;;  %v483_v37 = vld [vmem:[#allocation10 + $0x58] sm:$0xff]  ;;  %v393_v39 = vld [vmem:[#allocation8 + $0x60] sm:$0xff] }
 0x13d   :  { %3939 = vmatpush3.bf16.msra.mxu0 %v3936_v10  ;;  %3913 = vmatprep.subr.bf16.mxu1 %v3912_v19  ;;  %v3956_v38 = vpack.c.bf16 %v483_v37, %v482_v35  ;;  %v394_v40 = vld [vmem:[#allocation8 + $0x68] sm:$0xff]  ;;  %v484_v41 = vld [vmem:[#allocation10 + $0x60] sm:$0xff]  ;;  %v395_v44 = vld [vmem:[#allocation8 + $0x70] sm:$0xff] }
 0x13e   :  { %3941 = vmatprep.subr.bf16.mxu0 %v3940_v15  ;;  %v3928_v42 = vpack.c.bf16 %v394_v40, %v393_v39  ;;  %v485_v43 = vld [vmem:[#allocation10 + $0x68] sm:$0xff]  ;;  %v396_v45 = vld [vmem:[#allocation8 + $0x78] sm:$0xff]  ;;  %v486_v48 = vld [vmem:[#allocation10 + $0x70] sm:$0xff] }
 0x13f   :  { %v3960_v46 = vpack.c.bf16 %v485_v43, %v484_v41  ;;  %v3932_v47 = vpack.c.bf16 %v396_v45, %v395_v44  ;;  %v487_v49 = vld [vmem:[#allocation10 + $0x78] sm:$0xff]  ;;  %v5443_v58 = vld [vmem:[%s5675_s1] sm:$0xff]   ;;  %v5452_v4 = vld [vmem:[%s5675_s1 + $0x8] sm:$0xff]  }
 0x140   :  { %3915 = vmatpush3.bf16.msra.mxu1 %v3912_v19  ;;  %v3964_v50 = vpack.c.bf16 %v487_v49, %v486_v48  ;;  %v2908_v51 = vld [vmem:[#allocation7] ss:$0 sm:$0xff]  ;;  %v2949_v59 = vunpack.c.l.bf16 %v5443_v58  ;;  %v690_v2 = vld [vmem:[#allocation11] sm:$0xff]  ;;  %v691_v3 = vld [vmem:[#allocation11 + $0x8] sm:$0xff]  ;;  %v2950_v8 = vunpack.c.h.bf16 %v5443_v58  ;;  %v2953_v9 = vunpack.c.l.bf16 %v5452_v4 }
 0x141   :  { %3943 = vmatpush3.bf16.msra.mxu0 %v3940_v15  ;;  %3917 = vmatprep.subr.bf16.mxu1 %v3916_v25  ;;  %v3976_v5 = vpack.c.bf16 %v691_v3, %v690_v2  ;;  %v692_v6 = vld [vmem:[#allocation11 + $0x10] sm:$0xff]  ;;  %v693_v7 = vld [vmem:[#allocation11 + $0x18] sm:$0xff]  ;;  %v694_v12 = vld [vmem:[#allocation11 + $0x20] sm:$0xff]  ;;  %v2954_v14 = vunpack.c.h.bf16 %v5452_v4 }
 0x142   :  { %3945 = vmatprep.subr.bf16.mxu0 %v3944_v20  ;;  %v5459_v10 = vld [vmem:[%s5675_s1 + $0x10] sm:$0xff]   ;;  %v3980_v11 = vpack.c.bf16 %v693_v7, %v692_v6  ;;  %v695_v13 = vld [vmem:[#allocation11 + $0x28] sm:$0xff]  ;;  %v698_v21 = vld [vmem:[#allocation11 + $0x40] sm:$0xff] }
 0x143   :  { %v2957_v15 = vunpack.c.l.bf16 %v5459_v10  ;;  %v3984_v16 = vpack.c.bf16 %v695_v13, %v694_v12  ;;  %v696_v17 = vld [vmem:[#allocation11 + $0x30] sm:$0xff]  ;;  %v697_v18 = vld [vmem:[#allocation11 + $0x38] sm:$0xff]  ;;  %v2958_v19 = vunpack.c.h.bf16 %v5459_v10  ;;  %v699_v22 = vld [vmem:[#allocation11 + $0x48] sm:$0xff] }
 0x144   :  { %3919 = vmatpush3.bf16.msra.mxu1 %v3916_v25  ;;  %v3992_v23 = vpack.c.bf16 %v699_v22, %v698_v21  ;;  %v700_v24 = vld [vmem:[#allocation11 + $0x50] sm:$0xff]  ;;  %v701_v25 = vld [vmem:[#allocation11 + $0x58] sm:$0xff]  ;;  %v702_v27 = vld [vmem:[#allocation11 + $0x60] sm:$0xff] }
 0x145   :  { %3947 = vmatpush3.bf16.msra.mxu0 %v3944_v20  ;;  %3921 = vmatprep.subr.bf16.mxu1 %v3920_v30  ;;  %v3988_v20 = vpack.c.bf16 %v697_v18, %v696_v17  ;;  %v703_v28 = vld [vmem:[#allocation11 + $0x68] sm:$0xff]  ;;  %v705_v31 = vld [vmem:[#allocation11 + $0x78] sm:$0xff]  ;;  %v814_v33 = vld [vmem:[#allocation13] sm:$0xff] }
 0x146   :  { %3949 = vmatprep.subr.bf16.mxu0 %v3948_v26  ;;  %v4000_v29 = vpack.c.bf16 %v703_v28, %v702_v27  ;;  %v815_v34 = vld [vmem:[#allocation13 + $0x8] sm:$0xff]  ;;  %v816_v35 = vld [vmem:[#allocation13 + $0x10] sm:$0xff]  ;;  %v817_v37 = vld [vmem:[#allocation13 + $0x18] sm:$0xff] }
 0x147   :  { %v818_v39 = vld [vmem:[#allocation13 + $0x20] sm:$0xff]  ;;  %v819_v40 = vld [vmem:[#allocation13 + $0x28] sm:$0xff]  ;;  %v821_v43 = vld [vmem:[#allocation13 + $0x38] sm:$0xff] }
 0x148   :  { %3923 = vmatpush3.bf16.msra.mxu1 %v3920_v30  ;;  %v704_v30 = vld [vmem:[#allocation11 + $0x70] sm:$0xff]  ;;  %v4016_v41 = vpack.c.bf16 %v819_v40, %v818_v39  ;;  %v2912_v45 = vld [vmem:[%s5635_s7] ss:$0 sm:$0xff]  ;;  %v823_v6 = vld [vmem:[#allocation13 + $0x48] sm:$0xff] }
 0x149   :  { %3951 = vmatpush3.bf16.msra.mxu0 %v3948_v26  ;;  %3925 = vmatprep.subr.bf16.mxu1 %v3924_v36  ;;  %v3996_v26 = vpack.c.bf16 %v701_v25, %v700_v24  ;;  %v825_v12 = vld [vmem:[#allocation13 + $0x58] sm:$0xff]  ;;  %v827_v17 = vld [vmem:[#allocation13 + $0x68] sm:$0xff]  ;;  %v1796_v4 = vld [vmem:[#allocation11 + $0xe0] sm:$0xff] }
 0x14a   :  { %3953 = vmatprep.subr.bf16.mxu0 %v3952_v32  ;;  %v829_v21 = vld [vmem:[#allocation13 + $0x78] sm:$0xff]  ;;  %v1793_v58 = vld [vmem:[#allocation11 + $0xc8] sm:$0xff] }
 0x14c   :  { %3927 = vmatpush3.bf16.msra.mxu1 %v3924_v36  ;;  %v4008_v36 = vpack.c.bf16 %v815_v34, %v814_v33 }
 0x14d   :  { %3955 = vmatpush3.bf16.msra.mxu0 %v3952_v32  ;;  %3929 = vmatprep.subr.bf16.mxu1 %v3928_v42  ;;  %v4004_v32 = vpack.c.bf16 %v705_v31, %v704_v30 }
 0x14e   :  { %3957 = vmatprep.subr.bf16.mxu0 %v3956_v38 }
 0x150   :  { %3931 = vmatpush3.bf16.msra.mxu1 %v3928_v42  ;;  %v820_v42 = vld [vmem:[#allocation13 + $0x30] sm:$0xff] }
 0x151   :  { %3959 = vmatpush3.bf16.msra.mxu0 %v3956_v38  ;;  %3933 = vmatprep.subr.bf16.mxu1 %v3932_v47  ;;  %v4012_v38 = vpack.c.bf16 %v817_v37, %v816_v35  ;;  %v4020_v44 = vpack.c.bf16 %v821_v43, %v820_v42  ;;  %v281_v42 = vld [vmem:[#allocation2] sm:$0xff] }
 0x152   :  { %3961 = vmatprep.subr.bf16.mxu0 %v3960_v46  ;;  %v1015_v43 = vld [vmem:[#allocation16 + $0x8] sm:$0xff] }
 0x154   :  { %3935 = vmatpush3.bf16.msra.mxu1 %v3932_v47 }
 0x155   :  { %3963 = vmatpush3.bf16.msra.mxu0 %v3960_v46  ;;  %4009 = vmatprep.subr.bf16.mxu1 %v4008_v36 }
 0x156   :  { %3965 = vmatprep.subr.bf16.mxu0 %v3964_v50 }
 0x159   :  { %3967 = vmatpush3.bf16.msra.mxu0 %v3964_v50 }
 0x20f   :  { %v3290_v52 = vpop.f32.mrb[0].mxu0 }
 0x210   :  { %v376_v53 = vadd.f32 %v3290_v52, %v2908_v51  ;;  %v370_v54 = vpop.f32.mrb[1].mxu0 }
 0x211   :  { %v371_v55 = vadd.f32 %v2908_v51, %v370_v54 }
 0x213   :  { %4601 = vtanh.f32 %v371_v55 }
 0x214   :  { %4603 = vtanh.f32 %v376_v53 }
 0x21d   :  { %v5432_v56 = vpop.eup %4601 }
 0x21e   :  { %v5434_v57 = vpop.eup %4603  ;;  %3323 = vmatprep.mubr.f32.mxu1 %v5432_v56  ;;  %3358 = vmatprep.mubr.f32.mxu0 %v5432_v56 }
 0x21f   :  { %3324 = vmatmul.mubr.f32.vlgmr.msra.gmra.mrb[0].mxu1 %v5434_v57  ;;  %3359 = vmatmul.mubr.f32.vlgmr.msra.gmra.mrb[2].mxu0 %v5434_v57 }
 0x220   :  { %3369 = vmatprep.mubr.msk.f32.mxu0 %vm570_vm2, %v2949_v59  ;;  %4011 = vmatpush3.bf16.msra.mxu1 %v4008_v36 }
 0x221   :  { %4013 = vmatprep.subr.bf16.mxu1 %v4012_v38 }
 0x224   :  { %4015 = vmatpush3.bf16.msra.mxu1 %v4012_v38 }
 0x225   :  { %4017 = vmatprep.subr.bf16.mxu1 %v4016_v41 }
 0x228   :  { %4019 = vmatpush3.bf16.msra.mxu1 %v4016_v41 }
 0x229   :  { %4021 = vmatprep.subr.bf16.mxu1 %v4020_v44 }
 0x22c   :  { %4023 = vmatpush3.bf16.msra.mxu1 %v4020_v44  ;;  %v1018_v44 = vld [vmem:[#allocation16 + $0x20] sm:$0xff] }
 0x2f2   :  { %v3325_v60 = vpop.f32.mrb[0].mxu1  ;;  %v3360_v61 = vpop.f32.mrb[2].mxu0 }
 0x2f3   :  { %v463_v62 = vpop.f32.mrb[1].mxu1  ;;  %v554_v63 = vpop.f32.mrb[3].mxu0 }
 0x2f4   :  { %v3968_v0 = vpack.c.bf16 %v3325_v60, %v463_v62  ;;  %v3972_v1 = vpack.c.bf16 %v3360_v61, %v554_v63 }
 0x2f6   :  { %3969 = vmatprep.subr.bf16.mxu0 %v3968_v0 }
 0x2f7   :  { %3971 = vmatpush3.bf16.msra.mxu0 %v3968_v0 }
 0x2f8   :  { %3973 = vmatprep.subr.bf16.mxu0 %v3972_v1 }
 0x2fb   :  { %3975 = vmatpush3.bf16.msra.mxu0 %v3972_v1 }
 0x2fc   :  { %3977 = vmatprep.subr.bf16.mxu0 %v3976_v5 }
 0x2fe   :  { %3370 = vmatmul.mubr.msk.f32.vlgmr.msra.gmra.mrb[4].mxu0 %vm570_vm2, %v2950_v8 }
 0x2ff   :  { %3372 = vmatprep.mubr.msk.f32.mxu0 %vm570_vm2, %v2953_v9  ;;  %3979 = vmatpush3.bf16.msra.mxu0 %v3976_v5  ;;  %v822_v5 = vld [vmem:[#allocation13 + $0x40] sm:$0xff] }
 0x300   :  { %3981 = vmatprep.subr.bf16.mxu0 %v3980_v11  ;;  %v4024_v7 = vpack.c.bf16 %v823_v6, %v822_v5  ;;  %v1035_v6 = vld [vmem:[#allocation16 + $0xa8] sm:$0xff] }
 0x302   :  { %3373 = vmatmul.mubr.msk.f32.gmra.mrb[6].mxu0 %vm570_vm2, %v2954_v14  ;;  %4025 = vmatprep.subr.bf16.mxu1 %v4024_v7 }
 0x303   :  { %3375 = vmatprep.mubr.msk.f32.mxu0 %vm570_vm2, %v2957_v15  ;;  %3983 = vmatpush3.bf16.msra.mxu0 %v3980_v11  ;;  %v824_v11 = vld [vmem:[#allocation13 + $0x50] sm:$0xff] }
 0x304   :  { %3985 = vmatprep.subr.bf16.mxu0 %v3984_v16  ;;  %4027 = vmatpush3.bf16.msra.mxu1 %v4024_v7  ;;  %v4028_v13 = vpack.c.bf16 %v825_v12, %v824_v11  ;;  %v1039_v11 = vld [vmem:[#allocation16 + $0xc8] sm:$0xff]  ;;  %v1042_v12 = vld [vmem:[#allocation16 + $0xe0] sm:$0xff] }
 0x306   :  { %3376 = vmatmul.mubr.msk.f32.gmra.mrb[8].mxu0 %vm570_vm2, %v2958_v19  ;;  %4029 = vmatprep.subr.bf16.mxu1 %v4028_v13 }
 0x307   :  { %3987 = vmatpush3.bf16.msra.mxu0 %v3984_v16  ;;  %v826_v16 = vld [vmem:[#allocation13 + $0x60] sm:$0xff] }
 0x308   :  { %3989 = vmatprep.subr.bf16.mxu0 %v3988_v20  ;;  %4031 = vmatpush3.bf16.msra.mxu1 %v4028_v13  ;;  %v4032_v18 = vpack.c.bf16 %v827_v17, %v826_v16  ;;  %v1038_v13 = vld [vmem:[#allocation16 + $0xc0] sm:$0xff]  ;;  %v4068_v16 = vpack.c.bf16 %v1042_v12, %v1039_v11  ;;  %v1041_v17 = vld [vmem:[#allocation16 + $0xd8] sm:$0xff]  ;;  %v1040_v11 = vld [vmem:[#allocation16 + $0xd0] sm:$0xff] }
 0x309   :  { %v1043_v12 = vld [vmem:[#allocation16 + $0xe8] sm:$0xff] }
 0x30a   :  { %4033 = vmatprep.subr.bf16.mxu1 %v4032_v18 }
 0x30b   :  { %3991 = vmatpush3.bf16.msra.mxu0 %v3988_v20  ;;  %v828_v20 = vld [vmem:[#allocation13 + $0x70] sm:$0xff] }
 0x30c   :  { %3993 = vmatprep.subr.bf16.mxu0 %v3992_v23  ;;  %4035 = vmatpush3.bf16.msra.mxu1 %v4032_v18  ;;  %v4036_v22 = vpack.c.bf16 %v829_v21, %v828_v20  ;;  %v4070_v18 = vpack.c.bf16 %v1041_v17, %v1038_v13  ;;  %v1045_v20 = vld [vmem:[#allocation16 + $0xf8] sm:$0xff]  ;;  %v1048_v21 = vld [vmem:[#allocation16 + $0x110] sm:$0xff]  ;;  %v4100_v13 = vpack.c.bf16 %v1043_v12, %v1040_v11  ;;  %v1260_v11 = vld [vmem:[#allocation17 + $0xe8] sm:$0xff] }
 0x30d   :  { %v1049_v17 = vld [vmem:[#allocation16 + $0x118] sm:$0xff] }
 0x30e   :  { %4037 = vmatprep.subr.bf16.mxu1 %v4036_v22 }
 0x30f   :  { %3995 = vmatpush3.bf16.msra.mxu0 %v3992_v23  ;;  %v2919_v23 = vld [vmem:[%s5637_s9] ss:$0 sm:$0xff] }
 0x310   :  { %3997 = vmatprep.subr.bf16.mxu0 %v3996_v26  ;;  %4039 = vmatpush3.bf16.msra.mxu1 %v4036_v22  ;;  %v1044_v22 = vld [vmem:[#allocation16 + $0xf0] sm:$0xff] }
 0x313   :  { %3999 = vmatpush3.bf16.msra.mxu0 %v3996_v26 }
 0x314   :  { %4001 = vmatprep.subr.bf16.mxu0 %v4000_v29 }
 0x317   :  { %4003 = vmatpush3.bf16.msra.mxu0 %v4000_v29 }
 0x318   :  { %4005 = vmatprep.subr.bf16.mxu0 %v4004_v32 }
 0x31b   :  { %4007 = vmatpush3.bf16.msra.mxu0 %v4004_v32 }
 0x3d1   :  { %v3371_v46 = vpop.f32.mrb[4].mxu0 }
 0x3d2   :  { %v661_v47 = vadd.f32 %v3371_v46, %v2912_v45  ;;  %v655_v48 = vpop.f32.mrb[5].mxu0  ;;  %v4052_v46 = vpack.c.bf16 %v1018_v44, %v1015_v43 }
 0x3d3   :  { %v656_v49 = vadd.f32 %v2912_v45, %v655_v48 }
 0x3d4   :  { %4053 = vmatprep.subr.bf16.mxu1 %v4052_v46 }
 0x3d5   :  { %4605 = vtanh.f32 %v656_v49  ;;  %v3374_v50 = vpop.f32.mrb[6].mxu0  ;;  %v1021_v49 = vld [vmem:[#allocation16 + $0x38] sm:$0xff] }
 0x3d6   :  { %4607 = vtanh.f32 %v661_v47  ;;  %v671_v51 = vadd.f32 %v3374_v50, %v2912_v45  ;;  %v665_v52 = vpop.f32.mrb[7].mxu0  ;;  %v1017_v47 = vld [vmem:[#allocation16 + $0x18] sm:$0xff]  ;;  %v1024_v50 = vld [vmem:[#allocation16 + $0x50] sm:$0xff] }
 0x3d7   :  { %v666_v53 = vadd.f32 %v2912_v45, %v665_v52  ;;  %v4056_v52 = vpack.c.bf16 %v1024_v50, %v1021_v49 }
 0x3d9   :  { %4609 = vtanh.f32 %v666_v53  ;;  %v3377_v54 = vpop.f32.mrb[8].mxu0  ;;  %v1023_v53 = vld [vmem:[#allocation16 + $0x48] sm:$0xff] }
 0x3da   :  { %4611 = vtanh.f32 %v671_v51  ;;  %v681_v55 = vadd.f32 %v3377_v54, %v2912_v45  ;;  %v675_v60 = vpop.f32.mrb[9].mxu0  ;;  %v1020_v51 = vld [vmem:[#allocation16 + $0x30] sm:$0xff] }
 0x3db   :  { %v676_v61 = vadd.f32 %v2912_v45, %v675_v60  ;;  %v1014_v45 = vld [vmem:[#allocation16] sm:$0xff]  ;;  %v4058_v54 = vpack.c.bf16 %v1023_v53, %v1020_v51  ;;  %v1019_v53 = vld [vmem:[#allocation16 + $0x28] sm:$0xff] }
 0x3dc   :  { %v4054_v48 = vpack.c.bf16 %v1017_v47, %v1014_v45  ;;  %v1030_v60 = vld [vmem:[#allocation16 + $0x80] sm:$0xff] }
 0x3dd   :  { %4613 = vtanh.f32 %v676_v61  ;;  %v1026_v61 = vld [vmem:[#allocation16 + $0x60] sm:$0xff] }
 0x3de   :  { %4615 = vtanh.f32 %v681_v55  ;;  %v1027_v55 = vld [vmem:[#allocation16 + $0x68] sm:$0xff] }
 0x3df   :  { %v4606_v62 = vpop.eup %4605 }
 0x3e0   :  { %v4608_v63 = vpop.eup %4607  ;;  %3410 = vmatprep.mubr.f32.mxu0 %v4606_v62  ;;  %v4060_v62 = vpack.c.bf16 %v1030_v60, %v1027_v55 }
 0x3e1   :  { %3411 = vmatmul.mubr.f32.vlgmr.msra.gmra.mrb[10].mxu0 %v4608_v63  ;;  %v1029_v63 = vld [vmem:[#allocation16 + $0x78] sm:$0xff] }
 0x3e3   :  { %v4610_v0 = vpop.eup %4609 }
 0x3e4   :  { %v4612_v1 = vpop.eup %4611  ;;  %3413 = vmatprep.mubr.f32.mxu0 %v4610_v0  ;;  %v4062_v0 = vpack.c.bf16 %v1029_v63, %v1026_v61  ;;  %v1022_v61 = vld [vmem:[#allocation16 + $0x40] sm:$0xff]  ;;  %v282_v63 = vld [vmem:[#allocation2 + $0x8] sm:$0xff] }
 0x3e5   :  { %3414 = vmatmul.mubr.f32.gmra.mrb[12].mxu0 %v4612_v1  ;;  %v1033_v1 = vld [vmem:[#allocation16 + $0x98] sm:$0xff] }
 0x3e7   :  { %v4614_v2 = vpop.eup %4613 }
 0x3e8   :  { %v4616_v3 = vpop.eup %4615  ;;  %3416 = vmatprep.mubr.f32.mxu0 %v4614_v2  ;;  %v1036_v2 = vld [vmem:[#allocation16 + $0xb0] sm:$0xff] }
 0x3e9   :  { %3417 = vmatmul.mubr.f32.gmra.mrb[14].mxu0 %v4616_v3  ;;  %v1032_v3 = vld [vmem:[#allocation16 + $0x90] sm:$0xff]  ;;  %v4064_v5 = vpack.c.bf16 %v1036_v2, %v1033_v1  ;;  %v1031_v2 = vld [vmem:[#allocation16 + $0x88] sm:$0xff] }
 0x3ea   :  { %3472 = vmatprep.mubr.msk.f32.mxu0 %vm932_vm3, %v281_v42  ;;  %v4066_v7 = vpack.c.bf16 %v1035_v6, %v1032_v3  ;;  %v1028_v1 = vld [vmem:[#allocation16 + $0x70] sm:$0xff]  ;;  %v1037_v6 = vld [vmem:[#allocation16 + $0xb8] sm:$0xff] }
 0x3eb   :  { %v4092_v3 = vpack.c.bf16 %v1031_v2, %v1028_v1  ;;  %v1249_v1 = vld [vmem:[#allocation17 + $0x90] sm:$0xff]  ;;  %v1252_v2 = vld [vmem:[#allocation17 + $0xa8] sm:$0xff] }
 0x3ec   :  { %v4130_v12 = vpack.c.bf16 %v1252_v2, %v1249_v1  ;;  %v1495_v1 = vld [vmem:[#allocation8 + $0xa0] sm:$0xff]  ;;  %v1496_v2 = vld [vmem:[#allocation8 + $0xa8] sm:$0xff] }
 0x4b4   :  { %v3412_v24 = vpop.f32.mrb[10].mxu0 }
 0x4b5   :  { %v785_v25 = vadd.f32 %v3412_v24, %v2919_v23  ;;  %v779_v26 = vpop.f32.mrb[11].mxu0  ;;  %v1047_v24 = vld [vmem:[#allocation16 + $0x108] sm:$0xff] }
 0x4b6   :  { %v780_v27 = vadd.f32 %v2919_v23, %v779_v26  ;;  %v1051_v26 = vld [vmem:[#allocation16 + $0x128] sm:$0xff] }
 0x4b8   :  { %4617 = vtanh.f32 %v780_v27  ;;  %v3415_v28 = vpop.f32.mrb[12].mxu0  ;;  %v1054_v27 = vld [vmem:[#allocation16 + $0x140] sm:$0xff] }
 0x4b9   :  { %4619 = vtanh.f32 %v785_v25  ;;  %v795_v29 = vadd.f32 %v3415_v28, %v2919_v23  ;;  %v789_v30 = vpop.f32.mrb[13].mxu0  ;;  %v4074_v25 = vpack.c.bf16 %v1047_v24, %v1044_v22  ;;  %v1050_v28 = vld [vmem:[#allocation16 + $0x120] sm:$0xff]  ;;  %v1061_v24 = vld [vmem:[#allocation16 + $0x178] sm:$0xff] }
 0x4ba   :  { %v790_v31 = vadd.f32 %v2919_v23, %v789_v30  ;;  %v1053_v30 = vld [vmem:[#allocation16 + $0x138] sm:$0xff] }
 0x4bc   :  { %4621 = vtanh.f32 %v790_v31  ;;  %v3418_v32 = vpop.f32.mrb[14].mxu0  ;;  %v4078_v31 = vpack.c.bf16 %v1053_v30, %v1050_v28  ;;  %v1236_v30 = vld [vmem:[#allocation17 + $0x28] sm:$0xff] }
 0x4bd   :  { %4623 = vtanh.f32 %v795_v29  ;;  %v805_v33 = vadd.f32 %v3418_v32, %v2919_v23  ;;  %v799_v34 = vpop.f32.mrb[15].mxu0  ;;  %v4076_v29 = vpack.c.bf16 %v1054_v27, %v1051_v26  ;;  %v1057_v32 = vld [vmem:[#allocation16 + $0x158] sm:$0xff]  ;;  %v1232_v26 = vld [vmem:[#allocation17 + $0x8] sm:$0xff]  ;;  %v1235_v27 = vld [vmem:[#allocation17 + $0x20] sm:$0xff] }
 0x4be   :  { %v800_v35 = vadd.f32 %v2919_v23, %v799_v34  ;;  %v4072_v23 = vpack.c.bf16 %v1048_v21, %v1045_v20  ;;  %v1056_v34 = vld [vmem:[#allocation16 + $0x150] sm:$0xff]  ;;  %v1055_v21 = vld [vmem:[#allocation16 + $0x148] sm:$0xff]  ;;  %v4116_v28 = vpack.c.bf16 %v1235_v27, %v1232_v26 }
 0x4bf   :  { %v1052_v20 = vld [vmem:[#allocation16 + $0x130] sm:$0xff]  ;;  %v1264_v27 = vld [vmem:[#allocation17 + $0x108] sm:$0xff] }
 0x4c0   :  { %4625 = vtanh.f32 %v800_v35  ;;  %v4108_v22 = vpack.c.bf16 %v1055_v21, %v1052_v20  ;;  %v1262_v20 = vld [vmem:[#allocation17 + $0xf8] sm:$0xff]  ;;  %v1265_v21 = vld [vmem:[#allocation17 + $0x110] sm:$0xff] }
 0x4c1   :  { %4627 = vtanh.f32 %v805_v33  ;;  %v1060_v33 = vld [vmem:[#allocation16 + $0x170] sm:$0xff] }
 0x4c2   :  { %v4618_v36 = vpop.eup %4617  ;;  %v4080_v35 = vpack.c.bf16 %v1060_v33, %v1057_v32  ;;  %v1231_v33 = vld [vmem:[#allocation17] sm:$0xff]  ;;  %v1261_v26 = vld [vmem:[#allocation17 + $0xf0] sm:$0xff] }
 0x4c3   :  { %v4620_v37 = vpop.eup %4619  ;;  %3451 = vmatprep.mubr.f32.mxu1 %v4618_v36  ;;  %v1059_v36 = vld [vmem:[#allocation16 + $0x168] sm:$0xff] }
 0x4c4   :  { %3452 = vmatmul.mubr.f32.vlgmr.msra.gmra.mrb[2].mxu1 %v4620_v37  ;;  %v4082_v37 = vpack.c.bf16 %v1059_v36, %v1056_v34  ;;  %v1234_v34 = vld [vmem:[#allocation17 + $0x18] sm:$0xff]  ;;  %v1241_v36 = vld [vmem:[#allocation17 + $0x50] sm:$0xff] }
 0x4c5   :  { %4055 = vmatpush1.bf16.msra.mxu1 %v4054_v48 }
 0x4c6   :  { %v4622_v38 = vpop.eup %4621  ;;  %4057 = vmatprep.subr.bf16.mxu1 %v4056_v52  ;;  %v1016_v52 = vld [vmem:[#allocation16 + $0x10] sm:$0xff] }
 0x4c7   :  { %v4624_v39 = vpop.eup %4623  ;;  %3454 = vmatprep.mubr.f32.mxu1 %v4622_v38  ;;  %v2920_v38 = vld [vmem:[#allocation14] ss:$0 sm:$0xff]  ;;  %v4084_v60 = vpack.c.bf16 %v1019_v53, %v1016_v52  ;;  %v1243_v52 = vld [vmem:[#allocation17 + $0x60] sm:$0xff] }
 0x4c8   :  { %3455 = vmatmul.mubr.f32.gmra.mrb[4].mxu1 %v4624_v39  ;;  %v1246_v53 = vld [vmem:[#allocation17 + $0x78] sm:$0xff] }
 0x4c9   :  { %4059 = vmatpush1.bf16.msra.mxu1 %v4058_v54 }
 0x4ca   :  { %v4626_v40 = vpop.eup %4625  ;;  %4061 = vmatprep.subr.bf16.mxu1 %v4060_v62  ;;  %v1025_v62 = vld [vmem:[#allocation16 + $0x58] sm:$0xff] }
 0x4cb   :  { %v4628_v41 = vpop.eup %4627  ;;  %3457 = vmatprep.mubr.f32.mxu1 %v4626_v40 }
 0x4cc   :  { %3458 = vmatmul.mubr.f32.gmra.mrb[6].mxu1 %v4628_v41 }
 0x4cd   :  { %4063 = vmatpush1.bf16.msra.mxu1 %v4062_v0  ;;  %v4088_v0 = vpack.c.bf16 %v1025_v62, %v1022_v61  ;;  %v1251_v61 = vld [vmem:[#allocation17 + $0xa0] sm:$0xff]  ;;  %v1254_v62 = vld [vmem:[#allocation17 + $0xb8] sm:$0xff] }
 0x4ce   :  { %4065 = vmatprep.subr.bf16.mxu1 %v4064_v5  ;;  %v1034_v5 = vld [vmem:[#allocation16 + $0xa0] sm:$0xff] }
 0x4d1   :  { %4067 = vmatpush1.bf16.msra.mxu1 %v4066_v7  ;;  %v4096_v7 = vpack.c.bf16 %v1037_v6, %v1034_v5  ;;  %v1256_v5 = vld [vmem:[#allocation17 + $0xc8] sm:$0xff]  ;;  %v1259_v6 = vld [vmem:[#allocation17 + $0xe0] sm:$0xff] }
 0x4d2   :  { %4069 = vmatprep.subr.bf16.mxu1 %v4068_v16  ;;  %v1046_v16 = vld [vmem:[#allocation16 + $0x100] sm:$0xff] }
 0x4d5   :  { %4071 = vmatpush1.bf16.msra.mxu1 %v4070_v18  ;;  %v4104_v18 = vpack.c.bf16 %v1049_v17, %v1046_v16  ;;  %v1255_v16 = vld [vmem:[#allocation17 + $0xc0] sm:$0xff]  ;;  %v1258_v17 = vld [vmem:[#allocation17 + $0xd8] sm:$0xff] }
 0x4d6   :  { %4073 = vmatprep.subr.bf16.mxu1 %v4072_v23  ;;  %v1058_v23 = vld [vmem:[#allocation16 + $0x160] sm:$0xff] }
 0x4d9   :  { %4075 = vmatpush1.bf16.msra.mxu1 %v4074_v25  ;;  %v4112_v25 = vpack.c.bf16 %v1061_v24, %v1058_v23  ;;  %v1266_v23 = vld [vmem:[#allocation17 + $0x118] sm:$0xff]  ;;  %v4134_v24 = vpack.c.bf16 %v1258_v17, %v1255_v16 }
 0x4da   :  { %4077 = vmatprep.subr.bf16.mxu1 %v4076_v29  ;;  %v1233_v29 = vld [vmem:[#allocation17 + $0x10] sm:$0xff] }
 0x4db   :  { %v4148_v32 = vpack.c.bf16 %v1236_v30, %v1233_v29  ;;  %v1268_v29 = vld [vmem:[#allocation17 + $0x128] sm:$0xff]  ;;  %v1271_v30 = vld [vmem:[#allocation17 + $0x140] sm:$0xff]  ;;  %v1590_v17 = vld [vmem:[#allocation10 + $0xb8] sm:$0xff] }
 0x4dd   :  { %4079 = vmatpush1.bf16.msra.mxu1 %v4078_v31  ;;  %v5096_v31 = vmov 0.0  }
 0x4de   :  { %4081 = vmatprep.subr.bf16.mxu1 %v4080_v35  ;;  %1143 = vmatprep.mubr.f32.mxu1 %v5096_v31  ;;  %v1238_v35 = vld [vmem:[#allocation17 + $0x38] sm:$0xff] }
 0x4e1   :  { %4083 = vmatpush1.bf16.msra.mxu1 %v4082_v37  ;;  %v4118_v37 = vpack.c.bf16 %v1234_v34, %v1231_v33  ;;  %v1272_v33 = vld [vmem:[#allocation17 + $0x148] sm:$0xff]  ;;  %v4138_v34 = vpack.c.bf16 %v1264_v27, %v1261_v26  ;;  %v1502_v27 = vld [vmem:[#allocation8 + $0xd8] sm:$0xff] }
 0x4e2   :  { %4117 = vmatprep.subr.bf16.mxu1 %v4116_v28  ;;  %v1501_v26 = vld [vmem:[#allocation8 + $0xd0] sm:$0xff] }
 0x597   :  { %v3453_v39 = vpop.f32.mrb[2].mxu1 }
 0x598   :  { %v909_v40 = vadd.f32 %v3453_v39, %v2920_v38  ;;  %v903_v41 = vpop.f32.mrb[3].mxu1  ;;  %v1242_v39 = vld [vmem:[#allocation17 + $0x58] sm:$0xff] }
 0x599   :  { %v904_v42 = vadd.f32 %v2920_v38, %v903_v41  ;;  %v1237_v41 = vld [vmem:[#allocation17 + $0x30] sm:$0xff] }
 0x59b   :  { %v4040_v43 = vpack.c.bf16 %v909_v40, %v904_v42  ;;  %v3456_v44 = vpop.f32.mrb[4].mxu1  ;;  %v1240_v42 = vld [vmem:[#allocation17 + $0x48] sm:$0xff] }
 0x59c   :  { %v919_v45 = vadd.f32 %v3456_v44, %v2920_v38  ;;  %v913_v46 = vpop.f32.mrb[5].mxu1  ;;  %v4120_v44 = vpack.c.bf16 %v1241_v36, %v1238_v35  ;;  %v4140_v35 = vpack.c.bf16 %v1271_v30, %v1268_v29  ;;  %v1267_v36 = vld [vmem:[#allocation17 + $0x120] sm:$0xff]  ;;  %v4200_v29 = vpack.c.bf16 %v1502_v27, %v1501_v26  ;;  %v1594_v30 = vld [vmem:[#allocation10 + $0xd8] sm:$0xff] }
 0x59d   :  { %v914_v47 = vadd.f32 %v2920_v38, %v913_v46  ;;  %4041 = vmatprep.subr.bf16.mxu0 %v4040_v43  ;;  %v1247_v46 = vld [vmem:[#allocation17 + $0x80] sm:$0xff] }
 0x59e   :  { %4043 = vmatpush3.bf16.msra.mxu0 %v4040_v43 }
 0x59f   :  { %v4044_v48 = vpack.c.bf16 %v919_v45, %v914_v47  ;;  %v3459_v49 = vpop.f32.mrb[6].mxu1  ;;  %v1244_v45 = vld [vmem:[#allocation17 + $0x68] sm:$0xff] }
 0x5a0   :  { %v929_v50 = vadd.f32 %v3459_v49, %v2920_v38  ;;  %v923_v51 = vpop.f32.mrb[7].mxu1  ;;  %v1248_v49 = vld [vmem:[#allocation17 + $0x88] sm:$0xff] }
 0x5a1   :  { %v924_v54 = vadd.f32 %v2920_v38, %v923_v51  ;;  %4045 = vmatprep.subr.bf16.mxu0 %v4044_v48  ;;  %v1239_v38 = vld [vmem:[#allocation17 + $0x40] sm:$0xff]  ;;  %v4124_v51 = vpack.c.bf16 %v1247_v46, %v1244_v45  ;;  %v1273_v45 = vld [vmem:[#allocation17 + $0x150] sm:$0xff]  ;;  %v1276_v46 = vld [vmem:[#allocation17 + $0x168] sm:$0xff] }
 0x5a2   :  { %4047 = vmatpush3.bf16.msra.mxu0 %v4044_v48  ;;  %v4152_v47 = vpack.c.bf16 %v1242_v39, %v1239_v38  ;;  %v1245_v48 = vld [vmem:[#allocation17 + $0x70] sm:$0xff]  ;;  %v1274_v39 = vld [vmem:[#allocation17 + $0x158] sm:$0xff] }
 0x5a3   :  { %v4048_v55 = vpack.c.bf16 %v929_v50, %v924_v54  ;;  %v4122_v50 = vpack.c.bf16 %v1240_v42, %v1237_v41  ;;  %v4156_v54 = vpack.c.bf16 %v1248_v49, %v1245_v48  ;;  %v1275_v41 = vld [vmem:[#allocation17 + $0x160] sm:$0xff]  ;;  %v1278_v42 = vld [vmem:[#allocation17 + $0x178] sm:$0xff]  ;;  %v4146_v48 = vpack.c.bf16 %v1276_v46, %v1273_v45 }
 0x5a4   :  { %v1491_v49 = vld [vmem:[#allocation8 + $0x80] sm:$0xff] }
 0x5a5   :  { %4049 = vmatprep.subr.bf16.mxu0 %v4048_v55 }
 0x5a6   :  { %4051 = vmatpush3.bf16.msra.mxu0 %v4048_v55  ;;  %v1250_v55 = vld [vmem:[#allocation17 + $0x98] sm:$0xff] }
 0x5a7   :  { %4085 = vmatprep.subr.bf16.mxu0 %v4084_v60 }
 0x5a9   :  { %3473 = vmatmul.mubr.msk.f32.vlgmr.msra.gmra.mrb[16].mxu0 %vm932_vm3, %v282_v63  ;;  %v4126_v63 = vpack.c.bf16 %v1246_v53, %v1243_v52  ;;  %v1584_v53 = vld [vmem:[#allocation10 + $0x88] sm:$0xff] }
 0x5aa   :  { %4087 = vmatpush3.bf16.msra.mxu0 %v4084_v60  ;;  %v1253_v60 = vld [vmem:[#allocation17 + $0xb0] sm:$0xff] }
 0x5ab   :  { %4089 = vmatprep.subr.bf16.mxu0 %v4088_v0 }
 0x5ae   :  { %4091 = vmatpush3.bf16.msra.mxu0 %v4088_v0  ;;  %v4128_v0 = vpack.c.bf16 %v1253_v60, %v1250_v55  ;;  %v1493_v55 = vld [vmem:[#allocation8 + $0x90] sm:$0xff]  ;;  %v1494_v60 = vld [vmem:[#allocation8 + $0x98] sm:$0xff] }
 0x5af   :  { %4093 = vmatprep.subr.bf16.mxu0 %v4092_v3 }
 0x5b2   :  { %4095 = vmatpush3.bf16.msra.mxu0 %v4092_v3  ;;  %v4160_v3 = vpack.c.bf16 %v1254_v62, %v1251_v61  ;;  %v1585_v61 = vld [vmem:[#allocation10 + $0x90] sm:$0xff]  ;;  %v4184_v62 = vpack.c.bf16 %v1494_v60, %v1493_v55 }
 0x5b3   :  { %4097 = vmatprep.subr.bf16.mxu0 %v4096_v7 }
 0x5b6   :  { %4099 = vmatpush3.bf16.msra.mxu0 %v4096_v7  ;;  %v1257_v7 = vld [vmem:[#allocation17 + $0xd0] sm:$0xff] }
 0x5b7   :  { %4101 = vmatprep.subr.bf16.mxu0 %v4100_v13 }
 0x5ba   :  { %4103 = vmatpush3.bf16.msra.mxu0 %v4100_v13  ;;  %v4132_v13 = vpack.c.bf16 %v1259_v6, %v1256_v5  ;;  %v4188_v5 = vpack.c.bf16 %v1496_v2, %v1495_v1  ;;  %v1588_v6 = vld [vmem:[#allocation10 + $0xa8] sm:$0xff] }
 0x5bb   :  { %4105 = vmatprep.subr.bf16.mxu0 %v4104_v18 }
 0x5be   :  { %4107 = vmatpush3.bf16.msra.mxu0 %v4104_v18  ;;  %v4164_v18 = vpack.c.bf16 %v1260_v11, %v1257_v7  ;;  %v1497_v11 = vld [vmem:[#allocation8 + $0xb0] sm:$0xff] }
 0x5bf   :  { %4109 = vmatprep.subr.bf16.mxu0 %v4108_v22 }
 0x5c2   :  { %4111 = vmatpush3.bf16.msra.mxu0 %v4108_v22  ;;  %v1263_v22 = vld [vmem:[#allocation17 + $0x100] sm:$0xff] }
 0x5c3   :  { %4113 = vmatprep.subr.bf16.mxu0 %v4112_v25  ;;  %v4168_v28 = vpack.c.bf16 %v1266_v23, %v1263_v22  ;;  %v1591_v22 = vld [vmem:[#allocation10 + $0xc0] sm:$0xff] }
 0x5c6   :  { %4115 = vmatpush3.bf16.msra.mxu0 %v4112_v25  ;;  %v4136_v25 = vpack.c.bf16 %v1265_v21, %v1262_v20  ;;  %v1499_v20 = vld [vmem:[#allocation8 + $0xc0] sm:$0xff]  ;;  %v1500_v21 = vld [vmem:[#allocation8 + $0xc8] sm:$0xff] }
 0x5c7   :  { %4149 = vmatprep.subr.bf16.mxu0 %v4148_v32  ;;  %v4196_v23 = vpack.c.bf16 %v1500_v21, %v1499_v20 }
 0x67c   :  { %v3474_v40 = vpop.f32.mrb[16].mxu0 }
 0x67d   :  { %v1005_v43 = vpop.f32.mrb[17].mxu0 }
 0x67e   :  { %1144 = vmatmul.mubr.f32.vlgmr.msra.gmra.mrb[8].mxu1 %v1005_v43  ;;  %3507 = vmatprep.mubr.f32.mxu0 %v1005_v43 }
 0x67f   :  { %4119 = vmatpush1.bf16.msra.mxu1 %v4118_v37  ;;  %3508 = vmatmul.mubr.f32.vlgmr.msra.gmra.mrb[18].mxu0 %v3474_v40  ;;  %v1270_v37 = vld [vmem:[#allocation17 + $0x138] sm:$0xff] }
 0x680   :  { %4151 = vmatpush3.bf16.msra.mxu0 %v4148_v32  ;;  %3542 = vmatprep.mubr.f32.mxu0 %v5432_v56  ;;  %v1269_v32 = vld [vmem:[#allocation17 + $0x130] sm:$0xff]  ;;  %v4142_v43 = vpack.c.bf16 %v1270_v37, %v1267_v36  ;;  %v1595_v36 = vld [vmem:[#allocation10 + $0xe0] sm:$0xff]  ;;  %v1596_v37 = vld [vmem:[#allocation10 + $0xe8] sm:$0xff] }
 0x681   :  { %1149 = vmatprep.mubr.f32.mxu1 %v5096_v31  ;;  %4121 = vmatprep.subr.bf16.mxu1 %v4120_v44  ;;  %v4172_v38 = vpack.c.bf16 %v1272_v33, %v1269_v32  ;;  %v1503_v32 = vld [vmem:[#allocation8 + $0xe0] sm:$0xff]  ;;  %v1504_v33 = vld [vmem:[#allocation8 + $0xe8] sm:$0xff] }
 0x682   :  { %1150 = vmatmul.mubr.f32.gmra.mrb[10].mxu1 %v3474_v40  ;;  %4153 = vmatprep.subr.bf16.mxu0 %v4152_v47  ;;  %v1277_v40 = vld [vmem:[#allocation17 + $0x170] sm:$0xff] }
 0x683   :  { %4123 = vmatpush1.bf16.msra.mxu1 %v4122_v50  ;;  %1360 = vmatprep.mubr.f32.mxu1 %v5096_v31  ;;  %v4144_v44 = vpack.c.bf16 %v1277_v40, %v1274_v39  ;;  %v1492_v50 = vld [vmem:[#allocation8 + $0x88] sm:$0xff]  ;;  %v4236_v39 = vpack.c.bf16 %v1596_v37, %v1595_v36  ;;  %v1506_v40 = vld [vmem:[#allocation8 + $0xf8] sm:$0xff] }
 0x684   :  { %4155 = vmatpush3.bf16.msra.mxu0 %v4152_v47  ;;  %4125 = vmatprep.subr.bf16.mxu1 %v4124_v51  ;;  %v4176_v47 = vpack.c.bf16 %v1278_v42, %v1275_v41  ;;  %v1583_v51 = vld [vmem:[#allocation10 + $0x80] sm:$0xff]  ;;  %v4180_v52 = vpack.c.bf16 %v1492_v50, %v1491_v49  ;;  %v1597_v42 = vld [vmem:[#allocation10 + $0xf0] sm:$0xff]  ;;  %v1279_v50 = vld [vmem:[#allocation20] sm:$0x7] }
 0x685   :  { %4157 = vmatprep.subr.bf16.mxu0 %v4156_v54 }
 0x687   :  { %4127 = vmatpush1.bf16.msra.mxu1 %v4126_v63  ;;  %v1586_v63 = vld [vmem:[#allocation10 + $0x98] sm:$0xff] }
 0x688   :  { %4159 = vmatpush3.bf16.msra.mxu0 %v4156_v54  ;;  %4129 = vmatprep.subr.bf16.mxu1 %v4128_v0  ;;  %v4212_v54 = vpack.c.bf16 %v1584_v53, %v1583_v51  ;;  %v4216_v0 = vpack.c.bf16 %v1586_v63, %v1585_v61  ;;  %v1062_v51 = vld [vmem:[#allocation19] sm:$0x7] }
 0x689   :  { %4161 = vmatprep.subr.bf16.mxu0 %v4160_v3 }
 0x68b   :  { %4131 = vmatpush1.bf16.msra.mxu1 %v4130_v12  ;;  %v1498_v12 = vld [vmem:[#allocation8 + $0xb8] sm:$0xff] }
 0x68c   :  { %4163 = vmatpush3.bf16.msra.mxu0 %v4160_v3  ;;  %4133 = vmatprep.subr.bf16.mxu1 %v4132_v13  ;;  %v1587_v3 = vld [vmem:[#allocation10 + $0xa0] sm:$0xff]  ;;  %v1589_v13 = vld [vmem:[#allocation10 + $0xb0] sm:$0xff]  ;;  %v4192_v16 = vpack.c.bf16 %v1498_v12, %v1497_v11 }
 0x68d   :  { %4165 = vmatprep.subr.bf16.mxu0 %v4164_v18  ;;  %v4220_v7 = vpack.c.bf16 %v1588_v6, %v1587_v3 }
 0x68f   :  { %4135 = vmatpush1.bf16.msra.mxu1 %v4134_v24  ;;  %v1592_v24 = vld [vmem:[#allocation10 + $0xc8] sm:$0xff] }
 0x690   :  { %4167 = vmatpush3.bf16.msra.mxu0 %v4164_v18  ;;  %4137 = vmatprep.subr.bf16.mxu1 %v4136_v25  ;;  %v4224_v18 = vpack.c.bf16 %v1590_v17, %v1589_v13  ;;  %v4228_v25 = vpack.c.bf16 %v1592_v24, %v1591_v22 }
 0x691   :  { %4169 = vmatprep.subr.bf16.mxu0 %v4168_v28 }
 0x693   :  { %4139 = vmatpush1.bf16.msra.mxu1 %v4138_v34 }
 0x694   :  { %4171 = vmatpush3.bf16.msra.mxu0 %v4168_v28  ;;  %4141 = vmatprep.subr.bf16.mxu1 %v4140_v35  ;;  %v1593_v28 = vld [vmem:[#allocation10 + $0xd0] sm:$0xff]  ;;  %v4204_v35 = vpack.c.bf16 %v1504_v33, %v1503_v32 }
 0x695   :  { %4173 = vmatprep.subr.bf16.mxu0 %v4172_v38  ;;  %v4232_v34 = vpack.c.bf16 %v1594_v30, %v1593_v28 }
 0x697   :  { %4143 = vmatpush1.bf16.msra.mxu1 %v4142_v43  ;;  %v1598_v43 = vld [vmem:[#allocation10 + $0xf8] sm:$0xff] }
 0x698   :  { %4175 = vmatpush3.bf16.msra.mxu0 %v4172_v38  ;;  %4145 = vmatprep.subr.bf16.mxu1 %v4144_v44  ;;  %v1505_v38 = vld [vmem:[#allocation8 + $0xf0] sm:$0xff]  ;;  %v4240_v44 = vpack.c.bf16 %v1598_v43, %v1597_v42 }
 0x699   :  { %4177 = vmatprep.subr.bf16.mxu0 %v4176_v47  ;;  %v4208_v41 = vpack.c.bf16 %v1506_v40, %v1505_v38 }
 0x69b   :  { %4147 = vmatpush1.bf16.msra.mxu1 %v4146_v48 }
 0x69c   :  { %4179 = vmatpush3.bf16.msra.mxu0 %v4176_v47  ;;  %4181 = vmatprep.subr.bf16.mxu1 %v4180_v52  ;;  %v1064_v47 = vlaneseq }
 0x69d   :  { %4213 = vmatprep.subr.bf16.mxu0 %v4212_v54 }
 0x69e   :  { %1361 = vmatmul.mubr.f32.vlgmr.msra.gmra.mrb[8].mxu1 %v5432_v56  ;;  %v1065_v48 = vshrl.u32 %v1064_v47, 7 }
 0x69f   :  { %3543 = vmatmul.mubr.f32.vlgmr.msra.gmra.mrb[20].mxu0 %v5434_v57  ;;  %1366 = vmatprep.mubr.f32.mxu1 %v5096_v31 }
 0x6a0   :  { %4183 = vmatpush3.bf16.msra.mxu1 %v4180_v52  ;;  %4215 = vmatpush3.bf16.msra.mxu0 %v4212_v54  ;;  %v5495_v49 = vsub.s32 0, %v1065_v48  ;;  %v5497_v52 = vsub.s32 1, %v1065_v48  ;;  %v5503_v24 = vsub.s32 2, %v1065_v48 }
 0x6a1   :  { %4185 = vmatprep.subr.bf16.mxu1 %v4184_v62  ;;  %4217 = vmatprep.subr.bf16.mxu0 %v4216_v0 }
 0x6a2   :  { %1367 = vmatmul.mubr.f32.gmra.mrb[10].mxu1 %v5434_v57  ;;  %v1067_v53 = vrot.slane %v1062_v51, %v5495_v49  ;;  %v1284_v54 = vrot.slane %v1279_v50, %v5495_v49  ;;  %v1071_v55 = vrot.slane %v1062_v51, %v5497_v52  ;;  %v1288_v60 = vrot.slane %v1279_v50, %v5497_v52 }
 0x6a3   :  { %v1292_v26 = vrot.slane %v1279_v50, %v5503_v24  ;;  %v1075_v28 = vrot.slane %v1062_v51, %v5503_v24 }
 0x6a4   :  { %4187 = vmatpush3.bf16.msra.mxu1 %v4184_v62  ;;  %4219 = vmatpush3.bf16.msra.mxu0 %v4216_v0  ;;  %v4552_v61 = vadd.f32 %v1284_v54, %v1067_v53  ;;  %v4554_v63 = vadd.f32 %v1288_v60, %v1071_v55  ;;  %v1785_v60 = vld [vmem:[#allocation11 + $0x88] sm:$0xff] }
 0x6a5   :  { %4189 = vmatprep.subr.bf16.mxu1 %v4188_v5  ;;  %4221 = vmatprep.subr.bf16.mxu0 %v4220_v7 }
 0x6a8   :  { %4191 = vmatpush3.bf16.msra.mxu1 %v4188_v5  ;;  %4223 = vmatpush3.bf16.msra.mxu0 %v4220_v7 }
 0x6a9   :  { %4193 = vmatprep.subr.bf16.mxu1 %v4192_v16  ;;  %4225 = vmatprep.subr.bf16.mxu0 %v4224_v18 }
 0x6ac   :  { %4195 = vmatpush3.bf16.msra.mxu1 %v4192_v16  ;;  %4227 = vmatpush3.bf16.msra.mxu0 %v4224_v18 }
 0x6ad   :  { %4197 = vmatprep.subr.bf16.mxu1 %v4196_v23  ;;  %4229 = vmatprep.subr.bf16.mxu0 %v4228_v25 }
 0x6b0   :  { %4199 = vmatpush3.bf16.msra.mxu1 %v4196_v23  ;;  %4231 = vmatpush3.bf16.msra.mxu0 %v4228_v25 }
 0x6b1   :  { %4201 = vmatprep.subr.bf16.mxu1 %v4200_v29  ;;  %4233 = vmatprep.subr.bf16.mxu0 %v4232_v34 }
 0x6b4   :  { %4203 = vmatpush3.bf16.msra.mxu1 %v4200_v29  ;;  %4235 = vmatpush3.bf16.msra.mxu0 %v4232_v34 }
 0x6b5   :  { %4205 = vmatprep.subr.bf16.mxu1 %v4204_v35  ;;  %4237 = vmatprep.subr.bf16.mxu0 %v4236_v39 }
 0x6b8   :  { %4207 = vmatpush3.bf16.msra.mxu1 %v4204_v35  ;;  %4239 = vmatpush3.bf16.msra.mxu0 %v4236_v39 }
 0x6b9   :  { %4209 = vmatprep.subr.bf16.mxu1 %v4208_v41  ;;  %4241 = vmatprep.subr.bf16.mxu0 %v4240_v44 }
 0x6bc   :  { %4211 = vmatpush3.bf16.msra.mxu1 %v4208_v41  ;;  %4243 = vmatpush3.bf16.msra.mxu0 %v4240_v44 }
 0x752   :  { %v3509_v45 = vpop.f32.mrb[18].mxu0 }
 0x753   :  { %v1222_v46 = vpop.f32.mrb[19].mxu0  ;;  %v1228_v39 = vadd.f32 %v3509_v45, %v1075_v28 }
 0x754   :  { %v1223_v34 = vadd.f32 %v1222_v46, %v1075_v28 }
 0x771   :  { %v1362_v62 = vpop.f32.mrb[8].mxu1 }
 0x772   :  { %v4553_v0 = vadd.f32 %v4552_v61, %v1362_v62  ;;  %v1364_v1 = vpop.f32.mrb[9].mxu1  ;;  %v3544_v2 = vpop.f32.mrb[20].mxu0 }
 0x773   :  { %v1439_v3 = vpop.f32.mrb[21].mxu0  ;;  %v4555_v6 = vadd.f32 %v4554_v63, %v1364_v1  ;;  %v1445_v36 = vadd.f32 %v3544_v2, %v1292_v26  ;;  %v1788_v1 = vld [vmem:[#allocation11 + $0xa0] sm:$0xff]  ;;  %v1789_v2 = vld [vmem:[#allocation11 + $0xa8] sm:$0xff] }
 0x774   :  { %v2923_v5 = vmul.f32 -1.442695, %v4553_v0  ;;  %v1440_v30 = vadd.f32 %v1439_v3, %v1292_v26  ;;  %v1790_v3 = vld [vmem:[#allocation11 + $0xb0] sm:$0xff] }
 0x775   :  { %v1368_v7 = vpop.f32.mrb[10].mxu1  ;;  %v2925_v17 = vmul.f32 -1.442695, %v4555_v6 }
 0x776   :  { %4629 = vpow2.f32 %v2923_v5  ;;  %v4557_v11 = vadd.f32 %v4552_v61, %v1368_v7  ;;  %v1370_v12 = vpop.f32.mrb[11].mxu1  ;;  %v1786_v61 = vld [vmem:[#allocation11 + $0x90] sm:$0xff]  ;;  %v1791_v5 = vld [vmem:[#allocation11 + $0xb8] sm:$0xff] }
 0x777   :  { %v4559_v16 = vadd.f32 %v4554_v63, %v1370_v12  ;;  %v1787_v63 = vld [vmem:[#allocation11 + $0x98] sm:$0xff]  ;;  %v4264_v6 = vpack.c.bf16 %v1791_v5, %v1790_v3  ;;  %v1922_v5 = vld [vmem:[#allocation13 + $0xe0] sm:$0xff] }
 0x778   :  { %v2924_v13 = vmul.f32 -1.442695, %v4557_v11  ;;  %v4256_v0 = vpack.c.bf16 %v1787_v63, %v1786_v61  ;;  %v1918_v63 = vld [vmem:[#allocation13 + $0xc0] sm:$0xff] }
 0x779   :  { %v2926_v18 = vmul.f32 -1.442695, %v4559_v16 }
 0x77a   :  { %4631 = vpow2.f32 %v2924_v13 }
 0x77b   :  { %4633 = vpow2.f32 %v2925_v17  ;;  %v1792_v17 = vld [vmem:[#allocation11 + $0xc0] sm:$0xff] }
 0x77c   :  { %4635 = vpow2.f32 %v2926_v18  ;;  %v4268_v18 = vpack.c.bf16 %v1793_v58, %v1792_v17 }
 0x780   :  { %v4630_v20 = vpop.eup %4629 }
 0x781   :  { %v1456_v21 = vadd.f32 1.0, %v4630_v20  ;;  %v1795_v20 = vld [vmem:[#allocation11 + $0xd8] sm:$0xff] }
 0x783   :  { %4637 = vrcp.f32 %v1456_v21 }
 0x784   :  { %v4632_v22 = vpop.eup %4631 }
 0x785   :  { %v1457_v23 = vadd.f32 1.0, %v4632_v22  ;;  %v4634_v25 = vpop.eup %4633  ;;  %v1799_v22 = vld [vmem:[#allocation11 + $0xf8] sm:$0xff] }
 0x786   :  { %v4636_v27 = vpop.eup %4635  ;;  %v1470_v29 = vadd.f32 1.0, %v4634_v25  ;;  %v1912_v25 = vld [vmem:[#allocation13 + $0x90] sm:$0xff] }
 0x787   :  { %4639 = vrcp.f32 %v1457_v23  ;;  %v1471_v33 = vadd.f32 1.0, %v4636_v27  ;;  %v1911_v23 = vld [vmem:[#allocation13 + $0x88] sm:$0xff]  ;;  %v1913_v27 = vld [vmem:[#allocation13 + $0x98] sm:$0xff] }
 0x788   :  { %4641 = vrcp.f32 %v1470_v29  ;;  %v4288_v28 = vpack.c.bf16 %v1913_v27, %v1912_v25  ;;  %v1914_v29 = vld [vmem:[#allocation13 + $0xa0] sm:$0xff] }
 0x789   :  { %4643 = vrcp.f32 %v1471_v33  ;;  %v1916_v33 = vld [vmem:[#allocation13 + $0xb0] sm:$0xff] }
 0x78d   :  { %v4638_v32 = vpop.eup %4637 }
 0x78e   :  { %v1476_v35 = vmul.f32 %v4638_v32, %v1440_v30  ;;  %v1915_v30 = vld [vmem:[#allocation13 + $0xa8] sm:$0xff] }
 0x78f   :  { %v4292_v32 = vpack.c.bf16 %v1915_v30, %v1914_v29  ;;  %v2109_v29 = vld [vmem:[#allocation16 + $0x1a0] sm:$0xff] }
 0x790   :  { %v1478_v37 = vadd.f32 %v1476_v35, %v1223_v34  ;;  %v1917_v34 = vld [vmem:[#allocation13 + $0xb8] sm:$0xff]  ;;  %v2105_v30 = vld [vmem:[#allocation16 + $0x180] sm:$0xff] }
 0x791   :  { %v4640_v38 = vpop.eup %4639  ;;  %v4296_v35 = vpack.c.bf16 %v1917_v34, %v1916_v33  ;;  %v2108_v33 = vld [vmem:[#allocation16 + $0x198] sm:$0xff] }
 0x792   :  { %4645 = vtanh.f32 %v1478_v37  ;;  %v1477_v40 = vmul.f32 %v4640_v38, %v1445_v36  ;;  %v4642_v42 = vpop.eup %4641  ;;  %v2928_v36 = vld [vmem:[%s5635_s7 + $0x1] ss:$0 sm:$0xff]  ;;  %v4330_v34 = vpack.c.bf16 %v2108_v33, %v2105_v30  ;;  %v2107_v33 = vld [vmem:[#allocation16 + $0x190] sm:$0xff] }
 0x793   :  { %v4644_v43 = vpop.eup %4643  ;;  %v1482_v44 = vsub.f32 1.0, %v4642_v42  ;;  %v1486_v50 = vmul.f32 %v4642_v42, %v5432_v56  ;;  %v1784_v56 = vld [vmem:[#allocation11 + $0x80] sm:$0xff] }
 0x794   :  { %v1479_v41 = vadd.f32 %v1477_v40, %v1228_v39  ;;  %v1483_v51 = vsub.f32 1.0, %v4644_v43  ;;  %v1487_v54 = vmul.f32 %v4644_v43, %v5434_v57  ;;  %v4252_v62 = vpack.c.bf16 %v1785_v60, %v1784_v56 }
 0x795   :  { %v4260_v57 = vpack.c.bf16 %v1789_v2, %v1788_v1  ;;  %v1920_v2 = vld [vmem:[#allocation13 + $0xd0] sm:$0xff] }
 0x796   :  { %4647 = vtanh.f32 %v1479_v41  ;;  %4253 = vmatprep.subr.bf16.mxu0 %v4252_v62 }
 0x79c   :  { %v4646_v47 = vpop.eup %4645 }
 0x79d   :  { %v1484_v48 = vmul.f32 %v4646_v47, %v1482_v44 }
 0x79f   :  { %v5508_v46 = vadd.f32 %v1486_v50, %v1484_v48 }
 0x7a0   :  { %v4648_v53 = vpop.eup %4647 }
 0x7a1   :  { %3577 = vmatprep.mubr.f32.mxu1 %v5508_v46  ;;  %3612 = vmatprep.mubr.f32.mxu0 %v5508_v46  ;;  %v1485_v45 = vmul.f32 %v4648_v53, %v1483_v51 }
 0x7a3   :  { %v5513_v55 = vadd.f32 %v1487_v54, %v1485_v45 }
 0x7a5   :  { %3578 = vmatmul.mubr.f32.vlgmr.msra.gmra.mrb[12].mxu1 %v5513_v55  ;;  %3613 = vmatmul.mubr.f32.vlgmr.msra.gmra.mrb[22].mxu0 %v5513_v55 }
 0x7a6   :  { %3623 = vmatprep.mubr.msk.f32.mxu1 %vm570_vm2, %v2949_v59  ;;  %4255 = vmatpush3.bf16.msra.mxu0 %v4252_v62  ;;  %v4701_v62 = vld [vmem:[#allocation2] sm:$0xff] }
 0x7a7   :  { %4257 = vmatprep.subr.bf16.mxu0 %v4256_v0 }
 0x7aa   :  { %4259 = vmatpush3.bf16.msra.mxu0 %v4256_v0  ;;  %v1919_v0 = vld [vmem:[#allocation13 + $0xc8] sm:$0xff] }
 0x7ab   :  { %4261 = vmatprep.subr.bf16.mxu0 %v4260_v57  ;;  %v4300_v1 = vpack.c.bf16 %v1919_v0, %v1918_v63  ;;  %v2132_v0 = vld [vmem:[#allocation16 + $0x258] sm:$0xff] }
 0x7ae   :  { %4263 = vmatpush3.bf16.msra.mxu0 %v4260_v57  ;;  %v1921_v57 = vld [vmem:[#allocation13 + $0xd8] sm:$0xff] }
 0x7af   :  { %4265 = vmatprep.subr.bf16.mxu0 %v4264_v6  ;;  %v4304_v3 = vpack.c.bf16 %v1921_v57, %v1920_v2  ;;  %v2136_v2 = vld [vmem:[#allocation16 + $0x278] sm:$0xff]  ;;  %v2139_v57 = vld [vmem:[#allocation16 + $0x290] sm:$0xff] }
 0x7b2   :  { %4267 = vmatpush3.bf16.msra.mxu0 %v4264_v6  ;;  %v1923_v6 = vld [vmem:[#allocation13 + $0xe8] sm:$0xff] }
 0x7b3   :  { %4269 = vmatprep.subr.bf16.mxu0 %v4268_v18 }
 0x7b6   :  { %4271 = vmatpush3.bf16.msra.mxu0 %v4268_v18 }
 0x878   :  { %v3579_v59 = vpop.f32.mrb[12].mxu1  ;;  %v3614_v7 = vpop.f32.mrb[22].mxu0 }
 0x879   :  { %v1573_v11 = vpop.f32.mrb[13].mxu1  ;;  %v1665_v12 = vpop.f32.mrb[23].mxu0 }
 0x87a   :  { %v4244_v13 = vpack.c.bf16 %v3579_v59, %v1573_v11  ;;  %v4248_v16 = vpack.c.bf16 %v3614_v7, %v1665_v12  ;;  %v4308_v59 = vpack.c.bf16 %v1923_v6, %v1922_v5  ;;  %v1924_v7 = vld [vmem:[#allocation13 + $0xf0] sm:$0xff]  ;;  %v1925_v11 = vld [vmem:[#allocation13 + $0xf8] sm:$0xff]  ;;  %v4348_v5 = vpack.c.bf16 %v2139_v57, %v2136_v2 }
 0x87b   :  { %v4312_v12 = vpack.c.bf16 %v1925_v11, %v1924_v7  ;;  %v2138_v6 = vld [vmem:[#allocation16 + $0x288] sm:$0xff]  ;;  %v2145_v11 = vld [vmem:[#allocation16 + $0x2c0] sm:$0xff] }
 0x87c   :  { %4245 = vmatprep.subr.bf16.mxu1 %v4244_v13  ;;  %v2142_v7 = vld [vmem:[#allocation16 + $0x2a8] sm:$0xff] }
 0x87d   :  { %4247 = vmatpush3.bf16.msra.mxu1 %v4244_v13  ;;  %v2936_v13 = vld [vmem:[%s5637_s9 + $0x1] ss:$0 sm:$0xff]  ;;  %v2325_v57 = vld [vmem:[#allocation17 + $0x188] sm:$0xff] }
 0x87e   :  { %4249 = vmatprep.subr.bf16.mxu1 %v4248_v16 }
 0x881   :  { %4251 = vmatpush3.bf16.msra.mxu1 %v4248_v16 }
 0x884   :  { %3624 = vmatmul.mubr.msk.f32.vlgmr.msra.gmra.mrb[14].mxu1 %vm570_vm2, %v2950_v8  ;;  %v1794_v8 = vld [vmem:[#allocation11 + $0xd0] sm:$0xff] }
 0x885   :  { %3626 = vmatprep.mubr.msk.f32.mxu1 %vm570_vm2, %v2953_v9  ;;  %v4272_v9 = vpack.c.bf16 %v1795_v20, %v1794_v8 }
 0x887   :  { %4273 = vmatprep.subr.bf16.mxu0 %v4272_v9 }
 0x888   :  { %3627 = vmatmul.mubr.msk.f32.gmra.mrb[16].mxu1 %vm570_vm2, %v2954_v14  ;;  %4275 = vmatpush3.bf16.msra.mxu0 %v4272_v9  ;;  %v1797_v14 = vld [vmem:[#allocation11 + $0xe8] sm:$0xff] }
 0x889   :  { %3629 = vmatprep.mubr.msk.f32.mxu1 %vm570_vm2, %v2957_v15  ;;  %v4276_v21 = vpack.c.bf16 %v1797_v14, %v1796_v4  ;;  %v1798_v15 = vld [vmem:[#allocation11 + $0xf0] sm:$0xff] }
 0x88a   :  { %v4280_v10 = vpack.c.bf16 %v1799_v22, %v1798_v15 }
 0x88b   :  { %4277 = vmatprep.subr.bf16.mxu0 %v4276_v21 }
 0x88c   :  { %3630 = vmatmul.mubr.msk.f32.gmra.mrb[18].mxu1 %vm570_vm2, %v2958_v19  ;;  %4279 = vmatpush3.bf16.msra.mxu0 %v4276_v21  ;;  %v1910_v19 = vld [vmem:[#allocation13 + $0x80] sm:$0xff] }
 0x88d   :  { %4281 = vmatprep.subr.bf16.mxu0 %v4280_v10  ;;  %v4284_v26 = vpack.c.bf16 %v1911_v23, %v1910_v19 }
 0x88f   :  { %4285 = vmatprep.subr.bf16.mxu1 %v4284_v26 }
 0x890   :  { %4283 = vmatpush3.bf16.msra.mxu0 %v4280_v10  ;;  %4287 = vmatpush3.bf16.msra.mxu1 %v4284_v26 }
 0x891   :  { %4289 = vmatprep.subr.bf16.mxu1 %v4288_v28 }
 0x894   :  { %4291 = vmatpush3.bf16.msra.mxu1 %v4288_v28  ;;  %v2106_v28 = vld [vmem:[#allocation16 + $0x188] sm:$0xff] }
 0x895   :  { %4293 = vmatprep.subr.bf16.mxu1 %v4292_v32 }
 0x898   :  { %4295 = vmatpush3.bf16.msra.mxu1 %v4292_v32  ;;  %v4328_v32 = vpack.c.bf16 %v2109_v29, %v2106_v28 }
 0x899   :  { %4297 = vmatprep.subr.bf16.mxu1 %v4296_v35 }
 0x89c   :  { %4299 = vmatpush3.bf16.msra.mxu1 %v4296_v35  ;;  %v2112_v35 = vld [vmem:[#allocation16 + $0x1b8] sm:$0xff] }
 0x89d   :  { %4301 = vmatprep.subr.bf16.mxu1 %v4300_v1 }
 0x8a0   :  { %4303 = vmatpush3.bf16.msra.mxu1 %v4300_v1 }
 0x8a1   :  { %4305 = vmatprep.subr.bf16.mxu1 %v4304_v3 }
 0x8a4   :  { %4307 = vmatpush3.bf16.msra.mxu1 %v4304_v3  ;;  %v2135_v3 = vld [vmem:[#allocation16 + $0x270] sm:$0xff] }
 0x8a5   :  { %4309 = vmatprep.subr.bf16.mxu1 %v4308_v59 }
 0x8a8   :  { %4311 = vmatpush3.bf16.msra.mxu1 %v4308_v59  ;;  %v4350_v59 = vpack.c.bf16 %v2138_v6, %v2135_v3  ;;  %v2328_v3 = vld [vmem:[#allocation17 + $0x1a0] sm:$0xff]  ;;  %v2326_v6 = vld [vmem:[#allocation17 + $0x190] sm:$0xff] }
 0x8a9   :  { %4313 = vmatprep.subr.bf16.mxu1 %v4312_v12 }
 0x8ac   :  { %4315 = vmatpush3.bf16.msra.mxu1 %v4312_v12  ;;  %v2141_v12 = vld [vmem:[#allocation16 + $0x2a0] sm:$0xff] }
 0x8ad   :  { %4329 = vmatprep.subr.bf16.mxu1 %v4328_v32 }
 0x957   :  { %v3625_v37 = vpop.f32.mrb[14].mxu1 }
 0x958   :  { %v1754_v38 = vadd.f32 %v3625_v37, %v2928_v36  ;;  %v1748_v39 = vpop.f32.mrb[15].mxu1  ;;  %v2111_v37 = vld [vmem:[#allocation16 + $0x1b0] sm:$0xff] }
 0x959   :  { %v1749_v40 = vadd.f32 %v2928_v36, %v1748_v39  ;;  %v2114_v39 = vld [vmem:[#allocation16 + $0x1c8] sm:$0xff] }
 0x95b   :  { %4649 = vtanh.f32 %v1749_v40  ;;  %v3628_v41 = vpop.f32.mrb[16].mxu1  ;;  %v4334_v40 = vpack.c.bf16 %v2114_v39, %v2111_v37  ;;  %v2116_v39 = vld [vmem:[#allocation16 + $0x1d8] sm:$0xff] }
 0x95c   :  { %4651 = vtanh.f32 %v1754_v38  ;;  %v1764_v42 = vadd.f32 %v3628_v41, %v2928_v36  ;;  %v1758_v43 = vpop.f32.mrb[17].mxu1  ;;  %v2118_v41 = vld [vmem:[#allocation16 + $0x1e8] sm:$0xff] }
 0x95d   :  { %v1759_v44 = vadd.f32 %v2928_v36, %v1758_v43  ;;  %v2117_v43 = vld [vmem:[#allocation16 + $0x1e0] sm:$0xff] }
 0x95f   :  { %4653 = vtanh.f32 %v1759_v44  ;;  %v3631_v47 = vpop.f32.mrb[18].mxu1 }
 0x960   :  { %4655 = vtanh.f32 %v1764_v42  ;;  %v1774_v48 = vadd.f32 %v3631_v47, %v2928_v36  ;;  %v1768_v50 = vpop.f32.mrb[19].mxu1  ;;  %v2121_v42 = vld [vmem:[#allocation16 + $0x200] sm:$0xff]  ;;  %v2120_v47 = vld [vmem:[#allocation16 + $0x1f8] sm:$0xff] }
 0x961   :  { %v1769_v51 = vadd.f32 %v2928_v36, %v1768_v50  ;;  %v2115_v36 = vld [vmem:[#allocation16 + $0x1d0] sm:$0xff]  ;;  %v4336_v44 = vpack.c.bf16 %v2121_v42, %v2118_v41  ;;  %v2124_v50 = vld [vmem:[#allocation16 + $0x218] sm:$0xff]  ;;  %v2122_v42 = vld [vmem:[#allocation16 + $0x208] sm:$0xff] }
 0x962   :  { %v4332_v38 = vpack.c.bf16 %v2115_v36, %v2112_v35  ;;  %v2119_v41 = vld [vmem:[#allocation16 + $0x1f0] sm:$0xff] }
 0x963   :  { %4657 = vtanh.f32 %v1769_v51  ;;  %v2127_v51 = vld [vmem:[#allocation16 + $0x230] sm:$0xff] }
 0x964   :  { %4659 = vtanh.f32 %v1774_v48  ;;  %v4338_v48 = vpack.c.bf16 %v2120_v47, %v2117_v43  ;;  %v4702_v43 = vld [vmem:[#allocation2 + $0x8] sm:$0xff]  ;;  %v2125_v47 = vld [vmem:[#allocation16 + $0x220] sm:$0xff] }
 0x965   :  { %v4650_v53 = vpop.eup %4649 }
 0x966   :  { %v4652_v45 = vpop.eup %4651  ;;  %3664 = vmatprep.mubr.f32.mxu0 %v4650_v53  ;;  %v2123_v53 = vld [vmem:[#allocation16 + $0x210] sm:$0xff] }
 0x967   :  { %3665 = vmatmul.mubr.f32.vlgmr.msra.gmra.mrb[24].mxu0 %v4652_v45  ;;  %v4340_v45 = vpack.c.bf16 %v2127_v51, %v2124_v50  ;;  %v2131_v51 = vld [vmem:[#allocation16 + $0x250] sm:$0xff] }
 0x969   :  { %v4654_v54 = vpop.eup %4653 }
 0x96a   :  { %v4656_v56 = vpop.eup %4655  ;;  %3667 = vmatprep.mubr.f32.mxu0 %v4654_v54  ;;  %v2126_v54 = vld [vmem:[#allocation16 + $0x228] sm:$0xff] }
 0x96b   :  { %3668 = vmatmul.mubr.f32.gmra.mrb[26].mxu0 %v4656_v56  ;;  %v4342_v56 = vpack.c.bf16 %v2126_v54, %v2123_v53  ;;  %v2134_v53 = vld [vmem:[#allocation16 + $0x268] sm:$0xff]  ;;  %v2137_v54 = vld [vmem:[#allocation16 + $0x280] sm:$0xff] }
 0x96d   :  { %v4658_v60 = vpop.eup %4657 }
 0x96e   :  { %v4660_v61 = vpop.eup %4659  ;;  %3670 = vmatprep.mubr.f32.mxu0 %v4658_v60  ;;  %v2130_v60 = vld [vmem:[#allocation16 + $0x248] sm:$0xff] }
 0x96f   :  { %3671 = vmatmul.mubr.f32.gmra.mrb[28].mxu0 %v4660_v61  ;;  %v2133_v61 = vld [vmem:[#allocation16 + $0x260] sm:$0xff] }
 0x970   :  { %3726 = vmatprep.mubr.msk.f32.mxu0 %vm932_vm3, %v4701_v62  ;;  %v2129_v62 = vld [vmem:[#allocation16 + $0x240] sm:$0xff]  ;;  %v4344_v63 = vpack.c.bf16 %v2133_v61, %v2130_v60  ;;  %v2143_v61 = vld [vmem:[#allocation16 + $0x2b0] sm:$0xff] }
 0x971   :  { %v4346_v1 = vpack.c.bf16 %v2132_v0, %v2129_v62  ;;  %v2146_v62 = vld [vmem:[#allocation16 + $0x2c8] sm:$0xff]  ;;  %v2149_v0 = vld [vmem:[#allocation16 + $0x2e0] sm:$0xff] }
 0xa3a   :  { %v3666_v16 = vpop.f32.mrb[24].mxu0 }
 0xa3b   :  { %v1880_v17 = vadd.f32 %v3666_v16, %v2936_v13  ;;  %v1874_v58 = vpop.f32.mrb[25].mxu0  ;;  %v2144_v16 = vld [vmem:[#allocation16 + $0x2b8] sm:$0xff] }
 0xa3c   :  { %v1875_v18 = vadd.f32 %v2936_v13, %v1874_v58  ;;  %v2148_v58 = vld [vmem:[#allocation16 + $0x2d8] sm:$0xff] }
 0xa3e   :  { %4661 = vtanh.f32 %v1875_v18  ;;  %v3669_v8 = vpop.f32.mrb[26].mxu0  ;;  %v2151_v18 = vld [vmem:[#allocation16 + $0x2f0] sm:$0xff] }
 0xa3f   :  { %4663 = vtanh.f32 %v1880_v17  ;;  %v1890_v20 = vadd.f32 %v3669_v8, %v2936_v13  ;;  %v1884_v9 = vpop.f32.mrb[27].mxu0  ;;  %v4354_v17 = vpack.c.bf16 %v2144_v16, %v2141_v12  ;;  %v2147_v8 = vld [vmem:[#allocation16 + $0x2d0] sm:$0xff]  ;;  %v2327_v12 = vld [vmem:[#allocation17 + $0x198] sm:$0xff] }
 0xa40   :  { %v1885_v4 = vadd.f32 %v2936_v13, %v1884_v9  ;;  %v2150_v9 = vld [vmem:[#allocation16 + $0x2e8] sm:$0xff]  ;;  %v2334_v16 = vld [vmem:[#allocation17 + $0x1d0] sm:$0xff] }
 0xa42   :  { %4665 = vtanh.f32 %v1885_v4  ;;  %v3672_v14 = vpop.f32.mrb[28].mxu0  ;;  %v4358_v4 = vpack.c.bf16 %v2150_v9, %v2147_v8  ;;  %v2333_v9 = vld [vmem:[#allocation17 + $0x1c8] sm:$0xff] }
 0xa43   :  { %4667 = vtanh.f32 %v1890_v20  ;;  %v1900_v21 = vadd.f32 %v3672_v14, %v2936_v13  ;;  %v1894_v15 = vpop.f32.mrb[29].mxu0  ;;  %v4356_v20 = vpack.c.bf16 %v2151_v18, %v2148_v58  ;;  %v2937_v14 = vld [vmem:[#allocation14 + $0x1] ss:$0 sm:$0xff]  ;;  %v2332_v58 = vld [vmem:[#allocation17 + $0x1c0] sm:$0xff] }
 0xa44   :  { %v1895_v22 = vadd.f32 %v2936_v13, %v1894_v15  ;;  %v4352_v13 = vpack.c.bf16 %v2145_v11, %v2142_v7  ;;  %v2324_v11 = vld [vmem:[#allocation17 + $0x180] sm:$0xff]  ;;  %v2335_v18 = vld [vmem:[#allocation17 + $0x1d8] sm:$0xff] }
 0xa46   :  { %4669 = vtanh.f32 %v1895_v22 }
 0xa47   :  { %4671 = vtanh.f32 %v1900_v21 }
 0xa48   :  { %v4662_v10 = vpop.eup %4661 }
 0xa49   :  { %v4664_v19 = vpop.eup %4663  ;;  %3705 = vmatprep.mubr.f32.mxu1 %v4662_v10 }
 0xa4a   :  { %3706 = vmatmul.mubr.f32.vlgmr.msra.gmra.mrb[20].mxu1 %v4664_v19 }
 0xa4b   :  { %4331 = vmatpush1.bf16.msra.mxu1 %v4330_v34  ;;  %v2110_v34 = vld [vmem:[#allocation16 + $0x1a8] sm:$0xff] }
 0xa4c   :  { %v4666_v23 = vpop.eup %4665  ;;  %4333 = vmatprep.subr.bf16.mxu1 %v4332_v38  ;;  %v4360_v37 = vpack.c.bf16 %v2110_v34, %v2107_v33  ;;  %v2113_v38 = vld [vmem:[#allocation16 + $0x1c0] sm:$0xff]  ;;  %v2347_v33 = vld [vmem:[#allocation17 + $0x238] sm:$0xff] }
 0xa4d   :  { %v4668_v25 = vpop.eup %4667  ;;  %3708 = vmatprep.mubr.f32.mxu1 %v4666_v23 }
 0xa4e   :  { %3709 = vmatmul.mubr.f32.gmra.mrb[22].mxu1 %v4668_v25 }
 0xa4f   :  { %4335 = vmatpush1.bf16.msra.mxu1 %v4334_v40  ;;  %v4364_v40 = vpack.c.bf16 %v2116_v39, %v2113_v38  ;;  %v2349_v39 = vld [vmem:[#allocation17 + $0x248] sm:$0xff] }
 0xa50   :  { %v4670_v26 = vpop.eup %4669  ;;  %4337 = vmatprep.subr.bf16.mxu1 %v4336_v44  ;;  %v4368_v44 = vpack.c.bf16 %v2122_v42, %v2119_v41  ;;  %v2350_v41 = vld [vmem:[#allocation17 + $0x250] sm:$0xff]  ;;  %v2353_v42 = vld [vmem:[#allocation17 + $0x268] sm:$0xff] }
 0xa51   :  { %v4672_v27 = vpop.eup %4671  ;;  %3711 = vmatprep.mubr.f32.mxu1 %v4670_v26 }
 0xa52   :  { %3712 = vmatmul.mubr.f32.gmra.mrb[24].mxu1 %v4672_v27 }
 0xa53   :  { %2235 = vmatprep.mubr.f32.mxu1 %v5096_v31  ;;  %4339 = vmatpush1.bf16.msra.mxu1 %v4338_v48  ;;  %v2128_v48 = vld [vmem:[#allocation16 + $0x238] sm:$0xff] }
 0xa54   :  { %4341 = vmatprep.subr.bf16.mxu1 %v4340_v45  ;;  %v4372_v50 = vpack.c.bf16 %v2128_v48, %v2125_v47  ;;  %v4376_v45 = vpack.c.bf16 %v2134_v53, %v2131_v51  ;;  %v2348_v47 = vld [vmem:[#allocation17 + $0x240] sm:$0xff]  ;;  %v2351_v48 = vld [vmem:[#allocation17 + $0x258] sm:$0xff]  ;;  %v2358_v53 = vld [vmem:[#allocation17 + $0x290] sm:$0xff] }
 0xa55   :  { %v2355_v51 = vld [vmem:[#allocation17 + $0x278] sm:$0xff] }
 0xa57   :  { %4343 = vmatpush1.bf16.msra.mxu1 %v4342_v56  ;;  %v2140_v56 = vld [vmem:[#allocation16 + $0x298] sm:$0xff] }
 0xa58   :  { %4345 = vmatprep.subr.bf16.mxu1 %v4344_v63  ;;  %v4380_v60 = vpack.c.bf16 %v2140_v56, %v2137_v54  ;;  %v4384_v63 = vpack.c.bf16 %v2146_v62, %v2143_v61  ;;  %v2359_v54 = vld [vmem:[#allocation17 + $0x298] sm:$0xff]  ;;  %v4410_v56 = vpack.c.bf16 %v2351_v48, %v2348_v47  ;;  %v2354_v61 = vld [vmem:[#allocation17 + $0x270] sm:$0xff]  ;;  %v2357_v62 = vld [vmem:[#allocation17 + $0x288] sm:$0xff] }
 0xa59   :  { %v2687_v47 = vld [vmem:[%s5646_s18 + $0x18] sm:$0xff] }
 0xa5b   :  { %4347 = vmatpush1.bf16.msra.mxu1 %v4346_v1  ;;  %v2152_v1 = vld [vmem:[#allocation16 + $0x2f8] sm:$0xff] }
 0xa5c   :  { %4349 = vmatprep.subr.bf16.mxu1 %v4348_v5  ;;  %v4388_v2 = vpack.c.bf16 %v2152_v1, %v2149_v0  ;;  %v4392_v5 = vpack.c.bf16 %v2328_v3, %v2325_v57  ;;  %v2361_v0 = vld [vmem:[#allocation17 + $0x2a8] sm:$0xff]  ;;  %v2364_v1 = vld [vmem:[#allocation17 + $0x2c0] sm:$0xff]  ;;  %v4414_v3 = vpack.c.bf16 %v2357_v62, %v2354_v61 }
 0xa5d   :  { %v2365_v57 = vld [vmem:[#allocation17 + $0x2c8] sm:$0xff] }
 0xa5e   :  { %v2373_v62 = vld [vmem:[#allocation20 + $0x3] sm:$0x7] }
 0xa5f   :  { %4351 = vmatpush1.bf16.msra.mxu1 %v4350_v59  ;;  %v2329_v59 = vld [vmem:[#allocation17 + $0x1a8] sm:$0xff] }
 0xa60   :  { %4353 = vmatprep.subr.bf16.mxu1 %v4352_v13  ;;  %v4424_v7 = vpack.c.bf16 %v2329_v59, %v2326_v6  ;;  %v2331_v13 = vld [vmem:[#allocation17 + $0x1b8] sm:$0xff]  ;;  %v2360_v6 = vld [vmem:[#allocation17 + $0x2a0] sm:$0xff] }
 0xa61   :  { %v2363_v59 = vld [vmem:[#allocation17 + $0x2b8] sm:$0xff] }
 0xa63   :  { %4355 = vmatpush1.bf16.msra.mxu1 %v4354_v17  ;;  %v4394_v17 = vpack.c.bf16 %v2327_v12, %v2324_v11  ;;  %v2367_v11 = vld [vmem:[#allocation17 + $0x2d8] sm:$0xff]  ;;  %v2370_v12 = vld [vmem:[#allocation17 + $0x2f0] sm:$0xff] }
 0xa64   :  { %4357 = vmatprep.subr.bf16.mxu1 %v4356_v20  ;;  %v2330_v20 = vld [vmem:[#allocation17 + $0x1b0] sm:$0xff] }
 0xa67   :  { %4359 = vmatpush1.bf16.msra.mxu1 %v4358_v4 }
 0xa68   :  { %4393 = vmatprep.subr.bf16.mxu1 %v4392_v5  ;;  %v4416_v5 = vpack.c.bf16 %v2364_v1, %v2361_v0  ;;  %v2378_v1 = vrot.slane %v2373_v62, %v5495_v49 }
 0xb1d   :  { %v3707_v21 = vpop.f32.mrb[20].mxu1 }
 0xb1e   :  { %v2006_v15 = vadd.f32 %v3707_v21, %v2937_v14  ;;  %v2000_v22 = vpop.f32.mrb[21].mxu1  ;;  %v2337_v21 = vld [vmem:[#allocation17 + $0x1e8] sm:$0xff] }
 0xb1f   :  { %v2001_v10 = vadd.f32 %v2937_v14, %v2000_v22  ;;  %v4428_v22 = vpack.c.bf16 %v2335_v18, %v2332_v58  ;;  %v4420_v58 = vpack.c.bf16 %v2370_v12, %v2367_v11  ;;  %v2366_v18 = vld [vmem:[#allocation17 + $0x2d0] sm:$0xff] }
 0xb21   :  { %v4316_v19 = vpack.c.bf16 %v2006_v15, %v2001_v10  ;;  %v3710_v23 = vpop.f32.mrb[22].mxu1  ;;  %v2340_v15 = vld [vmem:[#allocation17 + $0x200] sm:$0xff]  ;;  %v2338_v10 = vld [vmem:[#allocation17 + $0x1f0] sm:$0xff] }
 0xb22   :  { %v2016_v25 = vadd.f32 %v3710_v23, %v2937_v14  ;;  %v2010_v26 = vpop.f32.mrb[23].mxu1  ;;  %v4398_v23 = vpack.c.bf16 %v2333_v9, %v2330_v20 }
 0xb23   :  { %v2011_v27 = vadd.f32 %v2937_v14, %v2010_v26  ;;  %4317 = vmatprep.subr.bf16.mxu0 %v4316_v19  ;;  %v2336_v26 = vld [vmem:[#allocation17 + $0x1e0] sm:$0xff] }
 0xb24   :  { %4319 = vmatpush3.bf16.msra.mxu0 %v4316_v19  ;;  %v2341_v19 = vld [vmem:[#allocation17 + $0x208] sm:$0xff] }
 0xb25   :  { %v4320_v28 = vpack.c.bf16 %v2016_v25, %v2011_v27  ;;  %v3713_v29 = vpop.f32.mrb[24].mxu1  ;;  %v4400_v25 = vpack.c.bf16 %v2340_v15, %v2337_v21  ;;  %v2339_v27 = vld [vmem:[#allocation17 + $0x1f8] sm:$0xff] }
 0xb26   :  { %v2026_v30 = vadd.f32 %v3713_v29, %v2937_v14  ;;  %v2020_v32 = vpop.f32.mrb[25].mxu1  ;;  %v2343_v29 = vld [vmem:[#allocation17 + $0x218] sm:$0xff]  ;;  %v4402_v34 = vpack.c.bf16 %v2339_v27, %v2336_v26  ;;  %v2591_v27 = vld [vmem:[#allocation22 + $0x38] sm:$0xff] }
 0xb27   :  { %v2021_v35 = vadd.f32 %v2937_v14, %v2020_v32  ;;  %4321 = vmatprep.subr.bf16.mxu0 %v4320_v28  ;;  %v4396_v14 = vpack.c.bf16 %v2334_v16, %v2331_v13  ;;  %v2344_v32 = vld [vmem:[#allocation17 + $0x220] sm:$0xff]  ;;  %v2371_v16 = vld [vmem:[#allocation17 + $0x2f8] sm:$0xff] }
 0xb28   :  { %4323 = vmatpush3.bf16.msra.mxu0 %v4320_v28  ;;  %v4432_v28 = vpack.c.bf16 %v2341_v19, %v2338_v10  ;;  %v4436_v38 = vpack.c.bf16 %v2347_v33, %v2344_v32  ;;  %v2368_v13 = vld [vmem:[#allocation17 + $0x2e0] sm:$0xff]  ;;  %v2588_v19 = vld [vmem:[#allocation22 + $0x20] sm:$0xff] }
 0xb29   :  { %v4324_v36 = vpack.c.bf16 %v2026_v30, %v2021_v35  ;;  %v2346_v30 = vld [vmem:[#allocation17 + $0x230] sm:$0xff]  ;;  %v4452_v20 = vpack.c.bf16 %v2371_v16, %v2368_v13  ;;  %v2586_v15 = vld [vmem:[#allocation22 + $0x10] sm:$0xff]  ;;  %v2595_v33 = vld [vmem:[#allocation22 + $0x58] sm:$0xff] }
 0xb2a   :  { %v4404_v35 = vpack.c.bf16 %v2346_v30, %v2343_v29  ;;  %v2590_v26 = vld [vmem:[#allocation22 + $0x30] sm:$0xff]  ;;  %v2593_v29 = vld [vmem:[#allocation22 + $0x48] sm:$0xff] }
 0xb2b   :  { %4325 = vmatprep.subr.bf16.mxu0 %v4324_v36  ;;  %v2594_v32 = vld [vmem:[#allocation22 + $0x50] sm:$0xff] }
 0xb2c   :  { %4327 = vmatpush3.bf16.msra.mxu0 %v4324_v36  ;;  %v2342_v36 = vld [vmem:[#allocation17 + $0x210] sm:$0xff] }
 0xb2d   :  { %4361 = vmatprep.subr.bf16.mxu0 %v4360_v37 }
 0xb2f   :  { %3727 = vmatmul.mubr.msk.f32.vlgmr.msra.gmra.mrb[30].mxu0 %vm932_vm3, %v4702_v43 }
 0xb30   :  { %4363 = vmatpush3.bf16.msra.mxu0 %v4360_v37  ;;  %v2345_v37 = vld [vmem:[#allocation17 + $0x228] sm:$0xff] }
 0xb31   :  { %4365 = vmatprep.subr.bf16.mxu0 %v4364_v40  ;;  %v4406_v43 = vpack.c.bf16 %v2345_v37, %v2342_v36  ;;  %v2597_v36 = vld [vmem:[#allocation22 + $0x68] sm:$0xff] }
 0xb34   :  { %4367 = vmatpush3.bf16.msra.mxu0 %v4364_v40  ;;  %v2352_v40 = vld [vmem:[#allocation17 + $0x260] sm:$0xff] }
 0xb35   :  { %4369 = vmatprep.subr.bf16.mxu0 %v4368_v44 }
 0xb38   :  { %4371 = vmatpush3.bf16.msra.mxu0 %v4368_v44  ;;  %v4408_v44 = vpack.c.bf16 %v2352_v40, %v2349_v39  ;;  %v2599_v39 = vld [vmem:[#allocation22 + $0x78] sm:$0xff] }
 0xb39   :  { %4373 = vmatprep.subr.bf16.mxu0 %v4372_v50 }
 0xb3c   :  { %4375 = vmatpush3.bf16.msra.mxu0 %v4372_v50  ;;  %v4440_v50 = vpack.c.bf16 %v2353_v42, %v2350_v41  ;;  %v2684_v41 = vld [vmem:[%s5646_s18] sm:$0xff]  ;;  %v2685_v42 = vld [vmem:[%s5646_s18 + $0x8] sm:$0xff] }
 0xb3d   :  { %4377 = vmatprep.subr.bf16.mxu0 %v4376_v45 }
 0xb40   :  { %4379 = vmatpush3.bf16.msra.mxu0 %v4376_v45  ;;  %v2356_v45 = vld [vmem:[#allocation17 + $0x280] sm:$0xff] }
 0xb41   :  { %4381 = vmatprep.subr.bf16.mxu0 %v4380_v60 }
 0xb44   :  { %4383 = vmatpush3.bf16.msra.mxu0 %v4380_v60  ;;  %v4412_v60 = vpack.c.bf16 %v2358_v53, %v2355_v51  ;;  %v2689_v51 = vld [vmem:[%s5646_s18 + $0x28] sm:$0xff] }
 0xb45   :  { %4385 = vmatprep.subr.bf16.mxu0 %v4384_v63 }
 0xb48   :  { %4387 = vmatpush3.bf16.msra.mxu0 %v4384_v63  ;;  %v4444_v63 = vpack.c.bf16 %v2359_v54, %v2356_v45  ;;  %v2690_v45 = vld [vmem:[%s5646_s18 + $0x30] sm:$0xff]  ;;  %v2691_v54 = vld [vmem:[%s5646_s18 + $0x38] sm:$0xff] }
 0xb49   :  { %4389 = vmatprep.subr.bf16.mxu0 %v4388_v2 }
 0xb4c   :  { %4391 = vmatpush3.bf16.msra.mxu0 %v4388_v2  ;;  %v2362_v2 = vld [vmem:[#allocation17 + $0x2b0] sm:$0xff] }
 0xb4d   :  { %4425 = vmatprep.subr.bf16.mxu0 %v4424_v7 }
 0xc02   :  { %v3728_v8 = vpop.f32.mrb[30].mxu0 }
 0xc03   :  { %v2095_v4 = vpop.f32.mrb[31].mxu0 }
 0xc04   :  { %2236 = vmatmul.mubr.f32.vlgmr.msra.gmra.mrb[26].mxu1 %v2095_v4  ;;  %3761 = vmatprep.mubr.f32.mxu0 %v2095_v4  ;;  %v2584_v4 = vld [vmem:[#allocation22] sm:$0xff] }
 0xc05   :  { %4395 = vmatpush1.bf16.msra.mxu1 %v4394_v17  ;;  %3762 = vmatmul.mubr.f32.vlgmr.msra.gmra.mrb[32].mxu0 %v3728_v8  ;;  %v4418_v17 = vpack.c.bf16 %v2363_v59, %v2360_v6 }
 0xc06   :  { %4427 = vmatpush3.bf16.msra.mxu0 %v4424_v7  ;;  %3796 = vmatprep.mubr.f32.mxu0 %v5508_v46  ;;  %v4448_v7 = vpack.c.bf16 %v2365_v57, %v2362_v2  ;;  %v2382_v57 = vrot.slane %v2373_v62, %v5497_v52 }
 0xc07   :  { %2241 = vmatprep.mubr.f32.mxu1 %v5096_v31  ;;  %4397 = vmatprep.subr.bf16.mxu1 %v4396_v14  ;;  %v2585_v14 = vld [vmem:[#allocation22 + $0x8] sm:$0xff] }
 0xc08   :  { %2242 = vmatmul.mubr.f32.gmra.mrb[28].mxu1 %v3728_v8  ;;  %4429 = vmatprep.subr.bf16.mxu0 %v4428_v22  ;;  %v2369_v8 = vld [vmem:[#allocation17 + $0x2e8] sm:$0xff]  ;;  %v4456_v21 = vpack.c.bf16 %v2585_v14, %v2584_v4 }
 0xc09   :  { %4399 = vmatpush1.bf16.msra.mxu1 %v4398_v23  ;;  %2454 = vmatprep.mubr.f32.mxu1 %v5096_v31  ;;  %v4422_v9 = vpack.c.bf16 %v2369_v8, %v2366_v18  ;;  %v2589_v23 = vld [vmem:[#allocation22 + $0x28] sm:$0xff] }
 0xc0a   :  { %4431 = vmatpush3.bf16.msra.mxu0 %v4428_v22  ;;  %4401 = vmatprep.subr.bf16.mxu1 %v4400_v25  ;;  %v2587_v22 = vld [vmem:[#allocation22 + $0x18] sm:$0xff]  ;;  %v4464_v25 = vpack.c.bf16 %v2589_v23, %v2588_v19 }
 0xc0b   :  { %4433 = vmatprep.subr.bf16.mxu0 %v4432_v28  ;;  %v4460_v10 = vpack.c.bf16 %v2587_v22, %v2586_v15  ;;  %v2386_v22 = vrot.slane %v2373_v62, %v5503_v24  ;;  %v2699_v62 = vld [vmem:[%s5646_s18 + $0x78] sm:$0xff] }
 0xc0d   :  { %4403 = vmatpush1.bf16.msra.mxu1 %v4402_v34  ;;  %v2596_v34 = vld [vmem:[#allocation22 + $0x60] sm:$0xff] }
 0xc0e   :  { %4435 = vmatpush3.bf16.msra.mxu0 %v4432_v28  ;;  %4405 = vmatprep.subr.bf16.mxu1 %v4404_v35  ;;  %v2592_v28 = vld [vmem:[#allocation22 + $0x40] sm:$0xff]  ;;  %v4476_v35 = vpack.c.bf16 %v2595_v33, %v2594_v32  ;;  %v4480_v37 = vpack.c.bf16 %v2597_v36, %v2596_v34 }
 0xc0f   :  { %4437 = vmatprep.subr.bf16.mxu0 %v4436_v38  ;;  %v4472_v30 = vpack.c.bf16 %v2593_v29, %v2592_v28 }
 0xc11   :  { %4407 = vmatpush1.bf16.msra.mxu1 %v4406_v43  ;;  %v2686_v43 = vld [vmem:[%s5646_s18 + $0x10] sm:$0xff] }
 0xc12   :  { %4439 = vmatpush3.bf16.msra.mxu0 %v4436_v38  ;;  %4409 = vmatprep.subr.bf16.mxu1 %v4408_v44  ;;  %v2598_v38 = vld [vmem:[#allocation22 + $0x70] sm:$0xff]  ;;  %v4488_v44 = vpack.c.bf16 %v2685_v42, %v2684_v41  ;;  %v4492_v48 = vpack.c.bf16 %v2687_v47, %v2686_v43 }
 0xc13   :  { %4441 = vmatprep.subr.bf16.mxu0 %v4440_v50  ;;  %v4484_v40 = vpack.c.bf16 %v2599_v39, %v2598_v38 }
 0xc15   :  { %4411 = vmatpush1.bf16.msra.mxu1 %v4410_v56  ;;  %v4500_v56 = vpack.c.bf16 %v2691_v54, %v2690_v45  ;;  %v2696_v54 = vld [vmem:[%s5646_s18 + $0x60] sm:$0xff] }
 0xc16   :  { %4443 = vmatpush3.bf16.msra.mxu0 %v4440_v50  ;;  %4413 = vmatprep.subr.bf16.mxu1 %v4412_v60  ;;  %v2688_v50 = vld [vmem:[%s5646_s18 + $0x20] sm:$0xff] }
 0xc17   :  { %4445 = vmatprep.subr.bf16.mxu0 %v4444_v63  ;;  %v4496_v53 = vpack.c.bf16 %v2689_v51, %v2688_v50  ;;  %v2692_v50 = vld [vmem:[%s5646_s18 + $0x40] sm:$0xff]  ;;  %v2693_v51 = vld [vmem:[%s5646_s18 + $0x48] sm:$0xff] }
 0xc19   :  { %4415 = vmatpush1.bf16.msra.mxu1 %v4414_v3 }
 0xc1a   :  { %4447 = vmatpush3.bf16.msra.mxu0 %v4444_v63  ;;  %4417 = vmatprep.subr.bf16.mxu1 %v4416_v5  ;;  %v2154_v63 = vld [vmem:[#allocation19 + $0x3] sm:$0x7] }
 0xc1b   :  { %4449 = vmatprep.subr.bf16.mxu0 %v4448_v7  ;;  %v2159_v0 = vrot.slane %v2154_v63, %v5495_v49  ;;  %v2163_v2 = vrot.slane %v2154_v63, %v5497_v52  ;;  %v2167_v19 = vrot.slane %v2154_v63, %v5503_v24 }
 0xc1d   :  { %4419 = vmatpush1.bf16.msra.mxu1 %v4418_v17  ;;  %v4560_v3 = vadd.f32 %v2378_v1, %v2159_v0  ;;  %v4562_v6 = vadd.f32 %v2382_v57, %v2163_v2  ;;  %v2784_v0 = vld [vmem:[#allocation25] sm:$0xff]  ;;  %v2785_v1 = vld [vmem:[#allocation25 + $0x8] sm:$0xff]  ;;  %v2786_v2 = vld [vmem:[#allocation25 + $0x10] sm:$0xff] }
 0xc1e   :  { %4451 = vmatpush3.bf16.msra.mxu0 %v4448_v7  ;;  %4421 = vmatprep.subr.bf16.mxu1 %v4420_v58  ;;  %v4520_v57 = vpack.c.bf16 %v2785_v1, %v2784_v0 }
 0xc1f   :  { %4453 = vmatprep.subr.bf16.mxu0 %v4452_v20 }
 0xc21   :  { %4423 = vmatpush1.bf16.msra.mxu1 %v4422_v9 }
 0xc22   :  { %4455 = vmatpush3.bf16.msra.mxu0 %v4452_v20  ;;  %4457 = vmatprep.subr.bf16.mxu1 %v4456_v21 }
 0xc23   :  { %4489 = vmatprep.subr.bf16.mxu0 %v4488_v44 }
 0xc24   :  { %2455 = vmatmul.mubr.f32.vlgmr.msra.gmra.mrb[26].mxu1 %v5508_v46 }
 0xc25   :  { %3797 = vmatmul.mubr.f32.vlgmr.msra.gmra.mrb[34].mxu0 %v5513_v55  ;;  %2460 = vmatprep.mubr.f32.mxu1 %v5096_v31  ;;  %v4468_v31 = vpack.c.bf16 %v2591_v27, %v2590_v26 }
 0xc26   :  { %4459 = vmatpush3.bf16.msra.mxu1 %v4456_v21  ;;  %4491 = vmatpush3.bf16.msra.mxu0 %v4488_v44 }
 0xc27   :  { %4461 = vmatprep.subr.bf16.mxu1 %v4460_v10  ;;  %4493 = vmatprep.subr.bf16.mxu0 %v4492_v48 }
 0xc28   :  { %2461 = vmatmul.mubr.f32.gmra.mrb[28].mxu1 %v5513_v55 }
 0xc2a   :  { %4463 = vmatpush3.bf16.msra.mxu1 %v4460_v10  ;;  %4495 = vmatpush3.bf16.msra.mxu0 %v4492_v48 }
 0xc2b   :  { %4465 = vmatprep.subr.bf16.mxu1 %v4464_v25  ;;  %4497 = vmatprep.subr.bf16.mxu0 %v4496_v53 }
 0xc2e   :  { %4467 = vmatpush3.bf16.msra.mxu1 %v4464_v25  ;;  %4499 = vmatpush3.bf16.msra.mxu0 %v4496_v53  ;;  %v4504_v53 = vpack.c.bf16 %v2693_v51, %v2692_v50 }
 0xc2f   :  { %4469 = vmatprep.subr.bf16.mxu1 %v4468_v31  ;;  %4501 = vmatprep.subr.bf16.mxu0 %v4500_v56 }
 0xc32   :  { %4471 = vmatpush3.bf16.msra.mxu1 %v4468_v31  ;;  %4503 = vmatpush3.bf16.msra.mxu0 %v4500_v56  ;;  %v2697_v56 = vld [vmem:[%s5646_s18 + $0x68] sm:$0xff] }
 0xc33   :  { %4473 = vmatprep.subr.bf16.mxu1 %v4472_v30  ;;  %4505 = vmatprep.subr.bf16.mxu0 %v4504_v53 }
 0xc36   :  { %4475 = vmatpush3.bf16.msra.mxu1 %v4472_v30  ;;  %4507 = vmatpush3.bf16.msra.mxu0 %v4504_v53 }
 0xc37   :  { %4477 = vmatprep.subr.bf16.mxu1 %v4476_v35 }
 0xc3a   :  { %4479 = vmatpush3.bf16.msra.mxu1 %v4476_v35 }
 0xc3b   :  { %4481 = vmatprep.subr.bf16.mxu1 %v4480_v37 }
 0xc3e   :  { %4483 = vmatpush3.bf16.msra.mxu1 %v4480_v37 }
 0xc3f   :  { %4485 = vmatprep.subr.bf16.mxu1 %v4484_v40 }
 0xc42   :  { %4487 = vmatpush3.bf16.msra.mxu1 %v4484_v40 }
 0xc43   :  { %4521 = vmatprep.subr.bf16.mxu1 %v4520_v57 }
 0xcd8   :  { %v3763_v60 = vpop.f32.mrb[32].mxu0 }
 0xcd9   :  { %v2314_v61 = vpop.f32.mrb[33].mxu0  ;;  %v2320_v33 = vadd.f32 %v3763_v60, %v2167_v19  ;;  %v2698_v60 = vld [vmem:[%s5646_s18 + $0x70] sm:$0xff] }
 0xcda   :  { %v2315_v31 = vadd.f32 %v2314_v61, %v2167_v19  ;;  %v4512_v61 = vpack.c.bf16 %v2697_v56, %v2696_v54  ;;  %v4516_v63 = vpack.c.bf16 %v2699_v62, %v2698_v60  ;;  %v2798_v19 = vld [vmem:[#allocation25 + $0x70] sm:$0xff] }
 0xcf7   :  { %v2456_v5 = vpop.f32.mrb[26].mxu1 }
 0xcf8   :  { %v4561_v59 = vadd.f32 %v4560_v3, %v2456_v5  ;;  %v2458_v7 = vpop.f32.mrb[27].mxu1  ;;  %v3798_v11 = vpop.f32.mrb[34].mxu0 }
 0xcf9   :  { %v2533_v12 = vpop.f32.mrb[35].mxu0  ;;  %v4563_v16 = vadd.f32 %v4562_v6, %v2458_v7  ;;  %v2539_v29 = vadd.f32 %v3798_v11, %v2386_v22  ;;  %v2790_v11 = vld [vmem:[#allocation25 + $0x30] sm:$0xff] }
 0xcfa   :  { %v2940_v13 = vmul.f32 -1.442695, %v4561_v59  ;;  %v2534_v25 = vadd.f32 %v2533_v12, %v2386_v22  ;;  %v2789_v59 = vld [vmem:[#allocation25 + $0x28] sm:$0xff]  ;;  %v2791_v12 = vld [vmem:[#allocation25 + $0x38] sm:$0xff]  ;;  %v2796_v22 = vld [vmem:[#allocation25 + $0x60] sm:$0xff] }
 0xcfb   :  { %v2462_v17 = vpop.f32.mrb[28].mxu1  ;;  %v2942_v49 = vmul.f32 -1.442695, %v4563_v16  ;;  %v2944_v16 = vld [vmem:[#allocation23] ss:$0 sm:$0xff] }
 0xcfc   :  { %4673 = vpow2.f32 %v2940_v13  ;;  %v4565_v58 = vadd.f32 %v4560_v3, %v2462_v17  ;;  %v2464_v18 = vpop.f32.mrb[29].mxu1  ;;  %v2787_v3 = vld [vmem:[#allocation25 + $0x18] sm:$0xff]  ;;  %v4532_v13 = vpack.c.bf16 %v2791_v12, %v2790_v11 }
 0xcfd   :  { %v4567_v20 = vadd.f32 %v4562_v6, %v2464_v18  ;;  %v4524_v5 = vpack.c.bf16 %v2787_v3, %v2786_v2  ;;  %v2788_v6 = vld [vmem:[#allocation25 + $0x20] sm:$0xff] }
 0xcfe   :  { %v2941_v8 = vmul.f32 -1.442695, %v4565_v58  ;;  %v4528_v7 = vpack.c.bf16 %v2789_v59, %v2788_v6 }
 0xcff   :  { %v2943_v9 = vmul.f32 -1.442695, %v4567_v20 }
 0xd00   :  { %4675 = vpow2.f32 %v2941_v8 }
 0xd01   :  { %4677 = vpow2.f32 %v2942_v49 }
 0xd02   :  { %4679 = vpow2.f32 %v2943_v9  ;;  %v2792_v9 = vld [vmem:[#allocation25 + $0x40] sm:$0xff] }
 0xd06   :  { %v4674_v52 = vpop.eup %4673 }
 0xd07   :  { %v2550_v4 = vadd.f32 1.0, %v4674_v52  ;;  %v2793_v52 = vld [vmem:[#allocation25 + $0x48] sm:$0xff] }
 0xd09   :  { %4681 = vrcp.f32 %v2550_v4  ;;  %v4536_v4 = vpack.c.bf16 %v2793_v52, %v2792_v9 }
 0xd0a   :  { %v4676_v14 = vpop.eup %4675 }
 0xd0b   :  { %v2551_v21 = vadd.f32 1.0, %v4676_v14  ;;  %v4678_v15 = vpop.eup %4677  ;;  %v2794_v14 = vld [vmem:[#allocation25 + $0x50] sm:$0xff] }
 0xd0c   :  { %v4680_v10 = vpop.eup %4679  ;;  %v2564_v23 = vadd.f32 1.0, %v4678_v15 }
 0xd0d   :  { %4683 = vrcp.f32 %v2551_v21  ;;  %v2565_v27 = vadd.f32 1.0, %v4680_v10  ;;  %v2795_v21 = vld [vmem:[#allocation25 + $0x58] sm:$0xff]  ;;  %v2797_v10 = vld [vmem:[#allocation25 + $0x68] sm:$0xff] }
 0xd0e   :  { %4685 = vrcp.f32 %v2564_v23  ;;  %v4540_v15 = vpack.c.bf16 %v2795_v21, %v2794_v14  ;;  %v4544_v23 = vpack.c.bf16 %v2797_v10, %v2796_v22 }
 0xd0f   :  { %4687 = vrcp.f32 %v2565_v27  ;;  %v2945_v27 = vld [vmem:[%s5647_s19] ss:$0 sm:$0xff]  ;;  %s5033_s19 = scalar_lea.vmem %s2890_s30, 256 }
 0xd10   :  { %p5034_p8 = scmp.ne.s32.totalorder %s2890_s30, %s5033_s19  ;;  %p5039_p10 = scmp.lt.s32.totalorder %s5033_s19, %s5033_s19 }
 0xd12   :  { %p5040_p11 = por %p5039_p10, %p5038_p9 }
 0xd13   :  { %v4682_v26 = vpop.eup %4681 }
 0xd14   :  { %v2570_v28 = vmul.f32 %v4682_v26, %v2534_v25  ;;  %v2799_v25 = vld [vmem:[#allocation25 + $0x78] sm:$0xff]  ;;  %p5041_p12 = pnand %p5040_p11, %p5034_p8 }
 0xd15   :  { %v4548_v26 = vpack.c.bf16 %v2799_v25, %v2798_v19 }
 0xd16   :  { %v2572_v30 = vadd.f32 %v2570_v28, %v2315_v31 }
 0xd17   :  { %v4684_v32 = vpop.eup %4683 }
 0xd18   :  { %4689 = vtanh.f32 %v2572_v30  ;;  %v2571_v34 = vmul.f32 %v4684_v32, %v2539_v29  ;;  %v4686_v36 = vpop.eup %4685 }
 0xd19   :  { %v4688_v37 = vpop.eup %4687  ;;  %v2576_v38 = vsub.f32 1.0, %v4686_v36  ;;  %v2580_v40 = vmul.f32 %v4686_v36, %v5508_v46  ;;  %v2694_v46 = vld [vmem:[%s5646_s18 + $0x50] sm:$0xff] }
 0xd1a   :  { %v2573_v35 = vadd.f32 %v2571_v34, %v2320_v33  ;;  %v2577_v41 = vsub.f32 1.0, %v4688_v37  ;;  %v2581_v47 = vmul.f32 %v4688_v37, %v5513_v55  ;;  %v2695_v55 = vld [vmem:[%s5646_s18 + $0x58] sm:$0xff]  ;;  %v2946_v34 = vld [vmem:[%s5649_s21] ss:$0 sm:$0xff] }
 0xd1b   :  { %v4508_v45 = vpack.c.bf16 %v2695_v55, %v2694_v46 }
 0xd1c   :  { %4691 = vtanh.f32 %v2573_v35 }
 0xd1d   :  { %4509 = vmatprep.subr.bf16.mxu0 %v4508_v45 }
 0xd1e   :  { %4511 = vmatpush3.bf16.msra.mxu0 %v4508_v45 }
 0xd1f   :  { %4513 = vmatprep.subr.bf16.mxu0 %v4512_v61 }
 0xd22   :  { %v4690_v24 = vpop.eup %4689  ;;  %4515 = vmatpush3.bf16.msra.mxu0 %v4512_v61 }
 0xd23   :  { %v2578_v39 = vmul.f32 %v4690_v24, %v2576_v38  ;;  %4517 = vmatprep.subr.bf16.mxu0 %v4516_v63 }
 0xd25   :  { %v2582_v42 = vadd.f32 %v2580_v40, %v2578_v39 }
 0xd26   :  { %v4692_v43 = vpop.eup %4691  ;;  %4519 = vmatpush3.bf16.msra.mxu0 %v4516_v63 }
 0xd27   :  { %3831 = vmatprep.mubr.f32.mxu1 %v2582_v42  ;;  %v2579_v44 = vmul.f32 %v4692_v43, %v2577_v41 }
 0xd29   :  { %v2583_v48 = vadd.f32 %v2581_v47, %v2579_v44 }
 0xd2b   :  { %3832 = vmatmul.mubr.f32.vlgmr.msra.gmra.mrb[30].mxu1 %v2583_v48 }
 0xd2c   :  { %4523 = vmatpush3.bf16.msra.mxu1 %v4520_v57 }
 0xd2d   :  { %4525 = vmatprep.subr.bf16.mxu1 %v4524_v5 }
 0xd30   :  { %4527 = vmatpush3.bf16.msra.mxu1 %v4524_v5 }
 0xd31   :  { %4529 = vmatprep.subr.bf16.mxu1 %v4528_v7 }
 0xd34   :  { %4531 = vmatpush3.bf16.msra.mxu1 %v4528_v7 }
 0xd35   :  { %4533 = vmatprep.subr.bf16.mxu1 %v4532_v13 }
 0xd38   :  { %4535 = vmatpush3.bf16.msra.mxu1 %v4532_v13 }
 0xd39   :  { %4537 = vmatprep.subr.bf16.mxu1 %v4536_v4 }
 0xd3c   :  { %4539 = vmatpush3.bf16.msra.mxu1 %v4536_v4 }
 0xd3d   :  { %4541 = vmatprep.subr.bf16.mxu1 %v4540_v15 }
 0xd40   :  { %4543 = vmatpush3.bf16.msra.mxu1 %v4540_v15 }
 0xd41   :  { %4545 = vmatprep.subr.bf16.mxu1 %v4544_v23 }
 0xd44   :  { %4547 = vmatpush3.bf16.msra.mxu1 %v4544_v23 }
 0xd45   :  { %4549 = vmatprep.subr.bf16.mxu1 %v4548_v26 }
 0xd48   :  { %4551 = vmatpush3.bf16.msra.mxu1 %v4548_v26 }
 0xdfe   :  { %v3833_v17 = vpop.f32.mrb[30].mxu1 }
 0xdff   :  { %v2679_v58 = vadd.f32 %v3833_v17, %v2944_v16  ;;  %v2673_v18 = vpop.f32.mrb[31].mxu1 }
 0xe00   :  { %v2674_v8 = vadd.f32 %v2944_v16, %v2673_v18 }
 0xe02   :  { %4693 = vtanh.f32 %v2674_v8 }
 0xe03   :  { %4695 = vtanh.f32 %v2679_v58 }
 0xe0c   :  { %v4694_v20 = vpop.eup %4693 }
 0xe0d   :  { %v4696_v49 = vpop.eup %4695  ;;  %3866 = vmatprep.mubr.f32.mxu0 %v4694_v20 }
 0xe0e   :  { %3867 = vmatmul.mubr.f32.vlgmr.msra.gmra.mrb[36].mxu0 %v4696_v49 }
 0xee1   :  { %v3868_v31 = vpop.f32.mrb[36].mxu0 }
 0xee2   :  { %v2779_v28 = vadd.f32 %v3868_v31, %v2945_v27  ;;  %v2773_v29 = vpop.f32.mrb[37].mxu0 }
 0xee3   :  { %v2774_v30 = vadd.f32 %v2945_v27, %v2773_v29 }
 0xee5   :  { %4697 = vtanh.f32 %v2774_v30 }
 0xee6   :  { %4699 = vtanh.f32 %v2779_v28 }
 0xeef   :  { %v4698_v32 = vpop.eup %4697 }
 0xef0   :  { %v4700_v33 = vpop.eup %4699  ;;  %3901 = vmatprep.mubr.f32.mxu1 %v4698_v32 }
 0xef1   :  { %3902 = vmatmul.mubr.f32.vlgmr.msra.gmra.mrb[32].mxu1 %v4700_v33 }
 0xfc4   :  { %v3903_v35 = vpop.f32.mrb[32].mxu1 }
 0xfc5   :  { %v2879_v36 = vadd.f32 %v3903_v35, %v2946_v34  ;;  %v2873_v37 = vpop.f32.mrb[33].mxu1 }
 0xfc6   :  { %v2874_v38 = vadd.f32 %v2946_v34, %v2873_v37 }
 0xfc7   :  { %2883 = vst [vmem:[#allocation26 + $0x8] sm:$0xff] %v2879_v36 }
 0xfc8   :  { %2882 = vst [vmem:[#allocation26] sm:$0xff] %v2874_v38 }
 0xfc9   :  { %5044 = shalt.err (!%p5041_p12)
}
 0xfca   :  { %s5676_s1 = sld [smem:[#allocation43_spill]] }
 0xfd0   :  { %s5045_s21 = scalar_lea.hbm %s5676_s1, 256 }
 0xfd1   :  { %p5046_p13 = scmp.ne.s32.totalorder %s5676_s1, %s5045_s21  ;;  %p5049_p0 = scmp.lt.u32.totalorder %s5045_s21, %s5676_s1 }
 0xfd3   :  { %p5051_p1 = pnand %p5049_p0, %p5046_p13 }
 0xfd5   :  { %5054 = shalt.err (!%p5051_p1)
}
 0xfd6   :  { %2895 = dma.vmem_to_hbm [thread:$0]  %s2890_s30, 256, %s5676_s1, [#allocation4], %s5076_s4, %s5076_s4, %s5077_s25  }
 0xfd7   :  { %5071 = dma.done.wait [#allocation4], 256  }
 0xfd8   :  { %5072 = vsyncadd [#allocation4], 4294967040 }
 0xfd9   :  { %2899 = vsyncpa [#allocation3], 1 }
 0xfda   :  { %2900 = vsyncpa [#allocation6], 1 }
 0xfdb   :  { %2901 = vsyncpa [#allocation9], 1 }
 0xfdc   :  { %2902 = vsyncpa [#allocation12], 1 }
 0xfdd   :  { %2903 = vsyncpa [#allocation15], 1 }
 0xfde   :  { %2904 = vsyncpa [#allocation18], 1 }
 0xfdf   :  { %2905 = vsyncpa [#allocation21], 1 }
 0xfe0   :  { %2906 = vsyncpa [#allocation24], 1 }
 0xfe1   :  { %2907 = vsyncpa [#allocation4], 1 }

</bundles_post_ra>
